<compile_context>
chip_gen: v6e
topology: v6e:2x2x1
jax: 0.10.0
libtpu: 0.0.40
codegen_flags: <defaults>
</compile_context>

<pallas_src>
import functools

import jax
import jax.numpy as jnp
from jax.experimental import pallas as pl
from jax.experimental.pallas import tpu as pltpu


def _round_up(x, m):
    return (x + m - 1) // m * m


# ----------------------------------------------------------------------------
# Pallas kernel: one GRU layer, t_chunk timesteps per grid step.
# Only h_prev @ W_h (bf16 operands, f32 accumulate) is on the serial critical
# path; input projections (with foldable biases) arrive precomputed (bf16).
# ----------------------------------------------------------------------------
def gru_chunk_kernel(xproj_ref, wh_ref, bhn_ref, y_ref, h_scr, *,
                     hp, t_chunk, unroll):
    # h0 = 0 (PyTorch default when no initial hidden state is passed).
    @pl.when(pl.program_id(0) == 0)
    def _init():
        h_scr[...] = jnp.zeros_like(h_scr)

    bp = h_scr.shape[0]
    wh = wh_ref[...]                                      # (Hp, 3*Hp) bf16, r|z|n
    # Hoisted out of the unrolled loop (broadcast_in_dim is not CSE'd by JAX).
    bhn_b = jnp.broadcast_to(bhn_ref[...], (bp, hp))      # (Bp, Hp) f32

    def step(t, h_prev):
        xp = xproj_ref[t].astype(jnp.float32)             # (Bp, 3*Hp) precomputed
        gh = jnp.dot(h_prev.astype(jnp.bfloat16), wh,
                     preferred_element_type=jnp.float32)  # (Bp, 3*Hp) f32
        r = jax.nn.sigmoid(xp[:, 0 * hp:1 * hp] + gh[:, 0 * hp:1 * hp])
        z = jax.nn.sigmoid(xp[:, 1 * hp:2 * hp] + gh[:, 1 * hp:2 * hp])
        n = jnp.tanh(xp[:, 2 * hp:3 * hp] + r * (gh[:, 2 * hp:3 * hp] + bhn_b))
        h_new = n + z * (h_prev - n)                      # == (1-z)*n + z*h_prev
        y_ref[t] = h_new.astype(y_ref.dtype)
        return h_new

    # Unroll capped (default 8) so long chunks don't blow up live vregs.
    h_scr[...] = jax.lax.fori_loop(0, t_chunk, step, h_scr[...], unroll=unroll)


def _vmem_budget(t_chunk, bp, hp):
    xproj_chunk = t_chunk * bp * 3 * hp * 2   # bf16 input chunk
    y_chunk = t_chunk * bp * hp * 4           # f32 output chunk
    weights = hp * 3 * hp * 2 + hp * 4        # wh bf16 + bhn f32
    scratch = bp * hp * 4                     # h carry
    need = 2 * (xproj_chunk + y_chunk + weights) + scratch   # double-buffered
    return int(min(max(4 * need, 16 * 1024 * 1024), 48 * 1024 * 1024))


def gru_layer_recurrence(xproj, wh, bhn, *, t_chunk, unroll, vmem_limit):
    """xproj: (S_pad, Bp, 3*Hp) bf16 -> y_pad: (S_pad, Bp, Hp) f32."""
    s_pad, bp, three_hp = xproj.shape
    hp = three_hp // 3
    kernel = functools.partial(gru_chunk_kernel, hp=hp, t_chunk=t_chunk,
                               unroll=unroll)

    grid_spec = pltpu.PrefetchScalarGridSpec(
        num_scalar_prefetch=0,
        grid=(s_pad // t_chunk,),
        in_specs=[
            pl.BlockSpec((t_chunk, bp, three_hp), lambda c: (c, 0, 0)),  # xproj
            # Constant index maps -> no re-DMA across grid steps.
            pl.BlockSpec((hp, three_hp), lambda c: (0, 0)),              # W_h3
            pl.BlockSpec((1, hp), lambda c: (0, 0)),                     # b_hn
        ],
        out_specs=pl.BlockSpec((t_chunk, bp, hp), lambda c: (c, 0, 0)),  # y
        scratch_shapes=[pltpu.VMEM((bp, hp), jnp.float32)],              # h carry
    )

    return pl.pallas_call(
        kernel,
        out_shape=jax.ShapeDtypeStruct((s_pad, bp, hp), jnp.float32),
        grid_spec=grid_spec,
        compiler_params=pltpu.CompilerParams(
            dimension_semantics=("arbitrary",),   # time is inherently sequential
            vmem_limit_bytes=vmem_limit,
        ),
    )(xproj, wh, bhn)


# ----------------------------------------------------------------------------
# Stacked GRU forward (matches nn.GRU(input_size, hidden_size, num_layers)).
# ----------------------------------------------------------------------------
@functools.partial(jax.jit, static_argnames=("hidden_size", "t_chunk"))
def gru_rnn_forward(x, prepared_params, hidden_size, t_chunk=None):
    S, B, _ = x.shape
    Hp = prepared_params[0][2].shape[0]        # wh: (Hp, 3*Hp)
    Bp = _round_up(B, 8)

    if t_chunk is None:
        # Short sequences: whole sequence in one grid step; else 32/step.
        t_chunk = S if S <= 64 else 32
    S_pad = _round_up(S, t_chunk)
    unroll = min(t_chunk, 8)
    vmem_limit = _vmem_budget(t_chunk, Bp, Hp)

    # Pad once (time tail + batch rows); activations stay padded between layers
    # and are sliced back to (S, B, H) only at the very end.  Padded hidden
    # columns provably stay exactly 0; padded batch rows / time tail carry
    # garbage that is never read back.
    inp = jnp.pad(x.astype(jnp.float32),
                  ((0, S_pad - S), (0, Bp - B), (0, 0)))

    h_stack = []
    for (wi, bi, wh, bhn) in prepared_params:
        feat = inp.shape[-1]
        # Input projection hoisted out of the recurrence: one big XLA matmul
        # with all foldable biases; stored bf16 to halve the HBM stream.
        xproj = (inp.reshape(S_pad * Bp, feat) @ wi + bi).astype(jnp.bfloat16)
        xproj = xproj.reshape(S_pad, Bp, 3 * Hp)
        y_pad = gru_layer_recurrence(xproj, wh, bhn, t_chunk=t_chunk,
                                     unroll=unroll, vmem_limit=vmem_limit)
        h_stack.append(y_pad[S - 1])          # last REAL timestep, (Bp, Hp)
        inp = y_pad                           # keep padded for the next layer

    y = inp[:S, :B, :hidden_size]
    h_n = jnp.stack(h_stack, axis=0)[:, :B, :hidden_size]
    return y, h_n


# ----------------------------------------------------------------------------
# Weight preparation (done once, outside the jitted forward).
# ----------------------------------------------------------------------------
def prepare_gru_params(raw_params, hidden_size):
    """Fuse/transpose/pad PyTorch-layout GRU weights for the kernel."""
    H = hidden_size
    Hp = _round_up(H, 128)
    prepared = []
    for layer, (w_ih, w_hh, b_ih, b_hh) in enumerate(raw_params):
        I = w_ih.shape[1]
        # Layers >= 1 consume the padded (Hp-wide) activations of the previous
        # layer directly, so their input dim is padded to Hp as well.
        Ip = I if layer == 0 else Hp
        wi = jnp.zeros((Ip, 3 * Hp), jnp.float32)      # input-path, fused r|z|n
        bi = jnp.zeros((3 * Hp,), jnp.float32)         # foldable biases
        wh = jnp.zeros((Hp, 3 * Hp), jnp.float32)      # hidden-path, fused r|z|n
        bhn = jnp.zeros((1, Hp), jnp.float32)          # n-gate hidden bias
        for g in range(3):
            wi = wi.at[:I, g * Hp:g * Hp + H].set(w_ih[g * H:(g + 1) * H, :].T)
            wh = wh.at[:H, g * Hp:g * Hp + H].set(w_hh[g * H:(g + 1) * H, :].T)
        bi = bi.at[0 * Hp:0 * Hp + H].set(b_ih[0:H] + b_hh[0:H])          # r
        bi = bi.at[1 * Hp:1 * Hp + H].set(b_ih[H:2 * H] + b_hh[H:2 * H])  # z
        bi = bi.at[2 * Hp:2 * Hp + H].set(b_ih[2 * H:3 * H])              # n (in)
        bhn = bhn.at[0, :H].set(b_hh[2 * H:3 * H])                        # n (hid)
        # Hidden weights in bf16: MXU operands only; gate math stays f32.
        prepared.append((wi, bi, wh.astype(jnp.bfloat16), bhn))
    return prepared


# ----------------------------------------------------------------------------
# Parameter init (mimics nn.GRU's U(-1/sqrt(H), 1/sqrt(H)))
# ----------------------------------------------------------------------------
def init_gru_params(key, input_size, hidden_size, num_layers):
    k = 1.0 / jnp.sqrt(hidden_size)
    params = []
    for layer in range(num_layers):
        in_sz = input_size if layer == 0 else hidden_size
        key, k1, k2, k3, k4 = jax.random.split(key, 5)
        w_ih = jax.random.uniform(k1, (3 * hidden_size, in_sz), jnp.float32, -k, k)
        w_hh = jax.random.uniform(k2, (3 * hidden_size, hidden_size), jnp.float32, -k, k)
        b_ih = jax.random.uniform(k3, (3 * hidden_size,), jnp.float32, -k, k)
        b_hh = jax.random.uniform(k4, (3 * hidden_size,), jnp.float32, -k, k)
        params.append((w_ih, w_hh, b_ih, b_hh))
    return params


# Pure-JAX reference (same equations as torch.nn.GRU) for a sanity check.
def gru_rnn_reference(x, params):
    inp = x
    h_stack = []
    for (w_ih, w_hh, b_ih, b_hh) in params:
        H = w_hh.shape[1]

        def step(h_prev, x_t):
            gi = x_t @ w_ih.T + b_ih
            gh = h_prev @ w_hh.T + b_hh
            i_r, i_z, i_n = gi[:, :H], gi[:, H:2 * H], gi[:, 2 * H:]
            h_r, h_z, h_n = gh[:, :H], gh[:, H:2 * H], gh[:, 2 * H:]
            r = jax.nn.sigmoid(i_r + h_r)
            z = jax.nn.sigmoid(i_z + h_z)
            n = jnp.tanh(i_n + r * h_n)
            h_new = (1.0 - z) * n + z * h_prev
            return h_new, h_new

        h0 = jnp.zeros((inp.shape[1], H), inp.dtype)
        h_last, y = jax.lax.scan(step, h0, inp)
        h_stack.append(h_last)
        inp = y
    return inp, jnp.stack(h_stack, axis=0)


if __name__ == "__main__":
    SEQ, BATCH, INPUT_SIZE, HIDDEN_SIZE, NUM_LAYERS = 8, 4, 16, 32, 2

    key = jax.random.PRNGKey(0)
    key, xkey = jax.random.split(key)
    x = jax.random.normal(xkey, (SEQ, BATCH, INPUT_SIZE), jnp.float32)
    raw_params = init_gru_params(key, INPUT_SIZE, HIDDEN_SIZE, NUM_LAYERS)
    prepared_params = prepare_gru_params(raw_params, HIDDEN_SIZE)

    y, h = gru_rnn_forward(x, prepared_params, hidden_size=HIDDEN_SIZE)
    y = jax.block_until_ready(y)
    h = jax.block_until_ready(h)

    assert y.shape == (SEQ, BATCH, HIDDEN_SIZE)
    assert h.shape == (NUM_LAYERS, BATCH, HIDDEN_SIZE)

    y_ref, h_ref = gru_rnn_reference(x, raw_params)
    # bf16 MXU operands / bf16 xproj storage -> slightly looser tolerance.
    assert jnp.allclose(y, y_ref, atol=3e-2, rtol=3e-2)
    assert jnp.allclose(h, h_ref, atol=3e-2, rtol=3e-2)

    print("KERNEL_OK")
</pallas_src>

<mosaic_0001>
module attributes {stable_mosaic.version = 11 : i64} {
  func.func @gru_chunk_kernel(%arg0: i32, %arg1: memref<8x8x384xbf16, #tpu.memory_space<vmem>>, %arg2: memref<128x384xbf16, #tpu.memory_space<vmem>>, %arg3: memref<1x128xf32, #tpu.memory_space<vmem>>, %arg4: memref<8x8x128xf32, #tpu.memory_space<vmem>>, %arg5: memref<8x128xf32, #tpu.memory_space<vmem>>) attributes {dimension_semantics = [#tpu.dimension_semantics<arbitrary>], iteration_bounds = array<i64: 1>, scalar_prefetch = 0 : i64, scratch_operands = 1 : i64, tpu.core_type = #tpu.core_type<tc>, window_params = [{transform_indices = @transform_0, window_bounds = array<i64: 8, 8, 384>}, {pipeline_mode = #tpu.pipeline_mode<synchronous>, transform_indices = @transform_1, window_bounds = array<i64: 128, 384>}, {pipeline_mode = #tpu.pipeline_mode<synchronous>, transform_indices = @transform_2, window_bounds = array<i64: 1, 128>}, {transform_indices = @transform_3, window_bounds = array<i64: 8, 8, 128>}]} {
    %c0_i32 = arith.constant 0 : i32
    %0 = arith.cmpi eq, %arg0, %c0_i32 : i32
    %1 = arith.extui %0 : i1 to i32
    %c0_i32_0 = arith.constant 0 : i32
    %2 = arith.cmpi ne, %1, %c0_i32_0 : i32
    scf.if %2 {
      %cst_64 = arith.constant 0.000000e+00 : f32
      %289 = vector.broadcast %cst_64 : f32 to vector<8x128xf32>
      %c0_65 = arith.constant 0 : index
      %c0_66 = arith.constant 0 : index
      %290 = vector.load %arg5[%c0_65, %c0_66] : memref<8x128xf32, #tpu.memory_space<vmem>>, vector<8x128xf32>
      tpu.vector_store %arg5[%c0_65, %c0_66], %289 {strides = array<i32>} : memref<8x128xf32, #tpu.memory_space<vmem>>, vector<8x128xf32>,
    } else {
    }
    %c0 = arith.constant 0 : index
    %c0_1 = arith.constant 0 : index
    %3 = vector.load %arg2[%c0, %c0_1] : memref<128x384xbf16, #tpu.memory_space<vmem>>, vector<128x384xbf16>
    %c0_2 = arith.constant 0 : index
    %c0_3 = arith.constant 0 : index
    %4 = vector.load %arg3[%c0_2, %c0_3] : memref<1x128xf32, #tpu.memory_space<vmem>>, vector<1x128xf32>
    %5 = vector.shape_cast %4 : vector<1x128xf32> to vector<1x128xf32>
    %6 = vector.broadcast %5 : vector<1x128xf32> to vector<8x128xf32>
    %c0_4 = arith.constant 0 : index
    %c0_5 = arith.constant 0 : index
    %7 = vector.load %arg5[%c0_4, %c0_5] : memref<8x128xf32, #tpu.memory_space<vmem>>, vector<8x128xf32>
    %c0_i32_6 = arith.constant 0 : i32
    %8 = arith.index_cast %c0_i32_6 : i32 to index
    %c0_7 = arith.constant 0 : index
    %c0_8 = arith.constant 0 : index
    %9 = vector.load %arg1[%8, %c0_7, %c0_8] : memref<8x8x384xbf16, #tpu.memory_space<vmem>>, vector<1x8x384xbf16>
    %10 = vector.shape_cast %9 : vector<1x8x384xbf16> to vector<8x384xbf16>
    %11 = arith.extf %10 : vector<8x384xbf16> to vector<8x384xf32>
    %12 = arith.truncf %7 : vector<8x128xf32> to vector<8x128xbf16>
    %cst = arith.constant dense<0.000000e+00> : vector<8x384xf32>
    %13 = tpu.matmul %12, %3, %cst {dimension_numbers = #tpu.dot_dimension_numbers<[1], [0], [0], [1], [0, 0, 1, 1], [], []>} : vector<8x128xbf16>, vector<128x384xbf16>, vector<8x384xf32> -> vector<8x384xf32>
    %14 = vector.extract_strided_slice %11 {offsets = [0, 0], sizes = [8, 128], strides = [1, 1]} : vector<8x384xf32> to vector<8x128xf32>
    %15 = vector.extract_strided_slice %13 {offsets = [0, 0], sizes = [8, 128], strides = [1, 1]} : vector<8x384xf32> to vector<8x128xf32>
    %16 = arith.addf %14, %15 : vector<8x128xf32>
    %17 = arith.negf %16 : vector<8x128xf32>
    %18 = math.exp %17 : vector<8x128xf32>
    %cst_9 = arith.constant 1.000000e+00 : f32
    %19 = vector.broadcast %cst_9 : f32 to vector<8x128xf32>
    %20 = arith.addf %19, %18 : vector<8x128xf32>
    %21 = arith.divf %19, %20 : vector<8x128xf32>
    %22 = vector.extract_strided_slice %11 {offsets = [0, 128], sizes = [8, 128], strides = [1, 1]} : vector<8x384xf32> to vector<8x128xf32>
    %23 = vector.extract_strided_slice %13 {offsets = [0, 128], sizes = [8, 128], strides = [1, 1]} : vector<8x384xf32> to vector<8x128xf32>
    %24 = arith.addf %22, %23 : vector<8x128xf32>
    %25 = arith.negf %24 : vector<8x128xf32>
    %26 = math.exp %25 : vector<8x128xf32>
    %cst_10 = arith.constant 1.000000e+00 : f32
    %27 = vector.broadcast %cst_10 : f32 to vector<8x128xf32>
    %28 = arith.addf %27, %26 : vector<8x128xf32>
    %29 = arith.divf %27, %28 : vector<8x128xf32>
    %30 = vector.extract_strided_slice %11 {offsets = [0, 256], sizes = [8, 128], strides = [1, 1]} : vector<8x384xf32> to vector<8x128xf32>
    %31 = vector.extract_strided_slice %13 {offsets = [0, 256], sizes = [8, 128], strides = [1, 1]} : vector<8x384xf32> to vector<8x128xf32>
    %32 = arith.addf %31, %6 : vector<8x128xf32>
    %33 = arith.mulf %21, %32 : vector<8x128xf32>
    %34 = arith.addf %30, %33 : vector<8x128xf32>
    %35 = math.tanh %34 : vector<8x128xf32>
    %36 = arith.subf %7, %35 : vector<8x128xf32>
    %37 = arith.mulf %29, %36 : vector<8x128xf32>
    %38 = arith.addf %35, %37 : vector<8x128xf32>
    %39 = arith.index_cast %c0_i32_6 : i32 to index
    %c0_11 = arith.constant 0 : index
    %c0_12 = arith.constant 0 : index
    %40 = vector.load %arg4[%39, %c0_11, %c0_12] : memref<8x8x128xf32, #tpu.memory_space<vmem>>, vector<1x8x128xf32>
    %41 = vector.shape_cast %40 : vector<1x8x128xf32> to vector<8x128xf32>
    %42 = vector.shape_cast %38 : vector<8x128xf32> to vector<1x8x128xf32>
    tpu.vector_store %arg4[%39, %c0_11, %c0_12], %42 {strides = array<i32>} : memref<8x8x128xf32, #tpu.memory_space<vmem>>, vector<1x8x128xf32>,
    %c1_i32 = arith.constant 1 : i32
    %43 = arith.index_cast %c1_i32 : i32 to index
    %c0_13 = arith.constant 0 : index
    %c0_14 = arith.constant 0 : index
    %44 = vector.load %arg1[%43, %c0_13, %c0_14] : memref<8x8x384xbf16, #tpu.memory_space<vmem>>, vector<1x8x384xbf16>
    %45 = vector.shape_cast %44 : vector<1x8x384xbf16> to vector<8x384xbf16>
    %46 = arith.extf %45 : vector<8x384xbf16> to vector<8x384xf32>
    %47 = arith.truncf %38 : vector<8x128xf32> to vector<8x128xbf16>
    %cst_15 = arith.constant dense<0.000000e+00> : vector<8x384xf32>
    %48 = tpu.matmul %47, %3, %cst_15 {dimension_numbers = #tpu.dot_dimension_numbers<[1], [0], [0], [1], [0, 0, 1, 1], [], []>} : vector<8x128xbf16>, vector<128x384xbf16>, vector<8x384xf32> -> vector<8x384xf32>
    %49 = vector.extract_strided_slice %46 {offsets = [0, 0], sizes = [8, 128], strides = [1, 1]} : vector<8x384xf32> to vector<8x128xf32>
    %50 = vector.extract_strided_slice %48 {offsets = [0, 0], sizes = [8, 128], strides = [1, 1]} : vector<8x384xf32> to vector<8x128xf32>
    %51 = arith.addf %49, %50 : vector<8x128xf32>
    %52 = arith.negf %51 : vector<8x128xf32>
    %53 = math.exp %52 : vector<8x128xf32>
    %cst_16 = arith.constant 1.000000e+00 : f32
    %54 = vector.broadcast %cst_16 : f32 to vector<8x128xf32>
    %55 = arith.addf %54, %53 : vector<8x128xf32>
    %56 = arith.divf %54, %55 : vector<8x128xf32>
    %57 = vector.extract_strided_slice %46 {offsets = [0, 128], sizes = [8, 128], strides = [1, 1]} : vector<8x384xf32> to vector<8x128xf32>
    %58 = vector.extract_strided_slice %48 {offsets = [0, 128], sizes = [8, 128], strides = [1, 1]} : vector<8x384xf32> to vector<8x128xf32>
    %59 = arith.addf %57, %58 : vector<8x128xf32>
    %60 = arith.negf %59 : vector<8x128xf32>
    %61 = math.exp %60 : vector<8x128xf32>
    %cst_17 = arith.constant 1.000000e+00 : f32
    %62 = vector.broadcast %cst_17 : f32 to vector<8x128xf32>
    %63 = arith.addf %62, %61 : vector<8x128xf32>
    %64 = arith.divf %62, %63 : vector<8x128xf32>
    %65 = vector.extract_strided_slice %46 {offsets = [0, 256], sizes = [8, 128], strides = [1, 1]} : vector<8x384xf32> to vector<8x128xf32>
    %66 = vector.extract_strided_slice %48 {offsets = [0, 256], sizes = [8, 128], strides = [1, 1]} : vector<8x384xf32> to vector<8x128xf32>
    %67 = arith.addf %66, %6 : vector<8x128xf32>
    %68 = arith.mulf %56, %67 : vector<8x128xf32>
    %69 = arith.addf %65, %68 : vector<8x128xf32>
    %70 = math.tanh %69 : vector<8x128xf32>
    %71 = arith.subf %38, %70 : vector<8x128xf32>
    %72 = arith.mulf %64, %71 : vector<8x128xf32>
    %73 = arith.addf %70, %72 : vector<8x128xf32>
    %74 = arith.index_cast %c1_i32 : i32 to index
    %c0_18 = arith.constant 0 : index
    %c0_19 = arith.constant 0 : index
    %75 = vector.load %arg4[%74, %c0_18, %c0_19] : memref<8x8x128xf32, #tpu.memory_space<vmem>>, vector<1x8x128xf32>
    %76 = vector.shape_cast %75 : vector<1x8x128xf32> to vector<8x128xf32>
    %77 = vector.shape_cast %73 : vector<8x128xf32> to vector<1x8x128xf32>
    tpu.vector_store %arg4[%74, %c0_18, %c0_19], %77 {strides = array<i32>} : memref<8x8x128xf32, #tpu.memory_space<vmem>>, vector<1x8x128xf32>,
    %c2_i32 = arith.constant 2 : i32
    %78 = arith.index_cast %c2_i32 : i32 to index
    %c0_20 = arith.constant 0 : index
    %c0_21 = arith.constant 0 : index
    %79 = vector.load %arg1[%78, %c0_20, %c0_21] : memref<8x8x384xbf16, #tpu.memory_space<vmem>>, vector<1x8x384xbf16>
    %80 = vector.shape_cast %79 : vector<1x8x384xbf16> to vector<8x384xbf16>
    %81 = arith.extf %80 : vector<8x384xbf16> to vector<8x384xf32>
    %82 = arith.truncf %73 : vector<8x128xf32> to vector<8x128xbf16>
    %cst_22 = arith.constant dense<0.000000e+00> : vector<8x384xf32>
    %83 = tpu.matmul %82, %3, %cst_22 {dimension_numbers = #tpu.dot_dimension_numbers<[1], [0], [0], [1], [0, 0, 1, 1], [], []>} : vector<8x128xbf16>, vector<128x384xbf16>, vector<8x384xf32> -> vector<8x384xf32>
    %84 = vector.extract_strided_slice %81 {offsets = [0, 0], sizes = [8, 128], strides = [1, 1]} : vector<8x384xf32> to vector<8x128xf32>
    %85 = vector.extract_strided_slice %83 {offsets = [0, 0], sizes = [8, 128], strides = [1, 1]} : vector<8x384xf32> to vector<8x128xf32>
    %86 = arith.addf %84, %85 : vector<8x128xf32>
    %87 = arith.negf %86 : vector<8x128xf32>
    %88 = math.exp %87 : vector<8x128xf32>
    %cst_23 = arith.constant 1.000000e+00 : f32
    %89 = vector.broadcast %cst_23 : f32 to vector<8x128xf32>
    %90 = arith.addf %89, %88 : vector<8x128xf32>
    %91 = arith.divf %89, %90 : vector<8x128xf32>
    %92 = vector.extract_strided_slice %81 {offsets = [0, 128], sizes = [8, 128], strides = [1, 1]} : vector<8x384xf32> to vector<8x128xf32>
    %93 = vector.extract_strided_slice %83 {offsets = [0, 128], sizes = [8, 128], strides = [1, 1]} : vector<8x384xf32> to vector<8x128xf32>
    %94 = arith.addf %92, %93 : vector<8x128xf32>
    %95 = arith.negf %94 : vector<8x128xf32>
    %96 = math.exp %95 : vector<8x128xf32>
    %cst_24 = arith.constant 1.000000e+00 : f32
    %97 = vector.broadcast %cst_24 : f32 to vector<8x128xf32>
    %98 = arith.addf %97, %96 : vector<8x128xf32>
    %99 = arith.divf %97, %98 : vector<8x128xf32>
    %100 = vector.extract_strided_slice %81 {offsets = [0, 256], sizes = [8, 128], strides = [1, 1]} : vector<8x384xf32> to vector<8x128xf32>
    %101 = vector.extract_strided_slice %83 {offsets = [0, 256], sizes = [8, 128], strides = [1, 1]} : vector<8x384xf32> to vector<8x128xf32>
    %102 = arith.addf %101, %6 : vector<8x128xf32>
    %103 = arith.mulf %91, %102 : vector<8x128xf32>
    %104 = arith.addf %100, %103 : vector<8x128xf32>
    %105 = math.tanh %104 : vector<8x128xf32>
    %106 = arith.subf %73, %105 : vector<8x128xf32>
    %107 = arith.mulf %99, %106 : vector<8x128xf32>
    %108 = arith.addf %105, %107 : vector<8x128xf32>
    %109 = arith.index_cast %c2_i32 : i32 to index
    %c0_25 = arith.constant 0 : index
    %c0_26 = arith.constant 0 : index
    %110 = vector.load %arg4[%109, %c0_25, %c0_26] : memref<8x8x128xf32, #tpu.memory_space<vmem>>, vector<1x8x128xf32>
    %111 = vector.shape_cast %110 : vector<1x8x128xf32> to vector<8x128xf32>
    %112 = vector.shape_cast %108 : vector<8x128xf32> to vector<1x8x128xf32>
    tpu.vector_store %arg4[%109, %c0_25, %c0_26], %112 {strides = array<i32>} : memref<8x8x128xf32, #tpu.memory_space<vmem>>, vector<1x8x128xf32>,
    %c3_i32 = arith.constant 3 : i32
    %113 = arith.index_cast %c3_i32 : i32 to index
    %c0_27 = arith.constant 0 : index
    %c0_28 = arith.constant 0 : index
    %114 = vector.load %arg1[%113, %c0_27, %c0_28] : memref<8x8x384xbf16, #tpu.memory_space<vmem>>, vector<1x8x384xbf16>
    %115 = vector.shape_cast %114 : vector<1x8x384xbf16> to vector<8x384xbf16>
    %116 = arith.extf %115 : vector<8x384xbf16> to vector<8x384xf32>
    %117 = arith.truncf %108 : vector<8x128xf32> to vector<8x128xbf16>
    %cst_29 = arith.constant dense<0.000000e+00> : vector<8x384xf32>
    %118 = tpu.matmul %117, %3, %cst_29 {dimension_numbers = #tpu.dot_dimension_numbers<[1], [0], [0], [1], [0, 0, 1, 1], [], []>} : vector<8x128xbf16>, vector<128x384xbf16>, vector<8x384xf32> -> vector<8x384xf32>
    %119 = vector.extract_strided_slice %116 {offsets = [0, 0], sizes = [8, 128], strides = [1, 1]} : vector<8x384xf32> to vector<8x128xf32>
    %120 = vector.extract_strided_slice %118 {offsets = [0, 0], sizes = [8, 128], strides = [1, 1]} : vector<8x384xf32> to vector<8x128xf32>
    %121 = arith.addf %119, %120 : vector<8x128xf32>
    %122 = arith.negf %121 : vector<8x128xf32>
    %123 = math.exp %122 : vector<8x128xf32>
    %cst_30 = arith.constant 1.000000e+00 : f32
    %124 = vector.broadcast %cst_30 : f32 to vector<8x128xf32>
    %125 = arith.addf %124, %123 : vector<8x128xf32>
    %126 = arith.divf %124, %125 : vector<8x128xf32>
    %127 = vector.extract_strided_slice %116 {offsets = [0, 128], sizes = [8, 128], strides = [1, 1]} : vector<8x384xf32> to vector<8x128xf32>
    %128 = vector.extract_strided_slice %118 {offsets = [0, 128], sizes = [8, 128], strides = [1, 1]} : vector<8x384xf32> to vector<8x128xf32>
    %129 = arith.addf %127, %128 : vector<8x128xf32>
    %130 = arith.negf %129 : vector<8x128xf32>
    %131 = math.exp %130 : vector<8x128xf32>
    %cst_31 = arith.constant 1.000000e+00 : f32
    %132 = vector.broadcast %cst_31 : f32 to vector<8x128xf32>
    %133 = arith.addf %132, %131 : vector<8x128xf32>
    %134 = arith.divf %132, %133 : vector<8x128xf32>
    %135 = vector.extract_strided_slice %116 {offsets = [0, 256], sizes = [8, 128], strides = [1, 1]} : vector<8x384xf32> to vector<8x128xf32>
    %136 = vector.extract_strided_slice %118 {offsets = [0, 256], sizes = [8, 128], strides = [1, 1]} : vector<8x384xf32> to vector<8x128xf32>
    %137 = arith.addf %136, %6 : vector<8x128xf32>
    %138 = arith.mulf %126, %137 : vector<8x128xf32>
    %139 = arith.addf %135, %138 : vector<8x128xf32>
    %140 = math.tanh %139 : vector<8x128xf32>
    %141 = arith.subf %108, %140 : vector<8x128xf32>
    %142 = arith.mulf %134, %141 : vector<8x128xf32>
    %143 = arith.addf %140, %142 : vector<8x128xf32>
    %144 = arith.index_cast %c3_i32 : i32 to index
    %c0_32 = arith.constant 0 : index
    %c0_33 = arith.constant 0 : index
    %145 = vector.load %arg4[%144, %c0_32, %c0_33] : memref<8x8x128xf32, #tpu.memory_space<vmem>>, vector<1x8x128xf32>
    %146 = vector.shape_cast %145 : vector<1x8x128xf32> to vector<8x128xf32>
    %147 = vector.shape_cast %143 : vector<8x128xf32> to vector<1x8x128xf32>
    tpu.vector_store %arg4[%144, %c0_32, %c0_33], %147 {strides = array<i32>} : memref<8x8x128xf32, #tpu.memory_space<vmem>>, vector<1x8x128xf32>,
    %c4_i32 = arith.constant 4 : i32
    %148 = arith.index_cast %c4_i32 : i32 to index
    %c0_34 = arith.constant 0 : index
    %c0_35 = arith.constant 0 : index
    %149 = vector.load %arg1[%148, %c0_34, %c0_35] : memref<8x8x384xbf16, #tpu.memory_space<vmem>>, vector<1x8x384xbf16>
    %150 = vector.shape_cast %149 : vector<1x8x384xbf16> to vector<8x384xbf16>
    %151 = arith.extf %150 : vector<8x384xbf16> to vector<8x384xf32>
    %152 = arith.truncf %143 : vector<8x128xf32> to vector<8x128xbf16>
    %cst_36 = arith.constant dense<0.000000e+00> : vector<8x384xf32>
    %153 = tpu.matmul %152, %3, %cst_36 {dimension_numbers = #tpu.dot_dimension_numbers<[1], [0], [0], [1], [0, 0, 1, 1], [], []>} : vector<8x128xbf16>, vector<128x384xbf16>, vector<8x384xf32> -> vector<8x384xf32>
    %154 = vector.extract_strided_slice %151 {offsets = [0, 0], sizes = [8, 128], strides = [1, 1]} : vector<8x384xf32> to vector<8x128xf32>
    %155 = vector.extract_strided_slice %153 {offsets = [0, 0], sizes = [8, 128], strides = [1, 1]} : vector<8x384xf32> to vector<8x128xf32>
    %156 = arith.addf %154, %155 : vector<8x128xf32>
    %157 = arith.negf %156 : vector<8x128xf32>
    %158 = math.exp %157 : vector<8x128xf32>
    %cst_37 = arith.constant 1.000000e+00 : f32
    %159 = vector.broadcast %cst_37 : f32 to vector<8x128xf32>
    %160 = arith.addf %159, %158 : vector<8x128xf32>
    %161 = arith.divf %159, %160 : vector<8x128xf32>
    %162 = vector.extract_strided_slice %151 {offsets = [0, 128], sizes = [8, 128], strides = [1, 1]} : vector<8x384xf32> to vector<8x128xf32>
    %163 = vector.extract_strided_slice %153 {offsets = [0, 128], sizes = [8, 128], strides = [1, 1]} : vector<8x384xf32> to vector<8x128xf32>
    %164 = arith.addf %162, %163 : vector<8x128xf32>
    %165 = arith.negf %164 : vector<8x128xf32>
    %166 = math.exp %165 : vector<8x128xf32>
    %cst_38 = arith.constant 1.000000e+00 : f32
    %167 = vector.broadcast %cst_38 : f32 to vector<8x128xf32>
    %168 = arith.addf %167, %166 : vector<8x128xf32>
    %169 = arith.divf %167, %168 : vector<8x128xf32>
    %170 = vector.extract_strided_slice %151 {offsets = [0, 256], sizes = [8, 128], strides = [1, 1]} : vector<8x384xf32> to vector<8x128xf32>
    %171 = vector.extract_strided_slice %153 {offsets = [0, 256], sizes = [8, 128], strides = [1, 1]} : vector<8x384xf32> to vector<8x128xf32>
    %172 = arith.addf %171, %6 : vector<8x128xf32>
    %173 = arith.mulf %161, %172 : vector<8x128xf32>
    %174 = arith.addf %170, %173 : vector<8x128xf32>
    %175 = math.tanh %174 : vector<8x128xf32>
    %176 = arith.subf %143, %175 : vector<8x128xf32>
    %177 = arith.mulf %169, %176 : vector<8x128xf32>
    %178 = arith.addf %175, %177 : vector<8x128xf32>
    %179 = arith.index_cast %c4_i32 : i32 to index
    %c0_39 = arith.constant 0 : index
    %c0_40 = arith.constant 0 : index
    %180 = vector.load %arg4[%179, %c0_39, %c0_40] : memref<8x8x128xf32, #tpu.memory_space<vmem>>, vector<1x8x128xf32>
    %181 = vector.shape_cast %180 : vector<1x8x128xf32> to vector<8x128xf32>
    %182 = vector.shape_cast %178 : vector<8x128xf32> to vector<1x8x128xf32>
    tpu.vector_store %arg4[%179, %c0_39, %c0_40], %182 {strides = array<i32>} : memref<8x8x128xf32, #tpu.memory_space<vmem>>, vector<1x8x128xf32>,
    %c5_i32 = arith.constant 5 : i32
    %183 = arith.index_cast %c5_i32 : i32 to index
    %c0_41 = arith.constant 0 : index
    %c0_42 = arith.constant 0 : index
    %184 = vector.load %arg1[%183, %c0_41, %c0_42] : memref<8x8x384xbf16, #tpu.memory_space<vmem>>, vector<1x8x384xbf16>
    %185 = vector.shape_cast %184 : vector<1x8x384xbf16> to vector<8x384xbf16>
    %186 = arith.extf %185 : vector<8x384xbf16> to vector<8x384xf32>
    %187 = arith.truncf %178 : vector<8x128xf32> to vector<8x128xbf16>
    %cst_43 = arith.constant dense<0.000000e+00> : vector<8x384xf32>
    %188 = tpu.matmul %187, %3, %cst_43 {dimension_numbers = #tpu.dot_dimension_numbers<[1], [0], [0], [1], [0, 0, 1, 1], [], []>} : vector<8x128xbf16>, vector<128x384xbf16>, vector<8x384xf32> -> vector<8x384xf32>
    %189 = vector.extract_strided_slice %186 {offsets = [0, 0], sizes = [8, 128], strides = [1, 1]} : vector<8x384xf32> to vector<8x128xf32>
    %190 = vector.extract_strided_slice %188 {offsets = [0, 0], sizes = [8, 128], strides = [1, 1]} : vector<8x384xf32> to vector<8x128xf32>
    %191 = arith.addf %189, %190 : vector<8x128xf32>
    %192 = arith.negf %191 : vector<8x128xf32>
    %193 = math.exp %192 : vector<8x128xf32>
    %cst_44 = arith.constant 1.000000e+00 : f32
    %194 = vector.broadcast %cst_44 : f32 to vector<8x128xf32>
    %195 = arith.addf %194, %193 : vector<8x128xf32>
    %196 = arith.divf %194, %195 : vector<8x128xf32>
    %197 = vector.extract_strided_slice %186 {offsets = [0, 128], sizes = [8, 128], strides = [1, 1]} : vector<8x384xf32> to vector<8x128xf32>
    %198 = vector.extract_strided_slice %188 {offsets = [0, 128], sizes = [8, 128], strides = [1, 1]} : vector<8x384xf32> to vector<8x128xf32>
    %199 = arith.addf %197, %198 : vector<8x128xf32>
    %200 = arith.negf %199 : vector<8x128xf32>
    %201 = math.exp %200 : vector<8x128xf32>
    %cst_45 = arith.constant 1.000000e+00 : f32
    %202 = vector.broadcast %cst_45 : f32 to vector<8x128xf32>
    %203 = arith.addf %202, %201 : vector<8x128xf32>
    %204 = arith.divf %202, %203 : vector<8x128xf32>
    %205 = vector.extract_strided_slice %186 {offsets = [0, 256], sizes = [8, 128], strides = [1, 1]} : vector<8x384xf32> to vector<8x128xf32>
    %206 = vector.extract_strided_slice %188 {offsets = [0, 256], sizes = [8, 128], strides = [1, 1]} : vector<8x384xf32> to vector<8x128xf32>
    %207 = arith.addf %206, %6 : vector<8x128xf32>
    %208 = arith.mulf %196, %207 : vector<8x128xf32>
    %209 = arith.addf %205, %208 : vector<8x128xf32>
    %210 = math.tanh %209 : vector<8x128xf32>
    %211 = arith.subf %178, %210 : vector<8x128xf32>
    %212 = arith.mulf %204, %211 : vector<8x128xf32>
    %213 = arith.addf %210, %212 : vector<8x128xf32>
    %214 = arith.index_cast %c5_i32 : i32 to index
    %c0_46 = arith.constant 0 : index
    %c0_47 = arith.constant 0 : index
    %215 = vector.load %arg4[%214, %c0_46, %c0_47] : memref<8x8x128xf32, #tpu.memory_space<vmem>>, vector<1x8x128xf32>
    %216 = vector.shape_cast %215 : vector<1x8x128xf32> to vector<8x128xf32>
    %217 = vector.shape_cast %213 : vector<8x128xf32> to vector<1x8x128xf32>
    tpu.vector_store %arg4[%214, %c0_46, %c0_47], %217 {strides = array<i32>} : memref<8x8x128xf32, #tpu.memory_space<vmem>>, vector<1x8x128xf32>,
    %c6_i32 = arith.constant 6 : i32
    %218 = arith.index_cast %c6_i32 : i32 to index
    %c0_48 = arith.constant 0 : index
    %c0_49 = arith.constant 0 : index
    %219 = vector.load %arg1[%218, %c0_48, %c0_49] : memref<8x8x384xbf16, #tpu.memory_space<vmem>>, vector<1x8x384xbf16>
    %220 = vector.shape_cast %219 : vector<1x8x384xbf16> to vector<8x384xbf16>
    %221 = arith.extf %220 : vector<8x384xbf16> to vector<8x384xf32>
    %222 = arith.truncf %213 : vector<8x128xf32> to vector<8x128xbf16>
    %cst_50 = arith.constant dense<0.000000e+00> : vector<8x384xf32>
    %223 = tpu.matmul %222, %3, %cst_50 {dimension_numbers = #tpu.dot_dimension_numbers<[1], [0], [0], [1], [0, 0, 1, 1], [], []>} : vector<8x128xbf16>, vector<128x384xbf16>, vector<8x384xf32> -> vector<8x384xf32>
    %224 = vector.extract_strided_slice %221 {offsets = [0, 0], sizes = [8, 128], strides = [1, 1]} : vector<8x384xf32> to vector<8x128xf32>
    %225 = vector.extract_strided_slice %223 {offsets = [0, 0], sizes = [8, 128], strides = [1, 1]} : vector<8x384xf32> to vector<8x128xf32>
    %226 = arith.addf %224, %225 : vector<8x128xf32>
    %227 = arith.negf %226 : vector<8x128xf32>
    %228 = math.exp %227 : vector<8x128xf32>
    %cst_51 = arith.constant 1.000000e+00 : f32
    %229 = vector.broadcast %cst_51 : f32 to vector<8x128xf32>
    %230 = arith.addf %229, %228 : vector<8x128xf32>
    %231 = arith.divf %229, %230 : vector<8x128xf32>
    %232 = vector.extract_strided_slice %221 {offsets = [0, 128], sizes = [8, 128], strides = [1, 1]} : vector<8x384xf32> to vector<8x128xf32>
    %233 = vector.extract_strided_slice %223 {offsets = [0, 128], sizes = [8, 128], strides = [1, 1]} : vector<8x384xf32> to vector<8x128xf32>
    %234 = arith.addf %232, %233 : vector<8x128xf32>
    %235 = arith.negf %234 : vector<8x128xf32>
    %236 = math.exp %235 : vector<8x128xf32>
    %cst_52 = arith.constant 1.000000e+00 : f32
    %237 = vector.broadcast %cst_52 : f32 to vector<8x128xf32>
    %238 = arith.addf %237, %236 : vector<8x128xf32>
    %239 = arith.divf %237, %238 : vector<8x128xf32>
    %240 = vector.extract_strided_slice %221 {offsets = [0, 256], sizes = [8, 128], strides = [1, 1]} : vector<8x384xf32> to vector<8x128xf32>
    %241 = vector.extract_strided_slice %223 {offsets = [0, 256], sizes = [8, 128], strides = [1, 1]} : vector<8x384xf32> to vector<8x128xf32>
    %242 = arith.addf %241, %6 : vector<8x128xf32>
    %243 = arith.mulf %231, %242 : vector<8x128xf32>
    %244 = arith.addf %240, %243 : vector<8x128xf32>
    %245 = math.tanh %244 : vector<8x128xf32>
    %246 = arith.subf %213, %245 : vector<8x128xf32>
    %247 = arith.mulf %239, %246 : vector<8x128xf32>
    %248 = arith.addf %245, %247 : vector<8x128xf32>
    %249 = arith.index_cast %c6_i32 : i32 to index
    %c0_53 = arith.constant 0 : index
    %c0_54 = arith.constant 0 : index
    %250 = vector.load %arg4[%249, %c0_53, %c0_54] : memref<8x8x128xf32, #tpu.memory_space<vmem>>, vector<1x8x128xf32>
    %251 = vector.shape_cast %250 : vector<1x8x128xf32> to vector<8x128xf32>
    %252 = vector.shape_cast %248 : vector<8x128xf32> to vector<1x8x128xf32>
    tpu.vector_store %arg4[%249, %c0_53, %c0_54], %252 {strides = array<i32>} : memref<8x8x128xf32, #tpu.memory_space<vmem>>, vector<1x8x128xf32>,
    %c7_i32 = arith.constant 7 : i32
    %253 = arith.index_cast %c7_i32 : i32 to index
    %c0_55 = arith.constant 0 : index
    %c0_56 = arith.constant 0 : index
    %254 = vector.load %arg1[%253, %c0_55, %c0_56] : memref<8x8x384xbf16, #tpu.memory_space<vmem>>, vector<1x8x384xbf16>
    %255 = vector.shape_cast %254 : vector<1x8x384xbf16> to vector<8x384xbf16>
    %256 = arith.extf %255 : vector<8x384xbf16> to vector<8x384xf32>
    %257 = arith.truncf %248 : vector<8x128xf32> to vector<8x128xbf16>
    %cst_57 = arith.constant dense<0.000000e+00> : vector<8x384xf32>
    %258 = tpu.matmul %257, %3, %cst_57 {dimension_numbers = #tpu.dot_dimension_numbers<[1], [0], [0], [1], [0, 0, 1, 1], [], []>} : vector<8x128xbf16>, vector<128x384xbf16>, vector<8x384xf32> -> vector<8x384xf32>
    %259 = vector.extract_strided_slice %256 {offsets = [0, 0], sizes = [8, 128], strides = [1, 1]} : vector<8x384xf32> to vector<8x128xf32>
    %260 = vector.extract_strided_slice %258 {offsets = [0, 0], sizes = [8, 128], strides = [1, 1]} : vector<8x384xf32> to vector<8x128xf32>
    %261 = arith.addf %259, %260 : vector<8x128xf32>
    %262 = arith.negf %261 : vector<8x128xf32>
    %263 = math.exp %262 : vector<8x128xf32>
    %cst_58 = arith.constant 1.000000e+00 : f32
    %264 = vector.broadcast %cst_58 : f32 to vector<8x128xf32>
    %265 = arith.addf %264, %263 : vector<8x128xf32>
    %266 = arith.divf %264, %265 : vector<8x128xf32>
    %267 = vector.extract_strided_slice %256 {offsets = [0, 128], sizes = [8, 128], strides = [1, 1]} : vector<8x384xf32> to vector<8x128xf32>
    %268 = vector.extract_strided_slice %258 {offsets = [0, 128], sizes = [8, 128], strides = [1, 1]} : vector<8x384xf32> to vector<8x128xf32>
    %269 = arith.addf %267, %268 : vector<8x128xf32>
    %270 = arith.negf %269 : vector<8x128xf32>
    %271 = math.exp %270 : vector<8x128xf32>
    %cst_59 = arith.constant 1.000000e+00 : f32
    %272 = vector.broadcast %cst_59 : f32 to vector<8x128xf32>
    %273 = arith.addf %272, %271 : vector<8x128xf32>
    %274 = arith.divf %272, %273 : vector<8x128xf32>
    %275 = vector.extract_strided_slice %256 {offsets = [0, 256], sizes = [8, 128], strides = [1, 1]} : vector<8x384xf32> to vector<8x128xf32>
    %276 = vector.extract_strided_slice %258 {offsets = [0, 256], sizes = [8, 128], strides = [1, 1]} : vector<8x384xf32> to vector<8x128xf32>
    %277 = arith.addf %276, %6 : vector<8x128xf32>
    %278 = arith.mulf %266, %277 : vector<8x128xf32>
    %279 = arith.addf %275, %278 : vector<8x128xf32>
    %280 = math.tanh %279 : vector<8x128xf32>
    %281 = arith.subf %248, %280 : vector<8x128xf32>
    %282 = arith.mulf %274, %281 : vector<8x128xf32>
    %283 = arith.addf %280, %282 : vector<8x128xf32>
    %284 = arith.index_cast %c7_i32 : i32 to index
    %c0_60 = arith.constant 0 : index
    %c0_61 = arith.constant 0 : index
    %285 = vector.load %arg4[%284, %c0_60, %c0_61] : memref<8x8x128xf32, #tpu.memory_space<vmem>>, vector<1x8x128xf32>
    %286 = vector.shape_cast %285 : vector<1x8x128xf32> to vector<8x128xf32>
    %287 = vector.shape_cast %283 : vector<8x128xf32> to vector<1x8x128xf32>
    tpu.vector_store %arg4[%284, %c0_60, %c0_61], %287 {strides = array<i32>} : memref<8x8x128xf32, #tpu.memory_space<vmem>>, vector<1x8x128xf32>,
    %c8_i32 = arith.constant 8 : i32
    %c0_62 = arith.constant 0 : index
    %c0_63 = arith.constant 0 : index
    %288 = vector.load %arg5[%c0_62, %c0_63] : memref<8x128xf32, #tpu.memory_space<vmem>>, vector<8x128xf32>
    tpu.vector_store %arg5[%c0_62, %c0_63], %283 {strides = array<i32>} : memref<8x128xf32, #tpu.memory_space<vmem>>, vector<8x128xf32>,
    return
  }
  func.func @transform_0(%arg0: i32) -> (i32, i32, i32) {
    %c0_i32 = arith.constant 0 : i32
    %c0_i32_0 = arith.constant 0 : i32
    %c0_i32_1 = arith.constant 0 : i32
    return %arg0, %c0_i32, %c0_i32_0 : i32, i32, i32
  }
  func.func @transform_1(%arg0: i32) -> (i32, i32) {
    %c0_i32 = arith.constant 0 : i32
    %c0_i32_0 = arith.constant 0 : i32
    %c0_i32_1 = arith.constant 0 : i32
    return %c0_i32, %c0_i32_0 : i32, i32
  }
  func.func @transform_2(%arg0: i32) -> (i32, i32) {
    %c0_i32 = arith.constant 0 : i32
    %c0_i32_0 = arith.constant 0 : i32
    %c0_i32_1 = arith.constant 0 : i32
    return %c0_i32, %c0_i32_0 : i32, i32
  }
  func.func @transform_3(%arg0: i32) -> (i32, i32, i32) {
    %c0_i32 = arith.constant 0 : i32
    %c0_i32_0 = arith.constant 0 : i32
    %c0_i32_1 = arith.constant 0 : i32
    return %arg0, %c0_i32, %c0_i32_0 : i32, i32, i32
  }
}

module attributes {stable_mosaic.version = 11 : i64} {
  func.func @gru_chunk_kernel(%arg0: i32, %arg1: memref<8x8x384xbf16, #tpu.memory_space<vmem>>, %arg2: memref<128x384xbf16, #tpu.memory_space<vmem>>, %arg3: memref<1x128xf32, #tpu.memory_space<vmem>>, %arg4: memref<8x8x128xf32, #tpu.memory_space<vmem>>, %arg5: memref<8x128xf32, #tpu.memory_space<vmem>>) attributes {dimension_semantics = [#tpu.dimension_semantics<arbitrary>], iteration_bounds = array<i64: 1>, scalar_prefetch = 0 : i64, scratch_operands = 1 : i64, tpu.core_type = #tpu.core_type<tc>, window_params = [{transform_indices = @transform_0, window_bounds = array<i64: 8, 8, 384>}, {pipeline_mode = #tpu.pipeline_mode<synchronous>, transform_indices = @transform_1, window_bounds = array<i64: 128, 384>}, {pipeline_mode = #tpu.pipeline_mode<synchronous>, transform_indices = @transform_2, window_bounds = array<i64: 1, 128>}, {transform_indices = @transform_3, window_bounds = array<i64: 8, 8, 128>}]} {
    %c0_i32 = arith.constant 0 : i32
    %0 = arith.cmpi eq, %arg0, %c0_i32 : i32
    %1 = arith.extui %0 : i1 to i32
    %c0_i32_0 = arith.constant 0 : i32
    %2 = arith.cmpi ne, %1, %c0_i32_0 : i32
    scf.if %2 {
      %cst_64 = arith.constant 0.000000e+00 : f32
      %289 = vector.broadcast %cst_64 : f32 to vector<8x128xf32>
      %c0_65 = arith.constant 0 : index
      %c0_66 = arith.constant 0 : index
      %290 = vector.load %arg5[%c0_65, %c0_66] : memref<8x128xf32, #tpu.memory_space<vmem>>, vector<8x128xf32>
      tpu.vector_store %arg5[%c0_65, %c0_66], %289 {strides = array<i32>} : memref<8x128xf32, #tpu.memory_space<vmem>>, vector<8x128xf32>,
    } else {
    }
    %c0 = arith.constant 0 : index
    %c0_1 = arith.constant 0 : index
    %3 = vector.load %arg2[%c0, %c0_1] : memref<128x384xbf16, #tpu.memory_space<vmem>>, vector<128x384xbf16>
    %c0_2 = arith.constant 0 : index
    %c0_3 = arith.constant 0 : index
    %4 = vector.load %arg3[%c0_2, %c0_3] : memref<1x128xf32, #tpu.memory_space<vmem>>, vector<1x128xf32>
    %5 = vector.shape_cast %4 : vector<1x128xf32> to vector<1x128xf32>
    %6 = vector.broadcast %5 : vector<1x128xf32> to vector<8x128xf32>
    %c0_4 = arith.constant 0 : index
    %c0_5 = arith.constant 0 : index
    %7 = vector.load %arg5[%c0_4, %c0_5] : memref<8x128xf32, #tpu.memory_space<vmem>>, vector<8x128xf32>
    %c0_i32_6 = arith.constant 0 : i32
    %8 = arith.index_cast %c0_i32_6 : i32 to index
    %c0_7 = arith.constant 0 : index
    %c0_8 = arith.constant 0 : index
    %9 = vector.load %arg1[%8, %c0_7, %c0_8] : memref<8x8x384xbf16, #tpu.memory_space<vmem>>, vector<1x8x384xbf16>
    %10 = vector.shape_cast %9 : vector<1x8x384xbf16> to vector<8x384xbf16>
    %11 = arith.extf %10 : vector<8x384xbf16> to vector<8x384xf32>
    %12 = arith.truncf %7 : vector<8x128xf32> to vector<8x128xbf16>
    %cst = arith.constant dense<0.000000e+00> : vector<8x384xf32>
    %13 = tpu.matmul %12, %3, %cst {dimension_numbers = #tpu.dot_dimension_numbers<[1], [0], [0], [1], [0, 0, 1, 1], [], []>} : vector<8x128xbf16>, vector<128x384xbf16>, vector<8x384xf32> -> vector<8x384xf32>
    %14 = vector.extract_strided_slice %11 {offsets = [0, 0], sizes = [8, 128], strides = [1, 1]} : vector<8x384xf32> to vector<8x128xf32>
    %15 = vector.extract_strided_slice %13 {offsets = [0, 0], sizes = [8, 128], strides = [1, 1]} : vector<8x384xf32> to vector<8x128xf32>
    %16 = arith.addf %14, %15 : vector<8x128xf32>
    %17 = arith.negf %16 : vector<8x128xf32>
    %18 = math.exp %17 : vector<8x128xf32>
    %cst_9 = arith.constant 1.000000e+00 : f32
    %19 = vector.broadcast %cst_9 : f32 to vector<8x128xf32>
    %20 = arith.addf %19, %18 : vector<8x128xf32>
    %21 = arith.divf %19, %20 : vector<8x128xf32>
    %22 = vector.extract_strided_slice %11 {offsets = [0, 128], sizes = [8, 128], strides = [1, 1]} : vector<8x384xf32> to vector<8x128xf32>
    %23 = vector.extract_strided_slice %13 {offsets = [0, 128], sizes = [8, 128], strides = [1, 1]} : vector<8x384xf32> to vector<8x128xf32>
    %24 = arith.addf %22, %23 : vector<8x128xf32>
    %25 = arith.negf %24 : vector<8x128xf32>
    %26 = math.exp %25 : vector<8x128xf32>
    %cst_10 = arith.constant 1.000000e+00 : f32
    %27 = vector.broadcast %cst_10 : f32 to vector<8x128xf32>
    %28 = arith.addf %27, %26 : vector<8x128xf32>
    %29 = arith.divf %27, %28 : vector<8x128xf32>
    %30 = vector.extract_strided_slice %11 {offsets = [0, 256], sizes = [8, 128], strides = [1, 1]} : vector<8x384xf32> to vector<8x128xf32>
    %31 = vector.extract_strided_slice %13 {offsets = [0, 256], sizes = [8, 128], strides = [1, 1]} : vector<8x384xf32> to vector<8x128xf32>
    %32 = arith.addf %31, %6 : vector<8x128xf32>
    %33 = arith.mulf %21, %32 : vector<8x128xf32>
    %34 = arith.addf %30, %33 : vector<8x128xf32>
    %35 = math.tanh %34 : vector<8x128xf32>
    %36 = arith.subf %7, %35 : vector<8x128xf32>
    %37 = arith.mulf %29, %36 : vector<8x128xf32>
    %38 = arith.addf %35, %37 : vector<8x128xf32>
    %39 = arith.index_cast %c0_i32_6 : i32 to index
    %c0_11 = arith.constant 0 : index
    %c0_12 = arith.constant 0 : index
    %40 = vector.load %arg4[%39, %c0_11, %c0_12] : memref<8x8x128xf32, #tpu.memory_space<vmem>>, vector<1x8x128xf32>
    %41 = vector.shape_cast %40 : vector<1x8x128xf32> to vector<8x128xf32>
    %42 = vector.shape_cast %38 : vector<8x128xf32> to vector<1x8x128xf32>
    tpu.vector_store %arg4[%39, %c0_11, %c0_12], %42 {strides = array<i32>} : memref<8x8x128xf32, #tpu.memory_space<vmem>>, vector<1x8x128xf32>,
    %c1_i32 = arith.constant 1 : i32
    %43 = arith.index_cast %c1_i32 : i32 to index
    %c0_13 = arith.constant 0 : index
    %c0_14 = arith.constant 0 : index
    %44 = vector.load %arg1[%43, %c0_13, %c0_14] : memref<8x8x384xbf16, #tpu.memory_space<vmem>>, vector<1x8x384xbf16>
    %45 = vector.shape_cast %44 : vector<1x8x384xbf16> to vector<8x384xbf16>
    %46 = arith.extf %45 : vector<8x384xbf16> to vector<8x384xf32>
    %47 = arith.truncf %38 : vector<8x128xf32> to vector<8x128xbf16>
    %cst_15 = arith.constant dense<0.000000e+00> : vector<8x384xf32>
    %48 = tpu.matmul %47, %3, %cst_15 {dimension_numbers = #tpu.dot_dimension_numbers<[1], [0], [0], [1], [0, 0, 1, 1], [], []>} : vector<8x128xbf16>, vector<128x384xbf16>, vector<8x384xf32> -> vector<8x384xf32>
    %49 = vector.extract_strided_slice %46 {offsets = [0, 0], sizes = [8, 128], strides = [1, 1]} : vector<8x384xf32> to vector<8x128xf32>
    %50 = vector.extract_strided_slice %48 {offsets = [0, 0], sizes = [8, 128], strides = [1, 1]} : vector<8x384xf32> to vector<8x128xf32>
    %51 = arith.addf %49, %50 : vector<8x128xf32>
    %52 = arith.negf %51 : vector<8x128xf32>
    %53 = math.exp %52 : vector<8x128xf32>
    %cst_16 = arith.constant 1.000000e+00 : f32
    %54 = vector.broadcast %cst_16 : f32 to vector<8x128xf32>
    %55 = arith.addf %54, %53 : vector<8x128xf32>
    %56 = arith.divf %54, %55 : vector<8x128xf32>
    %57 = vector.extract_strided_slice %46 {offsets = [0, 128], sizes = [8, 128], strides = [1, 1]} : vector<8x384xf32> to vector<8x128xf32>
    %58 = vector.extract_strided_slice %48 {offsets = [0, 128], sizes = [8, 128], strides = [1, 1]} : vector<8x384xf32> to vector<8x128xf32>
    %59 = arith.addf %57, %58 : vector<8x128xf32>
    %60 = arith.negf %59 : vector<8x128xf32>
    %61 = math.exp %60 : vector<8x128xf32>
    %cst_17 = arith.constant 1.000000e+00 : f32
    %62 = vector.broadcast %cst_17 : f32 to vector<8x128xf32>
    %63 = arith.addf %62, %61 : vector<8x128xf32>
    %64 = arith.divf %62, %63 : vector<8x128xf32>
    %65 = vector.extract_strided_slice %46 {offsets = [0, 256], sizes = [8, 128], strides = [1, 1]} : vector<8x384xf32> to vector<8x128xf32>
    %66 = vector.extract_strided_slice %48 {offsets = [0, 256], sizes = [8, 128], strides = [1, 1]} : vector<8x384xf32> to vector<8x128xf32>
    %67 = arith.addf %66, %6 : vector<8x128xf32>
    %68 = arith.mulf %56, %67 : vector<8x128xf32>
    %69 = arith.addf %65, %68 : vector<8x128xf32>
    %70 = math.tanh %69 : vector<8x128xf32>
    %71 = arith.subf %38, %70 : vector<8x128xf32>
    %72 = arith.mulf %64, %71 : vector<8x128xf32>
    %73 = arith.addf %70, %72 : vector<8x128xf32>
    %74 = arith.index_cast %c1_i32 : i32 to index
    %c0_18 = arith.constant 0 : index
    %c0_19 = arith.constant 0 : index
    %75 = vector.load %arg4[%74, %c0_18, %c0_19] : memref<8x8x128xf32, #tpu.memory_space<vmem>>, vector<1x8x128xf32>
    %76 = vector.shape_cast %75 : vector<1x8x128xf32> to vector<8x128xf32>
    %77 = vector.shape_cast %73 : vector<8x128xf32> to vector<1x8x128xf32>
    tpu.vector_store %arg4[%74, %c0_18, %c0_19], %77 {strides = array<i32>} : memref<8x8x128xf32, #tpu.memory_space<vmem>>, vector<1x8x128xf32>,
    %c2_i32 = arith.constant 2 : i32
    %78 = arith.index_cast %c2_i32 : i32 to index
    %c0_20 = arith.constant 0 : index
    %c0_21 = arith.constant 0 : index
    %79 = vector.load %arg1[%78, %c0_20, %c0_21] : memref<8x8x384xbf16, #tpu.memory_space<vmem>>, vector<1x8x384xbf16>
    %80 = vector.shape_cast %79 : vector<1x8x384xbf16> to vector<8x384xbf16>
    %81 = arith.extf %80 : vector<8x384xbf16> to vector<8x384xf32>
    %82 = arith.truncf %73 : vector<8x128xf32> to vector<8x128xbf16>
    %cst_22 = arith.constant dense<0.000000e+00> : vector<8x384xf32>
    %83 = tpu.matmul %82, %3, %cst_22 {dimension_numbers = #tpu.dot_dimension_numbers<[1], [0], [0], [1], [0, 0, 1, 1], [], []>} : vector<8x128xbf16>, vector<128x384xbf16>, vector<8x384xf32> -> vector<8x384xf32>
    %84 = vector.extract_strided_slice %81 {offsets = [0, 0], sizes = [8, 128], strides = [1, 1]} : vector<8x384xf32> to vector<8x128xf32>
    %85 = vector.extract_strided_slice %83 {offsets = [0, 0], sizes = [8, 128], strides = [1, 1]} : vector<8x384xf32> to vector<8x128xf32>
    %86 = arith.addf %84, %85 : vector<8x128xf32>
    %87 = arith.negf %86 : vector<8x128xf32>
    %88 = math.exp %87 : vector<8x128xf32>
    %cst_23 = arith.constant 1.000000e+00 : f32
    %89 = vector.broadcast %cst_23 : f32 to vector<8x128xf32>
    %90 = arith.addf %89, %88 : vector<8x128xf32>
    %91 = arith.divf %89, %90 : vector<8x128xf32>
    %92 = vector.extract_strided_slice %81 {offsets = [0, 128], sizes = [8, 128], strides = [1, 1]} : vector<8x384xf32> to vector<8x128xf32>
    %93 = vector.extract_strided_slice %83 {offsets = [0, 128], sizes = [8, 128], strides = [1, 1]} : vector<8x384xf32> to vector<8x128xf32>
    %94 = arith.addf %92, %93 : vector<8x128xf32>
    %95 = arith.negf %94 : vector<8x128xf32>
    %96 = math.exp %95 : vector<8x128xf32>
    %cst_24 = arith.constant 1.000000e+00 : f32
    %97 = vector.broadcast %cst_24 : f32 to vector<8x128xf32>
    %98 = arith.addf %97, %96 : vector<8x128xf32>
    %99 = arith.divf %97, %98 : vector<8x128xf32>
    %100 = vector.extract_strided_slice %81 {offsets = [0, 256], sizes = [8, 128], strides = [1, 1]} : vector<8x384xf32> to vector<8x128xf32>
    %101 = vector.extract_strided_slice %83 {offsets = [0, 256], sizes = [8, 128], strides = [1, 1]} : vector<8x384xf32> to vector<8x128xf32>
    %102 = arith.addf %101, %6 : vector<8x128xf32>
    %103 = arith.mulf %91, %102 : vector<8x128xf32>
    %104 = arith.addf %100, %103 : vector<8x128xf32>
    %105 = math.tanh %104 : vector<8x128xf32>
    %106 = arith.subf %73, %105 : vector<8x128xf32>
    %107 = arith.mulf %99, %106 : vector<8x128xf32>
    %108 = arith.addf %105, %107 : vector<8x128xf32>
    %109 = arith.index_cast %c2_i32 : i32 to index
    %c0_25 = arith.constant 0 : index
    %c0_26 = arith.constant 0 : index
    %110 = vector.load %arg4[%109, %c0_25, %c0_26] : memref<8x8x128xf32, #tpu.memory_space<vmem>>, vector<1x8x128xf32>
    %111 = vector.shape_cast %110 : vector<1x8x128xf32> to vector<8x128xf32>
    %112 = vector.shape_cast %108 : vector<8x128xf32> to vector<1x8x128xf32>
    tpu.vector_store %arg4[%109, %c0_25, %c0_26], %112 {strides = array<i32>} : memref<8x8x128xf32, #tpu.memory_space<vmem>>, vector<1x8x128xf32>,
    %c3_i32 = arith.constant 3 : i32
    %113 = arith.index_cast %c3_i32 : i32 to index
    %c0_27 = arith.constant 0 : index
    %c0_28 = arith.constant 0 : index
    %114 = vector.load %arg1[%113, %c0_27, %c0_28] : memref<8x8x384xbf16, #tpu.memory_space<vmem>>, vector<1x8x384xbf16>
    %115 = vector.shape_cast %114 : vector<1x8x384xbf16> to vector<8x384xbf16>
    %116 = arith.extf %115 : vector<8x384xbf16> to vector<8x384xf32>
    %117 = arith.truncf %108 : vector<8x128xf32> to vector<8x128xbf16>
    %cst_29 = arith.constant dense<0.000000e+00> : vector<8x384xf32>
    %118 = tpu.matmul %117, %3, %cst_29 {dimension_numbers = #tpu.dot_dimension_numbers<[1], [0], [0], [1], [0, 0, 1, 1], [], []>} : vector<8x128xbf16>, vector<128x384xbf16>, vector<8x384xf32> -> vector<8x384xf32>
    %119 = vector.extract_strided_slice %116 {offsets = [0, 0], sizes = [8, 128], strides = [1, 1]} : vector<8x384xf32> to vector<8x128xf32>
    %120 = vector.extract_strided_slice %118 {offsets = [0, 0], sizes = [8, 128], strides = [1, 1]} : vector<8x384xf32> to vector<8x128xf32>
    %121 = arith.addf %119, %120 : vector<8x128xf32>
    %122 = arith.negf %121 : vector<8x128xf32>
    %123 = math.exp %122 : vector<8x128xf32>
    %cst_30 = arith.constant 1.000000e+00 : f32
    %124 = vector.broadcast %cst_30 : f32 to vector<8x128xf32>
    %125 = arith.addf %124, %123 : vector<8x128xf32>
    %126 = arith.divf %124, %125 : vector<8x128xf32>
    %127 = vector.extract_strided_slice %116 {offsets = [0, 128], sizes = [8, 128], strides = [1, 1]} : vector<8x384xf32> to vector<8x128xf32>
    %128 = vector.extract_strided_slice %118 {offsets = [0, 128], sizes = [8, 128], strides = [1, 1]} : vector<8x384xf32> to vector<8x128xf32>
    %129 = arith.addf %127, %128 : vector<8x128xf32>
    %130 = arith.negf %129 : vector<8x128xf32>
    %131 = math.exp %130 : vector<8x128xf32>
    %cst_31 = arith.constant 1.000000e+00 : f32
    %132 = vector.broadcast %cst_31 : f32 to vector<8x128xf32>
    %133 = arith.addf %132, %131 : vector<8x128xf32>
    %134 = arith.divf %132, %133 : vector<8x128xf32>
    %135 = vector.extract_strided_slice %116 {offsets = [0, 256], sizes = [8, 128], strides = [1, 1]} : vector<8x384xf32> to vector<8x128xf32>
    %136 = vector.extract_strided_slice %118 {offsets = [0, 256], sizes = [8, 128], strides = [1, 1]} : vector<8x384xf32> to vector<8x128xf32>
    %137 = arith.addf %136, %6 : vector<8x128xf32>
    %138 = arith.mulf %126, %137 : vector<8x128xf32>
    %139 = arith.addf %135, %138 : vector<8x128xf32>
    %140 = math.tanh %139 : vector<8x128xf32>
    %141 = arith.subf %108, %140 : vector<8x128xf32>
    %142 = arith.mulf %134, %141 : vector<8x128xf32>
    %143 = arith.addf %140, %142 : vector<8x128xf32>
    %144 = arith.index_cast %c3_i32 : i32 to index
    %c0_32 = arith.constant 0 : index
    %c0_33 = arith.constant 0 : index
    %145 = vector.load %arg4[%144, %c0_32, %c0_33] : memref<8x8x128xf32, #tpu.memory_space<vmem>>, vector<1x8x128xf32>
    %146 = vector.shape_cast %145 : vector<1x8x128xf32> to vector<8x128xf32>
    %147 = vector.shape_cast %143 : vector<8x128xf32> to vector<1x8x128xf32>
    tpu.vector_store %arg4[%144, %c0_32, %c0_33], %147 {strides = array<i32>} : memref<8x8x128xf32, #tpu.memory_space<vmem>>, vector<1x8x128xf32>,
    %c4_i32 = arith.constant 4 : i32
    %148 = arith.index_cast %c4_i32 : i32 to index
    %c0_34 = arith.constant 0 : index
    %c0_35 = arith.constant 0 : index
    %149 = vector.load %arg1[%148, %c0_34, %c0_35] : memref<8x8x384xbf16, #tpu.memory_space<vmem>>, vector<1x8x384xbf16>
    %150 = vector.shape_cast %149 : vector<1x8x384xbf16> to vector<8x384xbf16>
    %151 = arith.extf %150 : vector<8x384xbf16> to vector<8x384xf32>
    %152 = arith.truncf %143 : vector<8x128xf32> to vector<8x128xbf16>
    %cst_36 = arith.constant dense<0.000000e+00> : vector<8x384xf32>
    %153 = tpu.matmul %152, %3, %cst_36 {dimension_numbers = #tpu.dot_dimension_numbers<[1], [0], [0], [1], [0, 0, 1, 1], [], []>} : vector<8x128xbf16>, vector<128x384xbf16>, vector<8x384xf32> -> vector<8x384xf32>
    %154 = vector.extract_strided_slice %151 {offsets = [0, 0], sizes = [8, 128], strides = [1, 1]} : vector<8x384xf32> to vector<8x128xf32>
    %155 = vector.extract_strided_slice %153 {offsets = [0, 0], sizes = [8, 128], strides = [1, 1]} : vector<8x384xf32> to vector<8x128xf32>
    %156 = arith.addf %154, %155 : vector<8x128xf32>
    %157 = arith.negf %156 : vector<8x128xf32>
    %158 = math.exp %157 : vector<8x128xf32>
    %cst_37 = arith.constant 1.000000e+00 : f32
    %159 = vector.broadcast %cst_37 : f32 to vector<8x128xf32>
    %160 = arith.addf %159, %158 : vector<8x128xf32>
    %161 = arith.divf %159, %160 : vector<8x128xf32>
    %162 = vector.extract_strided_slice %151 {offsets = [0, 128], sizes = [8, 128], strides = [1, 1]} : vector<8x384xf32> to vector<8x128xf32>
    %163 = vector.extract_strided_slice %153 {offsets = [0, 128], sizes = [8, 128], strides = [1, 1]} : vector<8x384xf32> to vector<8x128xf32>
    %164 = arith.addf %162, %163 : vector<8x128xf32>
    %165 = arith.negf %164 : vector<8x128xf32>
    %166 = math.exp %165 : vector<8x128xf32>
    %cst_38 = arith.constant 1.000000e+00 : f32
    %167 = vector.broadcast %cst_38 : f32 to vector<8x128xf32>
    %168 = arith.addf %167, %166 : vector<8x128xf32>
    %169 = arith.divf %167, %168 : vector<8x128xf32>
    %170 = vector.extract_strided_slice %151 {offsets = [0, 256], sizes = [8, 128], strides = [1, 1]} : vector<8x384xf32> to vector<8x128xf32>
    %171 = vector.extract_strided_slice %153 {offsets = [0, 256], sizes = [8, 128], strides = [1, 1]} : vector<8x384xf32> to vector<8x128xf32>
    %172 = arith.addf %171, %6 : vector<8x128xf32>
    %173 = arith.mulf %161, %172 : vector<8x128xf32>
    %174 = arith.addf %170, %173 : vector<8x128xf32>
    %175 = math.tanh %174 : vector<8x128xf32>
    %176 = arith.subf %143, %175 : vector<8x128xf32>
    %177 = arith.mulf %169, %176 : vector<8x128xf32>
    %178 = arith.addf %175, %177 : vector<8x128xf32>
    %179 = arith.index_cast %c4_i32 : i32 to index
    %c0_39 = arith.constant 0 : index
    %c0_40 = arith.constant 0 : index
    %180 = vector.load %arg4[%179, %c0_39, %c0_40] : memref<8x8x128xf32, #tpu.memory_space<vmem>>, vector<1x8x128xf32>
    %181 = vector.shape_cast %180 : vector<1x8x128xf32> to vector<8x128xf32>
    %182 = vector.shape_cast %178 : vector<8x128xf32> to vector<1x8x128xf32>
    tpu.vector_store %arg4[%179, %c0_39, %c0_40], %182 {strides = array<i32>} : memref<8x8x128xf32, #tpu.memory_space<vmem>>, vector<1x8x128xf32>,
    %c5_i32 = arith.constant 5 : i32
    %183 = arith.index_cast %c5_i32 : i32 to index
    %c0_41 = arith.constant 0 : index
    %c0_42 = arith.constant 0 : index
    %184 = vector.load %arg1[%183, %c0_41, %c0_42] : memref<8x8x384xbf16, #tpu.memory_space<vmem>>, vector<1x8x384xbf16>
    %185 = vector.shape_cast %184 : vector<1x8x384xbf16> to vector<8x384xbf16>
    %186 = arith.extf %185 : vector<8x384xbf16> to vector<8x384xf32>
    %187 = arith.truncf %178 : vector<8x128xf32> to vector<8x128xbf16>
    %cst_43 = arith.constant dense<0.000000e+00> : vector<8x384xf32>
    %188 = tpu.matmul %187, %3, %cst_43 {dimension_numbers = #tpu.dot_dimension_numbers<[1], [0], [0], [1], [0, 0, 1, 1], [], []>} : vector<8x128xbf16>, vector<128x384xbf16>, vector<8x384xf32> -> vector<8x384xf32>
    %189 = vector.extract_strided_slice %186 {offsets = [0, 0], sizes = [8, 128], strides = [1, 1]} : vector<8x384xf32> to vector<8x128xf32>
    %190 = vector.extract_strided_slice %188 {offsets = [0, 0], sizes = [8, 128], strides = [1, 1]} : vector<8x384xf32> to vector<8x128xf32>
    %191 = arith.addf %189, %190 : vector<8x128xf32>
    %192 = arith.negf %191 : vector<8x128xf32>
    %193 = math.exp %192 : vector<8x128xf32>
    %cst_44 = arith.constant 1.000000e+00 : f32
    %194 = vector.broadcast %cst_44 : f32 to vector<8x128xf32>
    %195 = arith.addf %194, %193 : vector<8x128xf32>
    %196 = arith.divf %194, %195 : vector<8x128xf32>
    %197 = vector.extract_strided_slice %186 {offsets = [0, 128], sizes = [8, 128], strides = [1, 1]} : vector<8x384xf32> to vector<8x128xf32>
    %198 = vector.extract_strided_slice %188 {offsets = [0, 128], sizes = [8, 128], strides = [1, 1]} : vector<8x384xf32> to vector<8x128xf32>
    %199 = arith.addf %197, %198 : vector<8x128xf32>
    %200 = arith.negf %199 : vector<8x128xf32>
    %201 = math.exp %200 : vector<8x128xf32>
    %cst_45 = arith.constant 1.000000e+00 : f32
    %202 = vector.broadcast %cst_45 : f32 to vector<8x128xf32>
    %203 = arith.addf %202, %201 : vector<8x128xf32>
    %204 = arith.divf %202, %203 : vector<8x128xf32>
    %205 = vector.extract_strided_slice %186 {offsets = [0, 256], sizes = [8, 128], strides = [1, 1]} : vector<8x384xf32> to vector<8x128xf32>
    %206 = vector.extract_strided_slice %188 {offsets = [0, 256], sizes = [8, 128], strides = [1, 1]} : vector<8x384xf32> to vector<8x128xf32>
    %207 = arith.addf %206, %6 : vector<8x128xf32>
    %208 = arith.mulf %196, %207 : vector<8x128xf32>
    %209 = arith.addf %205, %208 : vector<8x128xf32>
    %210 = math.tanh %209 : vector<8x128xf32>
    %211 = arith.subf %178, %210 : vector<8x128xf32>
    %212 = arith.mulf %204, %211 : vector<8x128xf32>
    %213 = arith.addf %210, %212 : vector<8x128xf32>
    %214 = arith.index_cast %c5_i32 : i32 to index
    %c0_46 = arith.constant 0 : index
    %c0_47 = arith.constant 0 : index
    %215 = vector.load %arg4[%214, %c0_46, %c0_47] : memref<8x8x128xf32, #tpu.memory_space<vmem>>, vector<1x8x128xf32>
    %216 = vector.shape_cast %215 : vector<1x8x128xf32> to vector<8x128xf32>
    %217 = vector.shape_cast %213 : vector<8x128xf32> to vector<1x8x128xf32>
    tpu.vector_store %arg4[%214, %c0_46, %c0_47], %217 {strides = array<i32>} : memref<8x8x128xf32, #tpu.memory_space<vmem>>, vector<1x8x128xf32>,
    %c6_i32 = arith.constant 6 : i32
    %218 = arith.index_cast %c6_i32 : i32 to index
    %c0_48 = arith.constant 0 : index
    %c0_49 = arith.constant 0 : index
    %219 = vector.load %arg1[%218, %c0_48, %c0_49] : memref<8x8x384xbf16, #tpu.memory_space<vmem>>, vector<1x8x384xbf16>
    %220 = vector.shape_cast %219 : vector<1x8x384xbf16> to vector<8x384xbf16>
    %221 = arith.extf %220 : vector<8x384xbf16> to vector<8x384xf32>
    %222 = arith.truncf %213 : vector<8x128xf32> to vector<8x128xbf16>
    %cst_50 = arith.constant dense<0.000000e+00> : vector<8x384xf32>
    %223 = tpu.matmul %222, %3, %cst_50 {dimension_numbers = #tpu.dot_dimension_numbers<[1], [0], [0], [1], [0, 0, 1, 1], [], []>} : vector<8x128xbf16>, vector<128x384xbf16>, vector<8x384xf32> -> vector<8x384xf32>
    %224 = vector.extract_strided_slice %221 {offsets = [0, 0], sizes = [8, 128], strides = [1, 1]} : vector<8x384xf32> to vector<8x128xf32>
    %225 = vector.extract_strided_slice %223 {offsets = [0, 0], sizes = [8, 128], strides = [1, 1]} : vector<8x384xf32> to vector<8x128xf32>
    %226 = arith.addf %224, %225 : vector<8x128xf32>
    %227 = arith.negf %226 : vector<8x128xf32>
    %228 = math.exp %227 : vector<8x128xf32>
    %cst_51 = arith.constant 1.000000e+00 : f32
    %229 = vector.broadcast %cst_51 : f32 to vector<8x128xf32>
    %230 = arith.addf %229, %228 : vector<8x128xf32>
    %231 = arith.divf %229, %230 : vector<8x128xf32>
    %232 = vector.extract_strided_slice %221 {offsets = [0, 128], sizes = [8, 128], strides = [1, 1]} : vector<8x384xf32> to vector<8x128xf32>
    %233 = vector.extract_strided_slice %223 {offsets = [0, 128], sizes = [8, 128], strides = [1, 1]} : vector<8x384xf32> to vector<8x128xf32>
    %234 = arith.addf %232, %233 : vector<8x128xf32>
    %235 = arith.negf %234 : vector<8x128xf32>
    %236 = math.exp %235 : vector<8x128xf32>
    %cst_52 = arith.constant 1.000000e+00 : f32
    %237 = vector.broadcast %cst_52 : f32 to vector<8x128xf32>
    %238 = arith.addf %237, %236 : vector<8x128xf32>
    %239 = arith.divf %237, %238 : vector<8x128xf32>
    %240 = vector.extract_strided_slice %221 {offsets = [0, 256], sizes = [8, 128], strides = [1, 1]} : vector<8x384xf32> to vector<8x128xf32>
    %241 = vector.extract_strided_slice %223 {offsets = [0, 256], sizes = [8, 128], strides = [1, 1]} : vector<8x384xf32> to vector<8x128xf32>
    %242 = arith.addf %241, %6 : vector<8x128xf32>
    %243 = arith.mulf %231, %242 : vector<8x128xf32>
    %244 = arith.addf %240, %243 : vector<8x128xf32>
    %245 = math.tanh %244 : vector<8x128xf32>
    %246 = arith.subf %213, %245 : vector<8x128xf32>
    %247 = arith.mulf %239, %246 : vector<8x128xf32>
    %248 = arith.addf %245, %247 : vector<8x128xf32>
    %249 = arith.index_cast %c6_i32 : i32 to index
    %c0_53 = arith.constant 0 : index
    %c0_54 = arith.constant 0 : index
    %250 = vector.load %arg4[%249, %c0_53, %c0_54] : memref<8x8x128xf32, #tpu.memory_space<vmem>>, vector<1x8x128xf32>
    %251 = vector.shape_cast %250 : vector<1x8x128xf32> to vector<8x128xf32>
    %252 = vector.shape_cast %248 : vector<8x128xf32> to vector<1x8x128xf32>
    tpu.vector_store %arg4[%249, %c0_53, %c0_54], %252 {strides = array<i32>} : memref<8x8x128xf32, #tpu.memory_space<vmem>>, vector<1x8x128xf32>,
    %c7_i32 = arith.constant 7 : i32
    %253 = arith.index_cast %c7_i32 : i32 to index
    %c0_55 = arith.constant 0 : index
    %c0_56 = arith.constant 0 : index
    %254 = vector.load %arg1[%253, %c0_55, %c0_56] : memref<8x8x384xbf16, #tpu.memory_space<vmem>>, vector<1x8x384xbf16>
    %255 = vector.shape_cast %254 : vector<1x8x384xbf16> to vector<8x384xbf16>
    %256 = arith.extf %255 : vector<8x384xbf16> to vector<8x384xf32>
    %257 = arith.truncf %248 : vector<8x128xf32> to vector<8x128xbf16>
    %cst_57 = arith.constant dense<0.000000e+00> : vector<8x384xf32>
    %258 = tpu.matmul %257, %3, %cst_57 {dimension_numbers = #tpu.dot_dimension_numbers<[1], [0], [0], [1], [0, 0, 1, 1], [], []>} : vector<8x128xbf16>, vector<128x384xbf16>, vector<8x384xf32> -> vector<8x384xf32>
    %259 = vector.extract_strided_slice %256 {offsets = [0, 0], sizes = [8, 128], strides = [1, 1]} : vector<8x384xf32> to vector<8x128xf32>
    %260 = vector.extract_strided_slice %258 {offsets = [0, 0], sizes = [8, 128], strides = [1, 1]} : vector<8x384xf32> to vector<8x128xf32>
    %261 = arith.addf %259, %260 : vector<8x128xf32>
    %262 = arith.negf %261 : vector<8x128xf32>
    %263 = math.exp %262 : vector<8x128xf32>
    %cst_58 = arith.constant 1.000000e+00 : f32
    %264 = vector.broadcast %cst_58 : f32 to vector<8x128xf32>
    %265 = arith.addf %264, %263 : vector<8x128xf32>
    %266 = arith.divf %264, %265 : vector<8x128xf32>
    %267 = vector.extract_strided_slice %256 {offsets = [0, 128], sizes = [8, 128], strides = [1, 1]} : vector<8x384xf32> to vector<8x128xf32>
    %268 = vector.extract_strided_slice %258 {offsets = [0, 128], sizes = [8, 128], strides = [1, 1]} : vector<8x384xf32> to vector<8x128xf32>
    %269 = arith.addf %267, %268 : vector<8x128xf32>
    %270 = arith.negf %269 : vector<8x128xf32>
    %271 = math.exp %270 : vector<8x128xf32>
    %cst_59 = arith.constant 1.000000e+00 : f32
    %272 = vector.broadcast %cst_59 : f32 to vector<8x128xf32>
    %273 = arith.addf %272, %271 : vector<8x128xf32>
    %274 = arith.divf %272, %273 : vector<8x128xf32>
    %275 = vector.extract_strided_slice %256 {offsets = [0, 256], sizes = [8, 128], strides = [1, 1]} : vector<8x384xf32> to vector<8x128xf32>
    %276 = vector.extract_strided_slice %258 {offsets = [0, 256], sizes = [8, 128], strides = [1, 1]} : vector<8x384xf32> to vector<8x128xf32>
    %277 = arith.addf %276, %6 : vector<8x128xf32>
    %278 = arith.mulf %266, %277 : vector<8x128xf32>
    %279 = arith.addf %275, %278 : vector<8x128xf32>
    %280 = math.tanh %279 : vector<8x128xf32>
    %281 = arith.subf %248, %280 : vector<8x128xf32>
    %282 = arith.mulf %274, %281 : vector<8x128xf32>
    %283 = arith.addf %280, %282 : vector<8x128xf32>
    %284 = arith.index_cast %c7_i32 : i32 to index
    %c0_60 = arith.constant 0 : index
    %c0_61 = arith.constant 0 : index
    %285 = vector.load %arg4[%284, %c0_60, %c0_61] : memref<8x8x128xf32, #tpu.memory_space<vmem>>, vector<1x8x128xf32>
    %286 = vector.shape_cast %285 : vector<1x8x128xf32> to vector<8x128xf32>
    %287 = vector.shape_cast %283 : vector<8x128xf32> to vector<1x8x128xf32>
    tpu.vector_store %arg4[%284, %c0_60, %c0_61], %287 {strides = array<i32>} : memref<8x8x128xf32, #tpu.memory_space<vmem>>, vector<1x8x128xf32>,
    %c8_i32 = arith.constant 8 : i32
    %c0_62 = arith.constant 0 : index
    %c0_63 = arith.constant 0 : index
    %288 = vector.load %arg5[%c0_62, %c0_63] : memref<8x128xf32, #tpu.memory_space<vmem>>, vector<8x128xf32>
    tpu.vector_store %arg5[%c0_62, %c0_63], %283 {strides = array<i32>} : memref<8x128xf32, #tpu.memory_space<vmem>>, vector<8x128xf32>,
    return
  }
  func.func @transform_0(%arg0: i32) -> (i32, i32, i32) {
    %c0_i32 = arith.constant 0 : i32
    %c0_i32_0 = arith.constant 0 : i32
    %c0_i32_1 = arith.constant 0 : i32
    return %arg0, %c0_i32, %c0_i32_0 : i32, i32, i32
  }
  func.func @transform_1(%arg0: i32) -> (i32, i32) {
    %c0_i32 = arith.constant 0 : i32
    %c0_i32_0 = arith.constant 0 : i32
    %c0_i32_1 = arith.constant 0 : i32
    return %c0_i32, %c0_i32_0 : i32, i32
  }
  func.func @transform_2(%arg0: i32) -> (i32, i32) {
    %c0_i32 = arith.constant 0 : i32
    %c0_i32_0 = arith.constant 0 : i32
    %c0_i32_1 = arith.constant 0 : i32
    return %c0_i32, %c0_i32_0 : i32, i32
  }
  func.func @transform_3(%arg0: i32) -> (i32, i32, i32) {
    %c0_i32 = arith.constant 0 : i32
    %c0_i32_0 = arith.constant 0 : i32
    %c0_i32_1 = arith.constant 0 : i32
    return %arg0, %c0_i32, %c0_i32_0 : i32, i32, i32
  }
}

</mosaic_0001>

<bundles_post_ra>
// kernel: gru_rnn_forward.3
= control target key start
LH: loop header
LB: loop body
LE: loop exit
PB: predicated region body
PF: predicated region fallthrough
CT: control target
= control target key end

     0   :  { %v1497_v1 = vmov 0.0   ;;  %v1498_v2 = vmov 0   ;;  %vm1499_vm0 = vmmov 0   ;;  %v1500_v25 = vmov 0.0|0.0   ;;  %s2061_s1 = inlined_call_operand.vmem [shape: bf16[128,384], index: 1, kind: input, shape index: {}]   ;;  %s2062_s0 = inlined_call_operand.vmem [shape: bf16[8,8,384], index: 0, kind: input, shape index: {}]   ;;  %s2063_s2 = inlined_call_operand.vmem [shape: f32[1,128], index: 2, kind: input, shape index: {}]   ;;  %s2064_s3 = inlined_call_operand.vmem [shape: f32[8,8,128], index: 3, kind: output, shape index: {}]  }
   0x1   :  { %v1524_v0 = vld [vmem:[%s2061_s1 + $0xac] ss:$12 sps:$4 sm:$0xff]   ;;  %1213 = vmatprep.subr.bf16.mxu1 %v1497_v1  ;;  %226 = vmatprep.mubr.bf16.mxu0 %v1498_v2  ;;  %v1531_v3 = vld [vmem:[%s2061_s1 + $0xa8] ss:$12 sps:$4 sm:$0xff]   ;;  %v1545_v5 = vld [vmem:[%s2061_s1 + $0x90] ss:$12 sps:$4 sm:$0xff]  }
   0x2   :  { %1229 = vmatprep.mubr.msk.bf16.mxu1 %vm1499_vm0, %v1497_v1  ;;  %194 = vmatprep.subr.bf16.mxu0 %v1524_v0  ;;  %v1539_v4 = vld [vmem:[%s2061_s1 + $0x94] ss:$12 sps:$4 sm:$0xff]   ;;  %v1551_v6 = vld [vmem:[%s2061_s1 + $0x7c] ss:$12 sps:$4 sm:$0xff]   ;;  %v1557_v7 = vld [vmem:[%s2061_s1 + $0x78] ss:$12 sps:$4 sm:$0xff]  }
   0x3   :  { %195 = vmatpush1.bf16.msra.mxu0 %v1531_v3  ;;  %v1563_v8 = vld [vmem:[%s2061_s1 + $0x64] ss:$12 sps:$4 sm:$0xff]   ;;  %v1574_v10 = vld [vmem:[%s2061_s1 + $0x60] ss:$12 sps:$4 sm:$0xff]   ;;  %v1592_v13 = vld [vmem:[%s2061_s1 + $0x48] ss:$12 sps:$4 sm:$0xff]  }
   0x4   :  { %196 = vmatprep.subr.bf16.mxu0 %v1539_v4  ;;  %v1568_v9 = vld [vmem:[%s2061_s1 + $0xb0] ss:$12 sps:$4 sm:$0xff]   ;;  %v1579_v11 = vld [vmem:[%s2061_s1 + $0x4c] ss:$12 sps:$4 sm:$0xff]   ;;  %v1598_v14 = vld [vmem:[%s2061_s1 + $0x34] ss:$12 sps:$4 sm:$0xff]  }
   0x5   :  { %1214 = vmatpush3.bf16.msra.mxu1 %v1568_v9  ;;  %v1586_v12 = vld [vmem:[%s2061_s1 + $0x98] ss:$12 sps:$4 sm:$0xff]   ;;  %v1605_v15 = vld [vmem:[%s2061_s1 + $0x80] ss:$12 sps:$4 sm:$0xff]   ;;  %v1612_v16 = vld [vmem:[%s2061_s1 + $0x30] ss:$12 sps:$4 sm:$0xff]  }
   0x6   :  { %1215 = vmatprep.subr.bf16.mxu1 %v1497_v1  ;;  %v1618_v17 = vld [vmem:[%s2061_s1 + $0x1c] ss:$12 sps:$4 sm:$0xff]   ;;  %v1631_v19 = vld [vmem:[%s2061_s1 + $0x18] ss:$12 sps:$4 sm:$0xff]   ;;  %v1650_v22 = vld [vmem:[%s2061_s1] ss:$12 sps:$4 sm:$0xff]  }
   0x7   :  { %197 = vmatpush1.bf16.msra.mxu0 %v1545_v5  ;;  %v1624_v18 = vld [vmem:[%s2061_s1 + $0x68] ss:$12 sps:$4 sm:$0xff]   ;;  %v1637_v20 = vld [vmem:[%s2061_s1 + $0x4] ss:$12 sps:$4 sm:$0xff]   ;;  %v1665_v24 = vld [vmem:[%s2061_s1 + $0x20] ss:$12 sps:$4 sm:$0xff]  }
   0x8   :  { %198 = vmatprep.subr.bf16.mxu0 %v1551_v6  ;;  %v1643_v21 = vld [vmem:[%s2061_s1 + $0x50] ss:$12 sps:$4 sm:$0xff]   ;;  %v1657_v23 = vld [vmem:[%s2061_s1 + $0x38] ss:$12 sps:$4 sm:$0xff]   ;;  %v1675_v26 = vld [vmem:[%s2061_s1 + $0x8] ss:$12 sps:$4 sm:$0xff]  }
   0x9   :  { %1216 = vmatpush3.bf16.msra.mxu1 %v1586_v12  ;;  %v60_v27 = vld [vmem:[%s2062_s0] sm:$0xff]  ;;  %v61_v45 = vld [vmem:[%s2062_s0 + $0x8] sm:$0xf]  ;;  %v1106_v59 = vld [vmem:[%s2062_s0 + $0xc] sm:$0xff] }
   0xa   :  { %1217 = vmatprep.subr.bf16.mxu1 %v1497_v1  ;;  %v62_v28 = vunpack.c.l.bf16 %v60_v27  ;;  %v63_v35 = vunpack.c.h.bf16 %v60_v27  ;;  %v1719_v44 = vld [vmem:[%s2063_s2] ss:$0 sm:$0xff]  ;;  %v64_v48 = vunpack.c.l.bf16 %v61_v45  ;;  %v300_v60 = vunpack.c.l.bf16 %v1106_v59 }
   0xb   :  { %199 = vmatpush1.bf16.msra.mxu0 %v1557_v7 }
   0xc   :  { %200 = vmatprep.subr.bf16.mxu0 %v1563_v8 }
   0xd   :  { %1218 = vmatpush3.bf16.msra.mxu1 %v1605_v15 }
   0xe   :  { %1219 = vmatprep.subr.bf16.mxu1 %v1497_v1 }
   0xf   :  { %201 = vmatpush1.bf16.msra.mxu0 %v1574_v10 }
  0x10   :  { %202 = vmatprep.subr.bf16.mxu0 %v1579_v11 }
  0x11   :  { %1220 = vmatpush3.bf16.msra.mxu1 %v1624_v18 }
  0x12   :  { %1221 = vmatprep.subr.bf16.mxu1 %v1497_v1 }
  0x13   :  { %203 = vmatpush1.bf16.msra.mxu0 %v1592_v13 }
  0x14   :  { %204 = vmatprep.subr.bf16.mxu0 %v1598_v14 }
  0x15   :  { %1222 = vmatpush3.bf16.msra.mxu1 %v1643_v21 }
  0x16   :  { %1223 = vmatprep.subr.bf16.mxu1 %v1497_v1 }
  0x17   :  { %205 = vmatpush1.bf16.msra.mxu0 %v1612_v16 }
  0x18   :  { %206 = vmatprep.subr.bf16.mxu0 %v1618_v17 }
  0x19   :  { %1224 = vmatpush3.bf16.msra.mxu1 %v1657_v23 }
  0x1a   :  { %1225 = vmatprep.subr.bf16.mxu1 %v1497_v1 }
  0x1b   :  { %207 = vmatpush1.bf16.msra.mxu0 %v1631_v19 }
  0x1c   :  { %208 = vmatprep.subr.bf16.mxu0 %v1637_v20 }
  0x1d   :  { %1226 = vmatpush3.bf16.msra.mxu1 %v1665_v24 }
  0x1e   :  { %1227 = vmatprep.subr.bf16.mxu1 %v1497_v1 }
  0x1f   :  { %209 = vmatpush1.bf16.msra.mxu0 %v1650_v22 }
  0x20   :  { %304 = vmatprep.subr.bf16.mxu0 %v1524_v0 }
  0x21   :  { %1228 = vmatpush3.bf16.msra.mxu1 %v1675_v26 }
  0x22   :  { %227 = vmatmul.mubr.bf16.vlgmr.msra.gmra.mxu0 %v1500_v25  ;;  %1233 = vmatprep.subr.bf16.mxu1 %v1497_v1 }
  0x23   :  { %305 = vmatpush1.bf16.msra.mxu0 %v1531_v3  ;;  %336 = vmatprep.mubr.bf16.mxu0 %v1498_v2 }
  0x24   :  { %306 = vmatprep.subr.bf16.mxu0 %v1539_v4  ;;  %1230 = vmatmul.mubr.bf16.vlgmr.msra.gmra.mxu1 %v1500_v25 }
  0x25   :  { %1234 = vmatpush3.bf16.msra.mxu1 %v1568_v9  ;;  %1249 = vmatprep.mubr.msk.bf16.mxu1 %vm1499_vm0, %v1497_v1 }
  0x26   :  { %1235 = vmatprep.subr.bf16.mxu1 %v1497_v1 }
  0x27   :  { %307 = vmatpush1.bf16.msra.mxu0 %v1545_v5 }
  0x28   :  { %308 = vmatprep.subr.bf16.mxu0 %v1551_v6 }
  0x29   :  { %1236 = vmatpush3.bf16.msra.mxu1 %v1586_v12 }
  0x2a   :  { %1237 = vmatprep.subr.bf16.mxu1 %v1497_v1 }
  0x2b   :  { %309 = vmatpush1.bf16.msra.mxu0 %v1557_v7 }
  0x2c   :  { %310 = vmatprep.subr.bf16.mxu0 %v1563_v8 }
  0x2d   :  { %1238 = vmatpush3.bf16.msra.mxu1 %v1605_v15 }
  0x2e   :  { %1239 = vmatprep.subr.bf16.mxu1 %v1497_v1 }
  0x2f   :  { %311 = vmatpush1.bf16.msra.mxu0 %v1574_v10 }
  0x30   :  { %312 = vmatprep.subr.bf16.mxu0 %v1579_v11 }
  0x31   :  { %1240 = vmatpush3.bf16.msra.mxu1 %v1624_v18 }
  0x32   :  { %1241 = vmatprep.subr.bf16.mxu1 %v1497_v1 }
  0x33   :  { %313 = vmatpush1.bf16.msra.mxu0 %v1592_v13 }
  0x34   :  { %314 = vmatprep.subr.bf16.mxu0 %v1598_v14 }
  0x35   :  { %1242 = vmatpush3.bf16.msra.mxu1 %v1643_v21 }
  0x36   :  { %1243 = vmatprep.subr.bf16.mxu1 %v1497_v1 }
  0x37   :  { %315 = vmatpush1.bf16.msra.mxu0 %v1612_v16 }
  0x38   :  { %316 = vmatprep.subr.bf16.mxu0 %v1618_v17 }
  0x39   :  { %1244 = vmatpush3.bf16.msra.mxu1 %v1657_v23 }
  0x3a   :  { %1245 = vmatprep.subr.bf16.mxu1 %v1497_v1 }
  0x3b   :  { %317 = vmatpush1.bf16.msra.mxu0 %v1631_v19 }
  0x3c   :  { %318 = vmatprep.subr.bf16.mxu0 %v1637_v20 }
  0x3d   :  { %1246 = vmatpush3.bf16.msra.mxu1 %v1665_v24 }
  0x3e   :  { %1247 = vmatprep.subr.bf16.mxu1 %v1497_v1 }
  0x3f   :  { %319 = vmatpush1.bf16.msra.mxu0 %v1650_v22 }
  0x40   :  { %415 = vmatprep.subr.bf16.mxu0 %v1524_v0 }
  0x41   :  { %1248 = vmatpush3.bf16.msra.mxu1 %v1675_v26 }
  0x42   :  { %1253 = vmatprep.subr.bf16.mxu1 %v1497_v1 }
  0xe2   :  { %v228_v29 = vpop.f32.mrf.mxu0 }
  0xe3   :  { %v275_v30 = vadd.f32 %v228_v29, %v62_v28 }
  0xe4   :  { %v230_v31 = vpop.f32.mrf.mxu0  ;;  %v269_v36 = vpop.f32.mrf.mxu1 }
  0xe5   :  { %v1104_v32 = vmul.f32 -1.442695, %v275_v30  ;;  %v282_v38 = vadd.f32 %v230_v31, %v63_v35  ;;  %v289_v46 = vadd.f32 %v1719_v44, %v269_v36 }
  0xe6   :  { %v232_v33 = vpop.f32.mrf.mxu0  ;;  %v1231_v37 = vpop.f32.mrf.mxu1 }
  0xe7   :  { %1409 = vpow2.f32 %v1104_v32  ;;  %v1105_v41 = vmul.f32 -1.442695, %v282_v38  ;;  %v301_v33 = vunpack.c.h.bf16 %v1106_v59  ;;  %v1774_v38 = vld [vmem:[%s2062_s0 + $0x14] ss:$12 sps:$4 sm:$0xff]  }
  0xe8   :  { %v233_v34 = vpop.f32.mrf.mxu0  ;;  %v272_v39 = vpop.f32.mrf.mxu1 }
  0xe9   :  { %1411 = vpow2.f32 %v1105_v41 }
  0xea   :  { %v1232_v40 = vpop.f32.mrf.mxu1 }
  0xeb   :  { %v302_v40 = vunpack.c.l.bf16 %v1774_v38 }
  0xf4   :  { %v1410_v42 = vpop.eup %1409 }
  0xf5   :  { %v279_v43 = vadd.f32 1.0, %v1410_v42 }
  0xf6   :  { %v1412_v47 = vpop.eup %1411 }
  0xf7   :  { %1413 = vrcp.f32 %v279_v43  ;;  %v286_v51 = vadd.f32 1.0, %v1412_v47 }
 0x104   :  { %v1414_v49 = vpop.eup %1413 }
 0x105   :  { %v290_v50 = vmul.f32 %v1414_v49, %v289_v46 }
 0x107   :  { %v291_v52 = vadd.f32 %v290_v50, %v64_v48 }
 0x109   :  { %1415 = vtanh.f32 %v291_v52 }
 0x10a   :  { %1417 = vrcp.f32 %v286_v51 }
 0x116   :  { %v1416_v53 = vpop.eup %1415 }
 0x117   :  { %v293_v54 = vsub.f32 0.0, %v1416_v53  ;;  %v1418_v55 = vpop.eup %1417 }
 0x119   :  { %v294_v56 = vmul.f32 %v1418_v55, %v293_v54 }
 0x11b   :  { %v1725_v57 = vadd.f32 %v1416_v53, %v294_v56  ;;  %v1111_v53 = vld [vmem:[%s2062_s0 + $0x18] sm:$0xff] }
 0x11c   :  { %v411_v54 = vunpack.c.l.bf16 %v1111_v53 }
 0x11d   :  { %296 = vst [vmem:[%s2064_s3] sm:$0xff] %v1725_v57  ;;  %v303_v58 = vpack.c.bf16 %v1725_v57, %v1725_v57 }
 0x11f   :  { %337 = vmatmul.mubr.bf16.vlgmr.msra.gmra.mxu0 %v303_v58  ;;  %1250 = vmatmul.mubr.bf16.vlgmr.msra.gmra.mxu1 %v303_v58 }
 0x120   :  { %416 = vmatpush1.bf16.msra.mxu0 %v1531_v3  ;;  %1254 = vmatpush3.bf16.msra.mxu1 %v1568_v9 }
 0x121   :  { %417 = vmatprep.subr.bf16.mxu0 %v1539_v4  ;;  %1255 = vmatprep.subr.bf16.mxu1 %v1497_v1 }
 0x122   :  { %447 = vmatprep.mubr.bf16.mxu0 %v1498_v2  ;;  %1269 = vmatprep.mubr.msk.bf16.mxu1 %vm1499_vm0, %v1497_v1 }
 0x124   :  { %418 = vmatpush1.bf16.msra.mxu0 %v1545_v5  ;;  %1256 = vmatpush3.bf16.msra.mxu1 %v1586_v12 }
 0x125   :  { %419 = vmatprep.subr.bf16.mxu0 %v1551_v6  ;;  %1257 = vmatprep.subr.bf16.mxu1 %v1497_v1 }
 0x128   :  { %420 = vmatpush1.bf16.msra.mxu0 %v1557_v7  ;;  %1258 = vmatpush3.bf16.msra.mxu1 %v1605_v15 }
 0x129   :  { %421 = vmatprep.subr.bf16.mxu0 %v1563_v8  ;;  %1259 = vmatprep.subr.bf16.mxu1 %v1497_v1 }
 0x12c   :  { %422 = vmatpush1.bf16.msra.mxu0 %v1574_v10  ;;  %1260 = vmatpush3.bf16.msra.mxu1 %v1624_v18 }
 0x12d   :  { %423 = vmatprep.subr.bf16.mxu0 %v1579_v11  ;;  %1261 = vmatprep.subr.bf16.mxu1 %v1497_v1 }
 0x130   :  { %424 = vmatpush1.bf16.msra.mxu0 %v1592_v13  ;;  %1262 = vmatpush3.bf16.msra.mxu1 %v1643_v21 }
 0x131   :  { %425 = vmatprep.subr.bf16.mxu0 %v1598_v14  ;;  %1263 = vmatprep.subr.bf16.mxu1 %v1497_v1 }
 0x134   :  { %426 = vmatpush1.bf16.msra.mxu0 %v1612_v16  ;;  %1264 = vmatpush3.bf16.msra.mxu1 %v1657_v23 }
 0x135   :  { %427 = vmatprep.subr.bf16.mxu0 %v1618_v17  ;;  %1265 = vmatprep.subr.bf16.mxu1 %v1497_v1 }
 0x138   :  { %428 = vmatpush1.bf16.msra.mxu0 %v1631_v19  ;;  %1266 = vmatpush3.bf16.msra.mxu1 %v1665_v24 }
 0x139   :  { %429 = vmatprep.subr.bf16.mxu0 %v1637_v20  ;;  %1267 = vmatprep.subr.bf16.mxu1 %v1497_v1 }
 0x13c   :  { %430 = vmatpush1.bf16.msra.mxu0 %v1650_v22  ;;  %1268 = vmatpush3.bf16.msra.mxu1 %v1675_v26 }
 0x13d   :  { %526 = vmatprep.subr.bf16.mxu0 %v1524_v0  ;;  %1273 = vmatprep.subr.bf16.mxu1 %v1497_v1 }
 0x1df   :  { %v338_v61 = vpop.f32.mrf.mxu0  ;;  %v379_v62 = vpop.f32.mrf.mxu1 }
 0x1e0   :  { %v385_v63 = vadd.f32 %v338_v61, %v300_v60  ;;  %v399_v41 = vadd.f32 %v1719_v44, %v379_v62 }
 0x1e1   :  { %v340_v25 = vpop.f32.mrf.mxu0  ;;  %v1251_v27 = vpop.f32.mrf.mxu1 }
 0x1e2   :  { %v1108_v28 = vmul.f32 -1.442695, %v385_v63  ;;  %v392_v34 = vadd.f32 %v340_v25, %v301_v33  ;;  %v412_v27 = vunpack.c.h.bf16 %v1111_v53  ;;  %v413_v33 = vunpack.c.h.bf16 %v1774_v38 }
 0x1e3   :  { %v342_v29 = vpop.f32.mrf.mxu0  ;;  %v382_v30 = vpop.f32.mrf.mxu1 }
 0x1e4   :  { %1419 = vpow2.f32 %v1108_v28  ;;  %v1109_v35 = vmul.f32 -1.442695, %v392_v34 }
 0x1e5   :  { %v343_v31 = vpop.f32.mrf.mxu0  ;;  %v1252_v32 = vpop.f32.mrf.mxu1 }
 0x1e6   :  { %1421 = vpow2.f32 %v1109_v35 }
 0x1f1   :  { %v1420_v36 = vpop.eup %1419 }
 0x1f2   :  { %v389_v37 = vadd.f32 1.0, %v1420_v36 }
 0x1f3   :  { %v1422_v39 = vpop.eup %1421 }
 0x1f4   :  { %1423 = vrcp.f32 %v389_v37  ;;  %v396_v46 = vadd.f32 1.0, %v1422_v39 }
 0x201   :  { %v1424_v42 = vpop.eup %1423 }
 0x202   :  { %v400_v43 = vmul.f32 %v1424_v42, %v399_v41 }
 0x204   :  { %v401_v45 = vadd.f32 %v400_v43, %v302_v40 }
 0x206   :  { %1425 = vtanh.f32 %v401_v45 }
 0x207   :  { %1427 = vrcp.f32 %v396_v46  ;;  %v1116_v46 = vld [vmem:[%s2062_s0 + $0x24] sm:$0xff] }
 0x213   :  { %v1426_v47 = vpop.eup %1425 }
 0x214   :  { %v403_v48 = vsub.f32 %v1725_v57, %v1426_v47  ;;  %v1428_v49 = vpop.eup %1427 }
 0x216   :  { %v404_v50 = vmul.f32 %v1428_v49, %v403_v48 }
 0x218   :  { %v1779_v51 = vadd.f32 %v1426_v47, %v404_v50  ;;  %v522_v47 = vunpack.c.l.bf16 %v1116_v46 }
 0x21a   :  { %1110 = vst [vmem:[%s2064_s3 + $0x8] sm:$0xff] %v1779_v51  ;;  %v414_v52 = vpack.c.bf16 %v1779_v51, %v1779_v51 }
 0x21c   :  { %448 = vmatmul.mubr.bf16.vlgmr.msra.gmra.mxu0 %v414_v52  ;;  %1270 = vmatmul.mubr.bf16.vlgmr.msra.gmra.mxu1 %v414_v52 }
 0x21d   :  { %527 = vmatpush1.bf16.msra.mxu0 %v1531_v3  ;;  %1274 = vmatpush3.bf16.msra.mxu1 %v1568_v9 }
 0x21e   :  { %528 = vmatprep.subr.bf16.mxu0 %v1539_v4  ;;  %1275 = vmatprep.subr.bf16.mxu1 %v1497_v1 }
 0x21f   :  { %558 = vmatprep.mubr.bf16.mxu0 %v1498_v2  ;;  %1289 = vmatprep.mubr.msk.bf16.mxu1 %vm1499_vm0, %v1497_v1 }
 0x221   :  { %529 = vmatpush1.bf16.msra.mxu0 %v1545_v5  ;;  %1276 = vmatpush3.bf16.msra.mxu1 %v1586_v12 }
 0x222   :  { %530 = vmatprep.subr.bf16.mxu0 %v1551_v6  ;;  %1277 = vmatprep.subr.bf16.mxu1 %v1497_v1 }
 0x225   :  { %531 = vmatpush1.bf16.msra.mxu0 %v1557_v7  ;;  %1278 = vmatpush3.bf16.msra.mxu1 %v1605_v15 }
 0x226   :  { %532 = vmatprep.subr.bf16.mxu0 %v1563_v8  ;;  %1279 = vmatprep.subr.bf16.mxu1 %v1497_v1 }
 0x229   :  { %533 = vmatpush1.bf16.msra.mxu0 %v1574_v10  ;;  %1280 = vmatpush3.bf16.msra.mxu1 %v1624_v18 }
 0x22a   :  { %534 = vmatprep.subr.bf16.mxu0 %v1579_v11  ;;  %1281 = vmatprep.subr.bf16.mxu1 %v1497_v1 }
 0x22d   :  { %535 = vmatpush1.bf16.msra.mxu0 %v1592_v13  ;;  %1282 = vmatpush3.bf16.msra.mxu1 %v1643_v21 }
 0x22e   :  { %536 = vmatprep.subr.bf16.mxu0 %v1598_v14  ;;  %1283 = vmatprep.subr.bf16.mxu1 %v1497_v1 }
 0x231   :  { %537 = vmatpush1.bf16.msra.mxu0 %v1612_v16  ;;  %1284 = vmatpush3.bf16.msra.mxu1 %v1657_v23 }
 0x232   :  { %538 = vmatprep.subr.bf16.mxu0 %v1618_v17  ;;  %1285 = vmatprep.subr.bf16.mxu1 %v1497_v1 }
 0x235   :  { %539 = vmatpush1.bf16.msra.mxu0 %v1631_v19  ;;  %1286 = vmatpush3.bf16.msra.mxu1 %v1665_v24 }
 0x236   :  { %540 = vmatprep.subr.bf16.mxu0 %v1637_v20  ;;  %1287 = vmatprep.subr.bf16.mxu1 %v1497_v1 }
 0x239   :  { %541 = vmatpush1.bf16.msra.mxu0 %v1650_v22  ;;  %1288 = vmatpush3.bf16.msra.mxu1 %v1675_v26 }
 0x23a   :  { %637 = vmatprep.subr.bf16.mxu0 %v1524_v0  ;;  %1293 = vmatprep.subr.bf16.mxu1 %v1497_v1 }
 0x2dc   :  { %v449_v55 = vpop.f32.mrf.mxu0  ;;  %v490_v56 = vpop.f32.mrf.mxu1 }
 0x2dd   :  { %v496_v57 = vadd.f32 %v449_v55, %v411_v54  ;;  %v510_v34 = vadd.f32 %v1719_v44, %v490_v56 }
 0x2de   :  { %v451_v58 = vpop.f32.mrf.mxu0  ;;  %v1271_v59 = vpop.f32.mrf.mxu1 }
 0x2df   :  { %v1113_v60 = vmul.f32 -1.442695, %v496_v57  ;;  %v503_v28 = vadd.f32 %v451_v58, %v412_v27  ;;  %v523_v58 = vunpack.c.h.bf16 %v1116_v46 }
 0x2e0   :  { %v453_v61 = vpop.f32.mrf.mxu0  ;;  %v493_v62 = vpop.f32.mrf.mxu1 }
 0x2e1   :  { %1429 = vpow2.f32 %v1113_v60  ;;  %v1114_v29 = vmul.f32 -1.442695, %v503_v28 }
 0x2e2   :  { %v454_v63 = vpop.f32.mrf.mxu0  ;;  %v1272_v25 = vpop.f32.mrf.mxu1 }
 0x2e3   :  { %1431 = vpow2.f32 %v1114_v29  ;;  %v1877_v63 = vld [vmem:[%s2062_s0 + $0x2c] ss:$12 sps:$4 sm:$0xff]  }
 0x2e4   :  { %v524_v27 = vunpack.c.l.bf16 %v1877_v63 }
 0x2ee   :  { %v1430_v30 = vpop.eup %1429 }
 0x2ef   :  { %v500_v31 = vadd.f32 1.0, %v1430_v30 }
 0x2f0   :  { %v1432_v32 = vpop.eup %1431 }
 0x2f1   :  { %1433 = vrcp.f32 %v500_v31  ;;  %v507_v39 = vadd.f32 1.0, %v1432_v32 }
 0x2fe   :  { %v1434_v35 = vpop.eup %1433 }
 0x2ff   :  { %v511_v36 = vmul.f32 %v1434_v35, %v510_v34 }
 0x301   :  { %v512_v37 = vadd.f32 %v511_v36, %v413_v33 }
 0x303   :  { %1435 = vtanh.f32 %v512_v37 }
 0x304   :  { %1437 = vrcp.f32 %v507_v39 }
 0x310   :  { %v1436_v40 = vpop.eup %1435 }
 0x311   :  { %v514_v41 = vsub.f32 %v1779_v51, %v1436_v40  ;;  %v1438_v42 = vpop.eup %1437 }
 0x313   :  { %v515_v43 = vmul.f32 %v1438_v42, %v514_v41 }
 0x315   :  { %v1828_v45 = vadd.f32 %v1436_v40, %v515_v43  ;;  %v1121_v40 = vld [vmem:[%s2062_s0 + $0x30] sm:$0xff] }
 0x316   :  { %v633_v41 = vunpack.c.l.bf16 %v1121_v40 }
 0x317   :  { %1115 = vst [vmem:[%s2064_s3 + $0x10] sm:$0xff] %v1828_v45  ;;  %v525_v38 = vpack.c.bf16 %v1828_v45, %v1828_v45 }
 0x319   :  { %559 = vmatmul.mubr.bf16.vlgmr.msra.gmra.mxu0 %v525_v38  ;;  %1290 = vmatmul.mubr.bf16.vlgmr.msra.gmra.mxu1 %v525_v38 }
 0x31a   :  { %638 = vmatpush1.bf16.msra.mxu0 %v1531_v3  ;;  %1294 = vmatpush3.bf16.msra.mxu1 %v1568_v9 }
 0x31b   :  { %639 = vmatprep.subr.bf16.mxu0 %v1539_v4  ;;  %1295 = vmatprep.subr.bf16.mxu1 %v1497_v1 }
 0x31c   :  { %669 = vmatprep.mubr.bf16.mxu0 %v1498_v2  ;;  %1309 = vmatprep.mubr.msk.bf16.mxu1 %vm1499_vm0, %v1497_v1 }
 0x31e   :  { %640 = vmatpush1.bf16.msra.mxu0 %v1545_v5  ;;  %1296 = vmatpush3.bf16.msra.mxu1 %v1586_v12 }
 0x31f   :  { %641 = vmatprep.subr.bf16.mxu0 %v1551_v6  ;;  %1297 = vmatprep.subr.bf16.mxu1 %v1497_v1 }
 0x322   :  { %642 = vmatpush1.bf16.msra.mxu0 %v1557_v7  ;;  %1298 = vmatpush3.bf16.msra.mxu1 %v1605_v15 }
 0x323   :  { %643 = vmatprep.subr.bf16.mxu0 %v1563_v8  ;;  %1299 = vmatprep.subr.bf16.mxu1 %v1497_v1 }
 0x326   :  { %644 = vmatpush1.bf16.msra.mxu0 %v1574_v10  ;;  %1300 = vmatpush3.bf16.msra.mxu1 %v1624_v18 }
 0x327   :  { %645 = vmatprep.subr.bf16.mxu0 %v1579_v11  ;;  %1301 = vmatprep.subr.bf16.mxu1 %v1497_v1 }
 0x32a   :  { %646 = vmatpush1.bf16.msra.mxu0 %v1592_v13  ;;  %1302 = vmatpush3.bf16.msra.mxu1 %v1643_v21 }
 0x32b   :  { %647 = vmatprep.subr.bf16.mxu0 %v1598_v14  ;;  %1303 = vmatprep.subr.bf16.mxu1 %v1497_v1 }
 0x32e   :  { %648 = vmatpush1.bf16.msra.mxu0 %v1612_v16  ;;  %1304 = vmatpush3.bf16.msra.mxu1 %v1657_v23 }
 0x32f   :  { %649 = vmatprep.subr.bf16.mxu0 %v1618_v17  ;;  %1305 = vmatprep.subr.bf16.mxu1 %v1497_v1 }
 0x332   :  { %650 = vmatpush1.bf16.msra.mxu0 %v1631_v19  ;;  %1306 = vmatpush3.bf16.msra.mxu1 %v1665_v24 }
 0x333   :  { %651 = vmatprep.subr.bf16.mxu0 %v1637_v20  ;;  %1307 = vmatprep.subr.bf16.mxu1 %v1497_v1 }
 0x336   :  { %652 = vmatpush1.bf16.msra.mxu0 %v1650_v22  ;;  %1308 = vmatpush3.bf16.msra.mxu1 %v1675_v26 }
 0x337   :  { %748 = vmatprep.subr.bf16.mxu0 %v1524_v0  ;;  %1313 = vmatprep.subr.bf16.mxu1 %v1497_v1 }
 0x3d9   :  { %v560_v48 = vpop.f32.mrf.mxu0  ;;  %v601_v49 = vpop.f32.mrf.mxu1 }
 0x3da   :  { %v607_v50 = vadd.f32 %v560_v48, %v522_v47  ;;  %v621_v28 = vadd.f32 %v1719_v44, %v601_v49 }
 0x3db   :  { %v562_v51 = vpop.f32.mrf.mxu0  ;;  %v1291_v52 = vpop.f32.mrf.mxu1 }
 0x3dc   :  { %v1118_v53 = vmul.f32 -1.442695, %v607_v50  ;;  %v614_v59 = vadd.f32 %v562_v51, %v523_v58  ;;  %v634_v52 = vunpack.c.h.bf16 %v1121_v40  ;;  %v635_v58 = vunpack.c.h.bf16 %v1877_v63 }
 0x3dd   :  { %v564_v54 = vpop.f32.mrf.mxu0  ;;  %v604_v55 = vpop.f32.mrf.mxu1 }
 0x3de   :  { %1439 = vpow2.f32 %v1118_v53  ;;  %v1119_v60 = vmul.f32 -1.442695, %v614_v59 }
 0x3df   :  { %v565_v56 = vpop.f32.mrf.mxu0  ;;  %v1292_v57 = vpop.f32.mrf.mxu1 }
 0x3e0   :  { %1441 = vpow2.f32 %v1119_v60 }
 0x3eb   :  { %v1440_v61 = vpop.eup %1439 }
 0x3ec   :  { %v611_v62 = vadd.f32 1.0, %v1440_v61 }
 0x3ed   :  { %v1442_v25 = vpop.eup %1441 }
 0x3ee   :  { %1443 = vrcp.f32 %v611_v62  ;;  %v618_v32 = vadd.f32 1.0, %v1442_v25 }
 0x3fb   :  { %v1444_v29 = vpop.eup %1443 }
 0x3fc   :  { %v622_v30 = vmul.f32 %v1444_v29, %v621_v28 }
 0x3fe   :  { %v623_v31 = vadd.f32 %v622_v30, %v524_v27 }
 0x400   :  { %1445 = vtanh.f32 %v623_v31 }
 0x401   :  { %1447 = vrcp.f32 %v618_v32 }
 0x40d   :  { %v1446_v33 = vpop.eup %1445 }
 0x40e   :  { %v625_v34 = vsub.f32 %v1828_v45, %v1446_v33  ;;  %v1448_v35 = vpop.eup %1447 }
 0x410   :  { %v626_v36 = vmul.f32 %v1448_v35, %v625_v34 }
 0x412   :  { %v1882_v37 = vadd.f32 %v1446_v33, %v626_v36 }
 0x414   :  { %1120 = vst [vmem:[%s2064_s3 + $0x18] sm:$0xff] %v1882_v37  ;;  %v636_v39 = vpack.c.bf16 %v1882_v37, %v1882_v37 }
 0x416   :  { %670 = vmatmul.mubr.bf16.vlgmr.msra.gmra.mxu0 %v636_v39  ;;  %1310 = vmatmul.mubr.bf16.vlgmr.msra.gmra.mxu1 %v636_v39 }
 0x417   :  { %749 = vmatpush1.bf16.msra.mxu0 %v1531_v3  ;;  %1314 = vmatpush3.bf16.msra.mxu1 %v1568_v9 }
 0x418   :  { %750 = vmatprep.subr.bf16.mxu0 %v1539_v4  ;;  %1315 = vmatprep.subr.bf16.mxu1 %v1497_v1 }
 0x419   :  { %780 = vmatprep.mubr.bf16.mxu0 %v1498_v2  ;;  %1329 = vmatprep.mubr.msk.bf16.mxu1 %vm1499_vm0, %v1497_v1 }
 0x41b   :  { %751 = vmatpush1.bf16.msra.mxu0 %v1545_v5  ;;  %1316 = vmatpush3.bf16.msra.mxu1 %v1586_v12 }
 0x41c   :  { %752 = vmatprep.subr.bf16.mxu0 %v1551_v6  ;;  %1317 = vmatprep.subr.bf16.mxu1 %v1497_v1 }
 0x41f   :  { %753 = vmatpush1.bf16.msra.mxu0 %v1557_v7  ;;  %1318 = vmatpush3.bf16.msra.mxu1 %v1605_v15 }
 0x420   :  { %754 = vmatprep.subr.bf16.mxu0 %v1563_v8  ;;  %1319 = vmatprep.subr.bf16.mxu1 %v1497_v1 }
 0x423   :  { %755 = vmatpush1.bf16.msra.mxu0 %v1574_v10  ;;  %1320 = vmatpush3.bf16.msra.mxu1 %v1624_v18 }
 0x424   :  { %756 = vmatprep.subr.bf16.mxu0 %v1579_v11  ;;  %1321 = vmatprep.subr.bf16.mxu1 %v1497_v1 }
 0x427   :  { %757 = vmatpush1.bf16.msra.mxu0 %v1592_v13  ;;  %1322 = vmatpush3.bf16.msra.mxu1 %v1643_v21 }
 0x428   :  { %758 = vmatprep.subr.bf16.mxu0 %v1598_v14  ;;  %1323 = vmatprep.subr.bf16.mxu1 %v1497_v1 }
 0x42b   :  { %759 = vmatpush1.bf16.msra.mxu0 %v1612_v16  ;;  %1324 = vmatpush3.bf16.msra.mxu1 %v1657_v23 }
 0x42c   :  { %760 = vmatprep.subr.bf16.mxu0 %v1618_v17  ;;  %1325 = vmatprep.subr.bf16.mxu1 %v1497_v1 }
 0x42f   :  { %761 = vmatpush1.bf16.msra.mxu0 %v1631_v19  ;;  %1326 = vmatpush3.bf16.msra.mxu1 %v1665_v24 }
 0x430   :  { %762 = vmatprep.subr.bf16.mxu0 %v1637_v20  ;;  %1327 = vmatprep.subr.bf16.mxu1 %v1497_v1 }
 0x433   :  { %763 = vmatpush1.bf16.msra.mxu0 %v1650_v22  ;;  %1328 = vmatpush3.bf16.msra.mxu1 %v1675_v26 }
 0x434   :  { %859 = vmatprep.subr.bf16.mxu0 %v1524_v0  ;;  %1333 = vmatprep.subr.bf16.mxu1 %v1497_v1 }
 0x4d6   :  { %v671_v42 = vpop.f32.mrf.mxu0  ;;  %v712_v43 = vpop.f32.mrf.mxu1 }
 0x4d7   :  { %v718_v45 = vadd.f32 %v671_v42, %v633_v41  ;;  %v732_v59 = vadd.f32 %v1719_v44, %v712_v43  ;;  %v1980_v41 = vld [vmem:[%s2062_s0 + $0x44] ss:$12 sps:$4 sm:$0xff]  }
 0x4d8   :  { %v673_v38 = vpop.f32.mrf.mxu0  ;;  %v1311_v46 = vpop.f32.mrf.mxu1  ;;  %v746_v43 = vunpack.c.l.bf16 %v1980_v41 }
 0x4d9   :  { %v1123_v47 = vmul.f32 -1.442695, %v718_v45  ;;  %v725_v53 = vadd.f32 %v673_v38, %v634_v52 }
 0x4da   :  { %v675_v48 = vpop.f32.mrf.mxu0  ;;  %v715_v49 = vpop.f32.mrf.mxu1 }
 0x4db   :  { %1449 = vpow2.f32 %v1123_v47  ;;  %v1124_v54 = vmul.f32 -1.442695, %v725_v53 }
 0x4dc   :  { %v676_v50 = vpop.f32.mrf.mxu0  ;;  %v1312_v51 = vpop.f32.mrf.mxu1 }
 0x4dd   :  { %1451 = vpow2.f32 %v1124_v54 }
 0x4e8   :  { %v1450_v55 = vpop.eup %1449 }
 0x4e9   :  { %v722_v56 = vadd.f32 1.0, %v1450_v55  ;;  %v1489_v55 = vld [vmem:[%s2061_s1 + $0xa8] ss:$12 sps:$4 sm:$0xff]  }
 0x4ea   :  { %v1452_v57 = vpop.eup %1451 }
 0x4eb   :  { %1453 = vrcp.f32 %v722_v56  ;;  %v729_v25 = vadd.f32 1.0, %v1452_v57  ;;  %v1490_v56 = vld [vmem:[%s2061_s1 + $0x94] ss:$12 sps:$4 sm:$0xff]   ;;  %v1491_v57 = vld [vmem:[%s2061_s1 + $0x90] ss:$12 sps:$4 sm:$0xff]  }
 0x4f8   :  { %v1454_v60 = vpop.eup %1453 }
 0x4f9   :  { %v733_v61 = vmul.f32 %v1454_v60, %v732_v59  ;;  %v1496_v59 = vld [vmem:[%s2061_s1 + $0x4c] ss:$12 sps:$4 sm:$0xff]  }
 0x4fb   :  { %v734_v62 = vadd.f32 %v733_v61, %v635_v58  ;;  %v1494_v58 = vld [vmem:[%s2061_s1 + $0x64] ss:$12 sps:$4 sm:$0xff]  }
 0x4fd   :  { %1455 = vtanh.f32 %v734_v62 }
 0x4fe   :  { %1457 = vrcp.f32 %v729_v25 }
 0x50a   :  { %v1456_v27 = vpop.eup %1455 }
 0x50b   :  { %v736_v28 = vsub.f32 %v1882_v37, %v1456_v27  ;;  %v1458_v29 = vpop.eup %1457 }
 0x50d   :  { %v737_v30 = vmul.f32 %v1458_v29, %v736_v28 }
 0x50f   :  { %v1931_v31 = vadd.f32 %v1456_v27, %v737_v30  ;;  %v857_v27 = vunpack.c.h.bf16 %v1980_v41 }
 0x511   :  { %1125 = vst [vmem:[%s2064_s3 + $0x20] sm:$0xff] %v1931_v31  ;;  %v747_v63 = vpack.c.bf16 %v1931_v31, %v1931_v31 }
 0x513   :  { %781 = vmatmul.mubr.bf16.vlgmr.msra.gmra.mxu0 %v747_v63  ;;  %1330 = vmatmul.mubr.bf16.vlgmr.msra.gmra.mxu1 %v747_v63 }
 0x514   :  { %860 = vmatpush1.bf16.msra.mxu0 %v1531_v3  ;;  %1334 = vmatpush3.bf16.msra.mxu1 %v1568_v9  ;;  %v1126_v3 = vld [vmem:[%s2062_s0 + $0x3c] sm:$0xff] }
 0x515   :  { %861 = vmatprep.subr.bf16.mxu0 %v1539_v4  ;;  %1335 = vmatprep.subr.bf16.mxu1 %v1497_v1  ;;  %v744_v4 = vunpack.c.l.bf16 %v1126_v3  ;;  %v745_v36 = vunpack.c.h.bf16 %v1126_v3 }
 0x516   :  { %891 = vmatprep.mubr.bf16.mxu0 %v1498_v2  ;;  %1349 = vmatprep.mubr.msk.bf16.mxu1 %vm1499_vm0, %v1497_v1 }
 0x518   :  { %862 = vmatpush1.bf16.msra.mxu0 %v1545_v5  ;;  %1336 = vmatpush3.bf16.msra.mxu1 %v1586_v12 }
 0x519   :  { %863 = vmatprep.subr.bf16.mxu0 %v1551_v6  ;;  %1337 = vmatprep.subr.bf16.mxu1 %v1497_v1 }
 0x51c   :  { %864 = vmatpush1.bf16.msra.mxu0 %v1557_v7  ;;  %1338 = vmatpush3.bf16.msra.mxu1 %v1605_v15 }
 0x51d   :  { %865 = vmatprep.subr.bf16.mxu0 %v1563_v8  ;;  %1339 = vmatprep.subr.bf16.mxu1 %v1497_v1 }
 0x520   :  { %866 = vmatpush1.bf16.msra.mxu0 %v1574_v10  ;;  %1340 = vmatpush3.bf16.msra.mxu1 %v1624_v18 }
 0x521   :  { %867 = vmatprep.subr.bf16.mxu0 %v1579_v11  ;;  %1341 = vmatprep.subr.bf16.mxu1 %v1497_v1 }
 0x524   :  { %868 = vmatpush1.bf16.msra.mxu0 %v1592_v13  ;;  %1342 = vmatpush3.bf16.msra.mxu1 %v1643_v21 }
 0x525   :  { %869 = vmatprep.subr.bf16.mxu0 %v1598_v14  ;;  %1343 = vmatprep.subr.bf16.mxu1 %v1497_v1 }
 0x528   :  { %870 = vmatpush1.bf16.msra.mxu0 %v1612_v16  ;;  %1344 = vmatpush3.bf16.msra.mxu1 %v1657_v23 }
 0x529   :  { %871 = vmatprep.subr.bf16.mxu0 %v1618_v17  ;;  %1345 = vmatprep.subr.bf16.mxu1 %v1497_v1 }
 0x52c   :  { %872 = vmatpush1.bf16.msra.mxu0 %v1631_v19  ;;  %1346 = vmatpush3.bf16.msra.mxu1 %v1665_v24 }
 0x52d   :  { %873 = vmatprep.subr.bf16.mxu0 %v1637_v20  ;;  %1347 = vmatprep.subr.bf16.mxu1 %v1497_v1 }
 0x530   :  { %874 = vmatpush1.bf16.msra.mxu0 %v1650_v22  ;;  %1348 = vmatpush3.bf16.msra.mxu1 %v1675_v26 }
 0x531   :  { %970 = vmatprep.subr.bf16.mxu0 %v1524_v0  ;;  %1353 = vmatprep.subr.bf16.mxu1 %v1497_v1 }
 0x5d3   :  { %v782_v5 = vpop.f32.mrf.mxu0  ;;  %v823_v6 = vpop.f32.mrf.mxu1 }
 0x5d4   :  { %v829_v7 = vadd.f32 %v782_v5, %v744_v4  ;;  %v843_v45 = vadd.f32 %v1719_v44, %v823_v6 }
 0x5d5   :  { %v784_v8 = vpop.f32.mrf.mxu0  ;;  %v1331_v10 = vpop.f32.mrf.mxu1 }
 0x5d6   :  { %v1128_v11 = vmul.f32 -1.442695, %v829_v7  ;;  %v836_v0 = vadd.f32 %v784_v8, %v745_v36  ;;  %v1136_v10 = vld [vmem:[%s2062_s0 + $0x54] sm:$0xff] }
 0x5d7   :  { %v786_v32 = vpop.f32.mrf.mxu0  ;;  %v826_v33 = vpop.f32.mrf.mxu1 }
 0x5d8   :  { %1459 = vpow2.f32 %v1128_v11  ;;  %v1129_v37 = vmul.f32 -1.442695, %v836_v0  ;;  %v966_v11 = vunpack.c.l.bf16 %v1136_v10 }
 0x5d9   :  { %v787_v34 = vpop.f32.mrf.mxu0  ;;  %v1332_v35 = vpop.f32.mrf.mxu1 }
 0x5da   :  { %1461 = vpow2.f32 %v1129_v37 }
 0x5e5   :  { %v1460_v39 = vpop.eup %1459 }
 0x5e6   :  { %v833_v40 = vadd.f32 1.0, %v1460_v39 }
 0x5e7   :  { %v1462_v42 = vpop.eup %1461 }
 0x5e8   :  { %1463 = vrcp.f32 %v833_v40  ;;  %v840_v48 = vadd.f32 1.0, %v1462_v42  ;;  %v967_v42 = vunpack.c.h.bf16 %v1136_v10 }
 0x5f5   :  { %v1464_v38 = vpop.eup %1463 }
 0x5f6   :  { %v844_v46 = vmul.f32 %v1464_v38, %v843_v45 }
 0x5f8   :  { %v845_v47 = vadd.f32 %v844_v46, %v746_v43 }
 0x5fa   :  { %1465 = vtanh.f32 %v845_v47  ;;  %v1137_v47 = vld [vmem:[%s2062_s0 + $0x5c] sm:$0xf] }
 0x5fb   :  { %1467 = vrcp.f32 %v840_v48 }
 0x607   :  { %v1466_v49 = vpop.eup %1465 }
 0x608   :  { %v847_v50 = vsub.f32 %v1931_v31, %v1466_v49  ;;  %v1468_v51 = vpop.eup %1467 }
 0x60a   :  { %v848_v52 = vmul.f32 %v1468_v51, %v847_v50 }
 0x60c   :  { %v1985_v53 = vadd.f32 %v1466_v49, %v848_v52  ;;  %v968_v49 = vunpack.c.l.bf16 %v1137_v47 }
 0x60e   :  { %1130 = vst [vmem:[%s2064_s3 + $0x28] sm:$0xff] %v1985_v53  ;;  %v858_v54 = vpack.c.bf16 %v1985_v53, %v1985_v53 }
 0x610   :  { %892 = vmatmul.mubr.bf16.vlgmr.msra.gmra.mxu0 %v858_v54  ;;  %1350 = vmatmul.mubr.bf16.vlgmr.msra.gmra.mxu1 %v858_v54 }
 0x611   :  { %971 = vmatpush1.bf16.msra.mxu0 %v1489_v55  ;;  %1354 = vmatpush3.bf16.msra.mxu1 %v1568_v9  ;;  %v1492_v9 = vld [vmem:[%s2061_s1 + $0x7c] ss:$12 sps:$4 sm:$0xff]  }
 0x612   :  { %972 = vmatprep.subr.bf16.mxu0 %v1490_v56  ;;  %1355 = vmatprep.subr.bf16.mxu1 %v1497_v1 }
 0x613   :  { %1002 = vmatprep.mubr.bf16.mxu0 %v1498_v2  ;;  %1369 = vmatprep.mubr.msk.bf16.mxu1 %vm1499_vm0, %v1497_v1  ;;  %v1493_v2 = vld [vmem:[%s2061_s1 + $0x78] ss:$12 sps:$4 sm:$0xff]  }
 0x615   :  { %973 = vmatpush1.bf16.msra.mxu0 %v1491_v57  ;;  %1356 = vmatpush3.bf16.msra.mxu1 %v1586_v12  ;;  %v1495_v12 = vld [vmem:[%s2061_s1 + $0x60] ss:$12 sps:$4 sm:$0xff]  }
 0x616   :  { %974 = vmatprep.subr.bf16.mxu0 %v1492_v9  ;;  %1357 = vmatprep.subr.bf16.mxu1 %v1497_v1 }
 0x619   :  { %975 = vmatpush1.bf16.msra.mxu0 %v1493_v2  ;;  %1358 = vmatpush3.bf16.msra.mxu1 %v1605_v15 }
 0x61a   :  { %976 = vmatprep.subr.bf16.mxu0 %v1494_v58  ;;  %1359 = vmatprep.subr.bf16.mxu1 %v1497_v1 }
 0x61d   :  { %977 = vmatpush1.bf16.msra.mxu0 %v1495_v12  ;;  %1360 = vmatpush3.bf16.msra.mxu1 %v1624_v18 }
 0x61e   :  { %978 = vmatprep.subr.bf16.mxu0 %v1496_v59  ;;  %1361 = vmatprep.subr.bf16.mxu1 %v1497_v1 }
 0x621   :  { %979 = vmatpush1.bf16.msra.mxu0 %v1592_v13  ;;  %1362 = vmatpush3.bf16.msra.mxu1 %v1643_v21  ;;  %v1131_v13 = vld [vmem:[%s2062_s0 + $0x48] sm:$0xff] }
 0x622   :  { %980 = vmatprep.subr.bf16.mxu0 %v1598_v14  ;;  %1363 = vmatprep.subr.bf16.mxu1 %v1497_v1  ;;  %v855_v14 = vunpack.c.l.bf16 %v1131_v13  ;;  %v856_v60 = vunpack.c.h.bf16 %v1131_v13 }
 0x625   :  { %981 = vmatpush1.bf16.msra.mxu0 %v1612_v16  ;;  %1364 = vmatpush3.bf16.msra.mxu1 %v1657_v23 }
 0x626   :  { %982 = vmatprep.subr.bf16.mxu0 %v1618_v17  ;;  %1365 = vmatprep.subr.bf16.mxu1 %v1497_v1 }
 0x629   :  { %983 = vmatpush1.bf16.msra.mxu0 %v1631_v19  ;;  %1366 = vmatpush3.bf16.msra.mxu1 %v1665_v24 }
 0x62a   :  { %984 = vmatprep.subr.bf16.mxu0 %v1637_v20  ;;  %1367 = vmatprep.subr.bf16.mxu1 %v1497_v1 }
 0x62d   :  { %985 = vmatpush1.bf16.msra.mxu0 %v1650_v22  ;;  %1368 = vmatpush3.bf16.msra.mxu1 %v1675_v26 }
 0x6d0   :  { %v893_v15 = vpop.f32.mrf.mxu0  ;;  %v934_v16 = vpop.f32.mrf.mxu1 }
 0x6d1   :  { %v940_v17 = vadd.f32 %v893_v15, %v855_v14  ;;  %v954_v28 = vadd.f32 %v1719_v44, %v934_v16 }
 0x6d2   :  { %v895_v18 = vpop.f32.mrf.mxu0  ;;  %v1351_v19 = vpop.f32.mrf.mxu1 }
 0x6d3   :  { %v1133_v21 = vmul.f32 -1.442695, %v940_v17  ;;  %v947_v22 = vadd.f32 %v895_v18, %v856_v60 }
 0x6d4   :  { %v897_v23 = vpop.f32.mrf.mxu0  ;;  %v937_v24 = vpop.f32.mrf.mxu1 }
 0x6d5   :  { %1469 = vpow2.f32 %v1133_v21  ;;  %v1134_v61 = vmul.f32 -1.442695, %v947_v22 }
 0x6d6   :  { %v898_v20 = vpop.f32.mrf.mxu0  ;;  %v1352_v1 = vpop.f32.mrf.mxu1 }
 0x6d7   :  { %1471 = vpow2.f32 %v1134_v61 }
 0x6e2   :  { %v1470_v26 = vpop.eup %1469 }
 0x6e3   :  { %v944_v62 = vadd.f32 1.0, %v1470_v26 }
 0x6e4   :  { %v1472_v25 = vpop.eup %1471 }
 0x6e5   :  { %1473 = vrcp.f32 %v944_v62  ;;  %v951_v63 = vadd.f32 1.0, %v1472_v25 }
 0x6f2   :  { %v1474_v29 = vpop.eup %1473 }
 0x6f3   :  { %v955_v30 = vmul.f32 %v1474_v29, %v954_v28 }
 0x6f5   :  { %v956_v31 = vadd.f32 %v955_v30, %v857_v27 }
 0x6f7   :  { %1475 = vtanh.f32 %v956_v31 }
 0x6f8   :  { %1477 = vrcp.f32 %v951_v63 }
 0x704   :  { %v1476_v3 = vpop.eup %1475 }
 0x705   :  { %v958_v4 = vsub.f32 %v1985_v53, %v1476_v3  ;;  %v1478_v5 = vpop.eup %1477 }
 0x707   :  { %v959_v6 = vmul.f32 %v1478_v5, %v958_v4 }
 0x709   :  { %v960_v7 = vadd.f32 %v1476_v3, %v959_v6 }
 0x70b   :  { %1135 = vst [vmem:[%s2064_s3 + $0x30] sm:$0xff] %v960_v7  ;;  %v969_v8 = vpack.c.bf16 %v960_v7, %v960_v7 }
 0x70d   :  { %1003 = vmatmul.mubr.bf16.vlgmr.msra.gmra.mxu0 %v969_v8  ;;  %1370 = vmatmul.mubr.bf16.vlgmr.msra.gmra.mxu1 %v969_v8 }
 0x7cd   :  { %v1004_v32 = vpop.f32.mrf.mxu0  ;;  %v1045_v33 = vpop.f32.mrf.mxu1 }
 0x7ce   :  { %v1051_v34 = vadd.f32 %v1004_v32, %v966_v11  ;;  %v1065_v50 = vadd.f32 %v1719_v44, %v1045_v33 }
 0x7cf   :  { %v1006_v35 = vpop.f32.mrf.mxu0  ;;  %v1371_v36 = vpop.f32.mrf.mxu1 }
 0x7d0   :  { %v1138_v0 = vmul.f32 -1.442695, %v1051_v34  ;;  %v1058_v43 = vadd.f32 %v1006_v35, %v967_v42 }
 0x7d1   :  { %v1008_v37 = vpop.f32.mrf.mxu0  ;;  %v1048_v39 = vpop.f32.mrf.mxu1 }
 0x7d2   :  { %1479 = vpow2.f32 %v1138_v0  ;;  %v1139_v45 = vmul.f32 -1.442695, %v1058_v43 }
 0x7d3   :  { %v1009_v40 = vpop.f32.mrf.mxu0  ;;  %v1372_v41 = vpop.f32.mrf.mxu1 }
 0x7d4   :  { %1481 = vpow2.f32 %v1139_v45 }
 0x7df   :  { %v1480_v38 = vpop.eup %1479 }
 0x7e0   :  { %v1055_v46 = vadd.f32 1.0, %v1480_v38 }
 0x7e1   :  { %v1482_v48 = vpop.eup %1481 }
 0x7e2   :  { %1483 = vrcp.f32 %v1055_v46  ;;  %v1062_v54 = vadd.f32 1.0, %v1482_v48 }
 0x7ef   :  { %v1484_v51 = vpop.eup %1483 }
 0x7f0   :  { %v1066_v52 = vmul.f32 %v1484_v51, %v1065_v50 }
 0x7f2   :  { %v1067_v53 = vadd.f32 %v1066_v52, %v968_v49 }
 0x7f4   :  { %1485 = vtanh.f32 %v1067_v53 }
 0x7f5   :  { %1487 = vrcp.f32 %v1062_v54 }
 0x801   :  { %v1486_v55 = vpop.eup %1485 }
 0x802   :  { %v1069_v56 = vsub.f32 %v960_v7, %v1486_v55  ;;  %v1488_v57 = vpop.eup %1487 }
 0x804   :  { %v1070_v9 = vmul.f32 %v1488_v57, %v1069_v56 }
 0x806   :  { %v1071_v2 = vadd.f32 %v1486_v55, %v1070_v9 }
 0x808   :  { %1140 = vst [vmem:[%s2064_s3 + $0x38] sm:$0xff] %v1071_v2 }

// kernel: gru_rnn_forward.2
= control target key start
LH: loop header
LB: loop body
LE: loop exit
PB: predicated region body
PF: predicated region fallthrough
CT: control target
= control target key end

     0   :  { %8 = vsyncpa [#allocation4], 0  ;;  %s1535_s12 = smov [#allocation3]   ;;  %s2008_s0 = inlined_call_operand.vmem [shape: bf16[8,8,384], index: 0, kind: input, shape index: {}]   ;;  %s2009_s1 = inlined_call_operand.hbm [shape: bf16[128,384], index: 1, kind: input, shape index: {}]   ;;  %s2010_s2 = inlined_call_operand.vmem [shape: f32[1,128], index: 2, kind: input, shape index: {}]   ;;  %s2011_s3 = inlined_call_operand.vmem [shape: f32[8,8,128], index: 3, kind: output, shape index: {}]  }
   0x1   :  { %s16_s13 = sshll.u32 %s1535_s12, 4  ;;  %s17_s13 = int_to_ptr.vmem [resolvable:$true] %s16_s13 }
   0x2   :  { %s1521_s14 = scalar_lea.vmem %s17_s13, 3072  ;;  %p1526_p1 = scmp.lt.s32.totalorder %s17_s13, %s17_s13 }
   0x3   :  { %p1522_p0 = scmp.ne.s32.totalorder %s17_s13, %s1521_s14  ;;  %p1527_p2 = scmp.lt.s32.totalorder %s1521_s14, %s1521_s14 }
   0x5   :  { %p1528_p3 = por %p1527_p2, %p1526_p1 }
   0x7   :  { %p1529_p4 = pnand %p1528_p3, %p1522_p0 }
   0x9   :  { %1532 = shalt.err (!%p1529_p4)
}
   0xa   :  { %s1536_s15 = smov 192   ;;  %s1537_s16 = smov 12  }
   0xb   :  { %22 = dma.hbm_to_vmem [thread:$0]  %s2009_s1, 3072, %s17_s13, [#allocation4], %s1536_s15, %s1536_s15, %s1537_s16  }
   0xc   :  { %1533 = dma.done.wait [#allocation4], 3072  }
   0xd   :  { %1534 = vsyncadd [#allocation4], 4294964224  ;;  %v1538_v0 = vmov 0.0   ;;  %v1539_v1 = vmov 0   ;;  %vm1540_vm0 = vmmov 0   ;;  %v1541_v25 = vmov 0.0|0.0  }
   0xe   :  { %1228 = vmatprep.subr.bf16.mxu1 %v1538_v0  ;;  %240 = vmatprep.mubr.bf16.mxu0 %v1539_v1  ;;  %v1569_v2 = vld [vmem:[#allocation3 + $0xac] ss:$12 sps:$4 sm:$0xff]   ;;  %v1571_v3 = vld [vmem:[#allocation3 + $0xa8] ss:$12 sps:$4 sm:$0xff]   ;;  %v1577_v5 = vld [vmem:[#allocation3 + $0x90] ss:$12 sps:$4 sm:$0xff]  }
   0xf   :  { %1244 = vmatprep.mubr.msk.bf16.mxu1 %vm1540_vm0, %v1538_v0  ;;  %208 = vmatprep.subr.bf16.mxu0 %v1569_v2  ;;  %v1574_v4 = vld [vmem:[#allocation3 + $0x94] ss:$12 sps:$4 sm:$0xff]   ;;  %v1580_v6 = vld [vmem:[#allocation3 + $0x7c] ss:$12 sps:$4 sm:$0xff]   ;;  %v1583_v7 = vld [vmem:[#allocation3 + $0x78] ss:$12 sps:$4 sm:$0xff]  }
  0x10   :  { %209 = vmatpush1.bf16.msra.mxu0 %v1571_v3  ;;  %v1586_v8 = vld [vmem:[#allocation3 + $0x64] ss:$12 sps:$4 sm:$0xff]   ;;  %v1591_v10 = vld [vmem:[#allocation3 + $0x60] ss:$12 sps:$4 sm:$0xff]   ;;  %v1600_v13 = vld [vmem:[#allocation3 + $0x48] ss:$12 sps:$4 sm:$0xff]  }
  0x11   :  { %210 = vmatprep.subr.bf16.mxu0 %v1574_v4  ;;  %v1588_v9 = vld [vmem:[#allocation3 + $0xb0] ss:$12 sps:$4 sm:$0xff]   ;;  %v1593_v11 = vld [vmem:[#allocation3 + $0x4c] ss:$12 sps:$4 sm:$0xff]   ;;  %v1603_v14 = vld [vmem:[#allocation3 + $0x34] ss:$12 sps:$4 sm:$0xff]  }
  0x12   :  { %1229 = vmatpush3.bf16.msra.mxu1 %v1588_v9  ;;  %v1597_v12 = vld [vmem:[#allocation3 + $0x98] ss:$12 sps:$4 sm:$0xff]   ;;  %v1607_v15 = vld [vmem:[#allocation3 + $0x80] ss:$12 sps:$4 sm:$0xff]   ;;  %v1611_v16 = vld [vmem:[#allocation3 + $0x30] ss:$12 sps:$4 sm:$0xff]  }
  0x13   :  { %1230 = vmatprep.subr.bf16.mxu1 %v1538_v0  ;;  %v1614_v17 = vld [vmem:[#allocation3 + $0x1c] ss:$12 sps:$4 sm:$0xff]   ;;  %v1621_v19 = vld [vmem:[#allocation3 + $0x18] ss:$12 sps:$4 sm:$0xff]   ;;  %v1631_v22 = vld [vmem:[#allocation3] ss:$12 sps:$4 sm:$0xff]  }
  0x14   :  { %211 = vmatpush1.bf16.msra.mxu0 %v1577_v5  ;;  %v1617_v18 = vld [vmem:[#allocation3 + $0x68] ss:$12 sps:$4 sm:$0xff]   ;;  %v1624_v20 = vld [vmem:[#allocation3 + $0x4] ss:$12 sps:$4 sm:$0xff]   ;;  %v1640_v24 = vld [vmem:[#allocation3 + $0x20] ss:$12 sps:$4 sm:$0xff]  }
  0x15   :  { %212 = vmatprep.subr.bf16.mxu0 %v1580_v6  ;;  %v1627_v21 = vld [vmem:[#allocation3 + $0x50] ss:$12 sps:$4 sm:$0xff]   ;;  %v1635_v23 = vld [vmem:[#allocation3 + $0x38] ss:$12 sps:$4 sm:$0xff]   ;;  %v1647_v26 = vld [vmem:[#allocation3 + $0x8] ss:$12 sps:$4 sm:$0xff]  }
  0x16   :  { %1231 = vmatpush3.bf16.msra.mxu1 %v1597_v12  ;;  %v74_v27 = vld [vmem:[%s2008_s0] sm:$0xff]  ;;  %v1696_v45 = vld [vmem:[%s2008_s0 + $0x8] ss:$12 sps:$4 sm:$0xff]   ;;  %v1121_v59 = vld [vmem:[%s2008_s0 + $0xc] sm:$0xff] }
  0x17   :  { %1232 = vmatprep.subr.bf16.mxu1 %v1538_v0  ;;  %v76_v28 = vunpack.c.l.bf16 %v74_v27  ;;  %v77_v35 = vunpack.c.h.bf16 %v74_v27  ;;  %v1691_v44 = vld [vmem:[%s2010_s2] ss:$0 sm:$0xff]  ;;  %v78_v48 = vunpack.c.l.bf16 %v1696_v45  ;;  %v314_v60 = vunpack.c.l.bf16 %v1121_v59 }
  0x18   :  { %213 = vmatpush1.bf16.msra.mxu0 %v1583_v7 }
  0x19   :  { %214 = vmatprep.subr.bf16.mxu0 %v1586_v8 }
  0x1a   :  { %1233 = vmatpush3.bf16.msra.mxu1 %v1607_v15 }
  0x1b   :  { %1234 = vmatprep.subr.bf16.mxu1 %v1538_v0 }
  0x1c   :  { %215 = vmatpush1.bf16.msra.mxu0 %v1591_v10 }
  0x1d   :  { %216 = vmatprep.subr.bf16.mxu0 %v1593_v11 }
  0x1e   :  { %1235 = vmatpush3.bf16.msra.mxu1 %v1617_v18 }
  0x1f   :  { %1236 = vmatprep.subr.bf16.mxu1 %v1538_v0 }
  0x20   :  { %217 = vmatpush1.bf16.msra.mxu0 %v1600_v13 }
  0x21   :  { %218 = vmatprep.subr.bf16.mxu0 %v1603_v14 }
  0x22   :  { %1237 = vmatpush3.bf16.msra.mxu1 %v1627_v21 }
  0x23   :  { %1238 = vmatprep.subr.bf16.mxu1 %v1538_v0 }
  0x24   :  { %219 = vmatpush1.bf16.msra.mxu0 %v1611_v16 }
  0x25   :  { %220 = vmatprep.subr.bf16.mxu0 %v1614_v17 }
  0x26   :  { %1239 = vmatpush3.bf16.msra.mxu1 %v1635_v23 }
  0x27   :  { %1240 = vmatprep.subr.bf16.mxu1 %v1538_v0 }
  0x28   :  { %221 = vmatpush1.bf16.msra.mxu0 %v1621_v19 }
  0x29   :  { %222 = vmatprep.subr.bf16.mxu0 %v1624_v20 }
  0x2a   :  { %1241 = vmatpush3.bf16.msra.mxu1 %v1640_v24 }
  0x2b   :  { %1242 = vmatprep.subr.bf16.mxu1 %v1538_v0 }
  0x2c   :  { %223 = vmatpush1.bf16.msra.mxu0 %v1631_v22 }
  0x2d   :  { %318 = vmatprep.subr.bf16.mxu0 %v1569_v2 }
  0x2e   :  { %1243 = vmatpush3.bf16.msra.mxu1 %v1647_v26 }
  0x2f   :  { %241 = vmatmul.mubr.bf16.vlgmr.msra.gmra.mxu0 %v1541_v25  ;;  %1248 = vmatprep.subr.bf16.mxu1 %v1538_v0 }
  0x30   :  { %319 = vmatpush1.bf16.msra.mxu0 %v1571_v3  ;;  %350 = vmatprep.mubr.bf16.mxu0 %v1539_v1 }
  0x31   :  { %320 = vmatprep.subr.bf16.mxu0 %v1574_v4  ;;  %1245 = vmatmul.mubr.bf16.vlgmr.msra.gmra.mxu1 %v1541_v25 }
  0x32   :  { %1249 = vmatpush3.bf16.msra.mxu1 %v1588_v9  ;;  %1264 = vmatprep.mubr.msk.bf16.mxu1 %vm1540_vm0, %v1538_v0 }
  0x33   :  { %1250 = vmatprep.subr.bf16.mxu1 %v1538_v0 }
  0x34   :  { %321 = vmatpush1.bf16.msra.mxu0 %v1577_v5 }
  0x35   :  { %322 = vmatprep.subr.bf16.mxu0 %v1580_v6 }
  0x36   :  { %1251 = vmatpush3.bf16.msra.mxu1 %v1597_v12 }
  0x37   :  { %1252 = vmatprep.subr.bf16.mxu1 %v1538_v0 }
  0x38   :  { %323 = vmatpush1.bf16.msra.mxu0 %v1583_v7 }
  0x39   :  { %324 = vmatprep.subr.bf16.mxu0 %v1586_v8 }
  0x3a   :  { %1253 = vmatpush3.bf16.msra.mxu1 %v1607_v15 }
  0x3b   :  { %1254 = vmatprep.subr.bf16.mxu1 %v1538_v0 }
  0x3c   :  { %325 = vmatpush1.bf16.msra.mxu0 %v1591_v10 }
  0x3d   :  { %326 = vmatprep.subr.bf16.mxu0 %v1593_v11 }
  0x3e   :  { %1255 = vmatpush3.bf16.msra.mxu1 %v1617_v18 }
  0x3f   :  { %1256 = vmatprep.subr.bf16.mxu1 %v1538_v0 }
  0x40   :  { %327 = vmatpush1.bf16.msra.mxu0 %v1600_v13 }
  0x41   :  { %328 = vmatprep.subr.bf16.mxu0 %v1603_v14 }
  0x42   :  { %1257 = vmatpush3.bf16.msra.mxu1 %v1627_v21 }
  0x43   :  { %1258 = vmatprep.subr.bf16.mxu1 %v1538_v0 }
  0x44   :  { %329 = vmatpush1.bf16.msra.mxu0 %v1611_v16 }
  0x45   :  { %330 = vmatprep.subr.bf16.mxu0 %v1614_v17 }
  0x46   :  { %1259 = vmatpush3.bf16.msra.mxu1 %v1635_v23 }
  0x47   :  { %1260 = vmatprep.subr.bf16.mxu1 %v1538_v0 }
  0x48   :  { %331 = vmatpush1.bf16.msra.mxu0 %v1621_v19 }
  0x49   :  { %332 = vmatprep.subr.bf16.mxu0 %v1624_v20 }
  0x4a   :  { %1261 = vmatpush3.bf16.msra.mxu1 %v1640_v24 }
  0x4b   :  { %1262 = vmatprep.subr.bf16.mxu1 %v1538_v0 }
  0x4c   :  { %333 = vmatpush1.bf16.msra.mxu0 %v1631_v22 }
  0x4d   :  { %429 = vmatprep.subr.bf16.mxu0 %v1569_v2 }
  0x4e   :  { %1263 = vmatpush3.bf16.msra.mxu1 %v1647_v26 }
  0x4f   :  { %1268 = vmatprep.subr.bf16.mxu1 %v1538_v0 }
  0xef   :  { %v242_v29 = vpop.f32.mrf.mxu0 }
  0xf0   :  { %v289_v30 = vadd.f32 %v242_v29, %v76_v28 }
  0xf1   :  { %v244_v31 = vpop.f32.mrf.mxu0  ;;  %v283_v36 = vpop.f32.mrf.mxu1 }
  0xf2   :  { %v1119_v32 = vmul.f32 -1.442695, %v289_v30  ;;  %v296_v38 = vadd.f32 %v244_v31, %v77_v35  ;;  %v303_v46 = vadd.f32 %v1691_v44, %v283_v36 }
  0xf3   :  { %v246_v33 = vpop.f32.mrf.mxu0  ;;  %v1246_v37 = vpop.f32.mrf.mxu1 }
  0xf4   :  { %1427 = vpow2.f32 %v1119_v32  ;;  %v1120_v41 = vmul.f32 -1.442695, %v296_v38  ;;  %v315_v33 = vunpack.c.h.bf16 %v1121_v59 }
  0xf5   :  { %v247_v34 = vpop.f32.mrf.mxu0  ;;  %v286_v39 = vpop.f32.mrf.mxu1 }
  0xf6   :  { %1429 = vpow2.f32 %v1120_v41  ;;  %v316_v39 = vunpack.c.h.bf16 %v1696_v45 }
  0xf7   :  { %v1247_v40 = vpop.f32.mrf.mxu1 }
 0x101   :  { %v1428_v42 = vpop.eup %1427 }
 0x102   :  { %v293_v43 = vadd.f32 1.0, %v1428_v42 }
 0x103   :  { %v1430_v47 = vpop.eup %1429 }
 0x104   :  { %1431 = vrcp.f32 %v293_v43  ;;  %v300_v51 = vadd.f32 1.0, %v1430_v47 }
 0x111   :  { %v1432_v49 = vpop.eup %1431 }
 0x112   :  { %v304_v50 = vmul.f32 %v1432_v49, %v303_v46 }
 0x114   :  { %v305_v52 = vadd.f32 %v304_v50, %v78_v48 }
 0x116   :  { %1433 = vtanh.f32 %v305_v52  ;;  %v1126_v52 = vld [vmem:[%s2008_s0 + $0x18] sm:$0xff] }
 0x117   :  { %1435 = vrcp.f32 %v300_v51 }
 0x123   :  { %v1434_v53 = vpop.eup %1433 }
 0x124   :  { %v307_v54 = vsub.f32 0.0, %v1434_v53  ;;  %v1436_v55 = vpop.eup %1435 }
 0x126   :  { %v308_v56 = vmul.f32 %v1436_v55, %v307_v54 }
 0x128   :  { %v1700_v57 = vadd.f32 %v1434_v53, %v308_v56  ;;  %v425_v53 = vunpack.c.l.bf16 %v1126_v52 }
 0x12a   :  { %310 = vst [vmem:[%s2011_s3] sm:$0xff] %v1700_v57  ;;  %v317_v58 = vpack.c.bf16 %v1700_v57, %v1700_v57 }
 0x12c   :  { %351 = vmatmul.mubr.bf16.vlgmr.msra.gmra.mxu0 %v317_v58  ;;  %1265 = vmatmul.mubr.bf16.vlgmr.msra.gmra.mxu1 %v317_v58 }
 0x12d   :  { %430 = vmatpush1.bf16.msra.mxu0 %v1571_v3  ;;  %1269 = vmatpush3.bf16.msra.mxu1 %v1588_v9 }
 0x12e   :  { %431 = vmatprep.subr.bf16.mxu0 %v1574_v4  ;;  %1270 = vmatprep.subr.bf16.mxu1 %v1538_v0 }
 0x12f   :  { %461 = vmatprep.mubr.bf16.mxu0 %v1539_v1  ;;  %1284 = vmatprep.mubr.msk.bf16.mxu1 %vm1540_vm0, %v1538_v0 }
 0x131   :  { %432 = vmatpush1.bf16.msra.mxu0 %v1577_v5  ;;  %1271 = vmatpush3.bf16.msra.mxu1 %v1597_v12 }
 0x132   :  { %433 = vmatprep.subr.bf16.mxu0 %v1580_v6  ;;  %1272 = vmatprep.subr.bf16.mxu1 %v1538_v0 }
 0x135   :  { %434 = vmatpush1.bf16.msra.mxu0 %v1583_v7  ;;  %1273 = vmatpush3.bf16.msra.mxu1 %v1607_v15 }
 0x136   :  { %435 = vmatprep.subr.bf16.mxu0 %v1586_v8  ;;  %1274 = vmatprep.subr.bf16.mxu1 %v1538_v0 }
 0x139   :  { %436 = vmatpush1.bf16.msra.mxu0 %v1591_v10  ;;  %1275 = vmatpush3.bf16.msra.mxu1 %v1617_v18 }
 0x13a   :  { %437 = vmatprep.subr.bf16.mxu0 %v1593_v11  ;;  %1276 = vmatprep.subr.bf16.mxu1 %v1538_v0 }
 0x13d   :  { %438 = vmatpush1.bf16.msra.mxu0 %v1600_v13  ;;  %1277 = vmatpush3.bf16.msra.mxu1 %v1627_v21 }
 0x13e   :  { %439 = vmatprep.subr.bf16.mxu0 %v1603_v14  ;;  %1278 = vmatprep.subr.bf16.mxu1 %v1538_v0 }
 0x141   :  { %440 = vmatpush1.bf16.msra.mxu0 %v1611_v16  ;;  %1279 = vmatpush3.bf16.msra.mxu1 %v1635_v23 }
 0x142   :  { %441 = vmatprep.subr.bf16.mxu0 %v1614_v17  ;;  %1280 = vmatprep.subr.bf16.mxu1 %v1538_v0 }
 0x145   :  { %442 = vmatpush1.bf16.msra.mxu0 %v1621_v19  ;;  %1281 = vmatpush3.bf16.msra.mxu1 %v1640_v24 }
 0x146   :  { %443 = vmatprep.subr.bf16.mxu0 %v1624_v20  ;;  %1282 = vmatprep.subr.bf16.mxu1 %v1538_v0 }
 0x149   :  { %444 = vmatpush1.bf16.msra.mxu0 %v1631_v22  ;;  %1283 = vmatpush3.bf16.msra.mxu1 %v1647_v26 }
 0x14a   :  { %540 = vmatprep.subr.bf16.mxu0 %v1569_v2  ;;  %1288 = vmatprep.subr.bf16.mxu1 %v1538_v0 }
 0x1ec   :  { %v352_v61 = vpop.f32.mrf.mxu0  ;;  %v393_v62 = vpop.f32.mrf.mxu1 }
 0x1ed   :  { %v399_v63 = vadd.f32 %v352_v61, %v314_v60  ;;  %v413_v40 = vadd.f32 %v1691_v44, %v393_v62 }
 0x1ee   :  { %v354_v25 = vpop.f32.mrf.mxu0  ;;  %v1266_v27 = vpop.f32.mrf.mxu1 }
 0x1ef   :  { %v1123_v28 = vmul.f32 -1.442695, %v399_v63  ;;  %v406_v34 = vadd.f32 %v354_v25, %v315_v33  ;;  %v426_v25 = vunpack.c.h.bf16 %v1126_v52 }
 0x1f0   :  { %v356_v29 = vpop.f32.mrf.mxu0  ;;  %v396_v30 = vpop.f32.mrf.mxu1 }
 0x1f1   :  { %1437 = vpow2.f32 %v1123_v28  ;;  %v1124_v35 = vmul.f32 -1.442695, %v406_v34 }
 0x1f2   :  { %v357_v31 = vpop.f32.mrf.mxu0  ;;  %v1267_v32 = vpop.f32.mrf.mxu1 }
 0x1f3   :  { %1439 = vpow2.f32 %v1124_v35  ;;  %v1798_v31 = vld [vmem:[%s2008_s0 + $0x20] ss:$12 sps:$4 sm:$0xff]  }
 0x1f4   :  { %v427_v33 = vunpack.c.l.bf16 %v1798_v31 }
 0x1fe   :  { %v1438_v36 = vpop.eup %1437 }
 0x1ff   :  { %v403_v37 = vadd.f32 1.0, %v1438_v36 }
 0x200   :  { %v1440_v38 = vpop.eup %1439 }
 0x201   :  { %1441 = vrcp.f32 %v403_v37  ;;  %v410_v46 = vadd.f32 1.0, %v1440_v38 }
 0x20e   :  { %v1442_v41 = vpop.eup %1441 }
 0x20f   :  { %v414_v42 = vmul.f32 %v1442_v41, %v413_v40 }
 0x211   :  { %v415_v43 = vadd.f32 %v414_v42, %v316_v39 }
 0x213   :  { %1443 = vtanh.f32 %v415_v43 }
 0x214   :  { %1445 = vrcp.f32 %v410_v46 }
 0x220   :  { %v1444_v47 = vpop.eup %1443 }
 0x221   :  { %v417_v48 = vsub.f32 %v1700_v57, %v1444_v47  ;;  %v1446_v49 = vpop.eup %1445 }
 0x223   :  { %v418_v50 = vmul.f32 %v1446_v49, %v417_v48 }
 0x225   :  { %v1749_v51 = vadd.f32 %v1444_v47, %v418_v50  ;;  %v1131_v47 = vld [vmem:[%s2008_s0 + $0x24] sm:$0xff] }
 0x226   :  { %v536_v48 = vunpack.c.l.bf16 %v1131_v47 }
 0x227   :  { %1125 = vst [vmem:[%s2011_s3 + $0x8] sm:$0xff] %v1749_v51  ;;  %v428_v45 = vpack.c.bf16 %v1749_v51, %v1749_v51 }
 0x229   :  { %462 = vmatmul.mubr.bf16.vlgmr.msra.gmra.mxu0 %v428_v45  ;;  %1285 = vmatmul.mubr.bf16.vlgmr.msra.gmra.mxu1 %v428_v45 }
 0x22a   :  { %541 = vmatpush1.bf16.msra.mxu0 %v1571_v3  ;;  %1289 = vmatpush3.bf16.msra.mxu1 %v1588_v9 }
 0x22b   :  { %542 = vmatprep.subr.bf16.mxu0 %v1574_v4  ;;  %1290 = vmatprep.subr.bf16.mxu1 %v1538_v0 }
 0x22c   :  { %572 = vmatprep.mubr.bf16.mxu0 %v1539_v1  ;;  %1304 = vmatprep.mubr.msk.bf16.mxu1 %vm1540_vm0, %v1538_v0 }
 0x22e   :  { %543 = vmatpush1.bf16.msra.mxu0 %v1577_v5  ;;  %1291 = vmatpush3.bf16.msra.mxu1 %v1597_v12 }
 0x22f   :  { %544 = vmatprep.subr.bf16.mxu0 %v1580_v6  ;;  %1292 = vmatprep.subr.bf16.mxu1 %v1538_v0 }
 0x232   :  { %545 = vmatpush1.bf16.msra.mxu0 %v1583_v7  ;;  %1293 = vmatpush3.bf16.msra.mxu1 %v1607_v15 }
 0x233   :  { %546 = vmatprep.subr.bf16.mxu0 %v1586_v8  ;;  %1294 = vmatprep.subr.bf16.mxu1 %v1538_v0 }
 0x236   :  { %547 = vmatpush1.bf16.msra.mxu0 %v1591_v10  ;;  %1295 = vmatpush3.bf16.msra.mxu1 %v1617_v18 }
 0x237   :  { %548 = vmatprep.subr.bf16.mxu0 %v1593_v11  ;;  %1296 = vmatprep.subr.bf16.mxu1 %v1538_v0 }
 0x23a   :  { %549 = vmatpush1.bf16.msra.mxu0 %v1600_v13  ;;  %1297 = vmatpush3.bf16.msra.mxu1 %v1627_v21 }
 0x23b   :  { %550 = vmatprep.subr.bf16.mxu0 %v1603_v14  ;;  %1298 = vmatprep.subr.bf16.mxu1 %v1538_v0 }
 0x23e   :  { %551 = vmatpush1.bf16.msra.mxu0 %v1611_v16  ;;  %1299 = vmatpush3.bf16.msra.mxu1 %v1635_v23 }
 0x23f   :  { %552 = vmatprep.subr.bf16.mxu0 %v1614_v17  ;;  %1300 = vmatprep.subr.bf16.mxu1 %v1538_v0 }
 0x242   :  { %553 = vmatpush1.bf16.msra.mxu0 %v1621_v19  ;;  %1301 = vmatpush3.bf16.msra.mxu1 %v1640_v24 }
 0x243   :  { %554 = vmatprep.subr.bf16.mxu0 %v1624_v20  ;;  %1302 = vmatprep.subr.bf16.mxu1 %v1538_v0 }
 0x246   :  { %555 = vmatpush1.bf16.msra.mxu0 %v1631_v22  ;;  %1303 = vmatpush3.bf16.msra.mxu1 %v1647_v26 }
 0x247   :  { %651 = vmatprep.subr.bf16.mxu0 %v1569_v2  ;;  %1308 = vmatprep.subr.bf16.mxu1 %v1538_v0 }
 0x2e9   :  { %v463_v54 = vpop.f32.mrf.mxu0  ;;  %v504_v55 = vpop.f32.mrf.mxu1 }
 0x2ea   :  { %v510_v56 = vadd.f32 %v463_v54, %v425_v53  ;;  %v524_v34 = vadd.f32 %v1691_v44, %v504_v55 }
 0x2eb   :  { %v465_v57 = vpop.f32.mrf.mxu0  ;;  %v1286_v58 = vpop.f32.mrf.mxu1 }
 0x2ec   :  { %v1128_v59 = vmul.f32 -1.442695, %v510_v56  ;;  %v517_v27 = vadd.f32 %v465_v57, %v426_v25  ;;  %v537_v58 = vunpack.c.h.bf16 %v1131_v47  ;;  %v538_v25 = vunpack.c.h.bf16 %v1798_v31 }
 0x2ed   :  { %v467_v60 = vpop.f32.mrf.mxu0  ;;  %v507_v61 = vpop.f32.mrf.mxu1 }
 0x2ee   :  { %1447 = vpow2.f32 %v1128_v59  ;;  %v1129_v28 = vmul.f32 -1.442695, %v517_v27 }
 0x2ef   :  { %v468_v62 = vpop.f32.mrf.mxu0  ;;  %v1287_v63 = vpop.f32.mrf.mxu1 }
 0x2f0   :  { %1449 = vpow2.f32 %v1129_v28 }
 0x2fb   :  { %v1448_v29 = vpop.eup %1447 }
 0x2fc   :  { %v514_v30 = vadd.f32 1.0, %v1448_v29 }
 0x2fd   :  { %v1450_v32 = vpop.eup %1449 }
 0x2fe   :  { %1451 = vrcp.f32 %v514_v30  ;;  %v521_v38 = vadd.f32 1.0, %v1450_v32 }
 0x30b   :  { %v1452_v35 = vpop.eup %1451 }
 0x30c   :  { %v525_v36 = vmul.f32 %v1452_v35, %v524_v34 }
 0x30e   :  { %v526_v37 = vadd.f32 %v525_v36, %v427_v33 }
 0x310   :  { %1453 = vtanh.f32 %v526_v37 }
 0x311   :  { %1455 = vrcp.f32 %v521_v38  ;;  %v1136_v38 = vld [vmem:[%s2008_s0 + $0x30] sm:$0xff] }
 0x31d   :  { %v1454_v39 = vpop.eup %1453 }
 0x31e   :  { %v528_v40 = vsub.f32 %v1749_v51, %v1454_v39  ;;  %v1456_v41 = vpop.eup %1455 }
 0x320   :  { %v529_v42 = vmul.f32 %v1456_v41, %v528_v40 }
 0x322   :  { %v1803_v43 = vadd.f32 %v1454_v39, %v529_v42  ;;  %v647_v39 = vunpack.c.l.bf16 %v1136_v38 }
 0x324   :  { %1130 = vst [vmem:[%s2011_s3 + $0x10] sm:$0xff] %v1803_v43  ;;  %v539_v46 = vpack.c.bf16 %v1803_v43, %v1803_v43 }
 0x326   :  { %573 = vmatmul.mubr.bf16.vlgmr.msra.gmra.mxu0 %v539_v46  ;;  %1305 = vmatmul.mubr.bf16.vlgmr.msra.gmra.mxu1 %v539_v46 }
 0x327   :  { %652 = vmatpush1.bf16.msra.mxu0 %v1571_v3  ;;  %1309 = vmatpush3.bf16.msra.mxu1 %v1588_v9 }
 0x328   :  { %653 = vmatprep.subr.bf16.mxu0 %v1574_v4  ;;  %1310 = vmatprep.subr.bf16.mxu1 %v1538_v0 }
 0x329   :  { %683 = vmatprep.mubr.bf16.mxu0 %v1539_v1  ;;  %1324 = vmatprep.mubr.msk.bf16.mxu1 %vm1540_vm0, %v1538_v0 }
 0x32b   :  { %654 = vmatpush1.bf16.msra.mxu0 %v1577_v5  ;;  %1311 = vmatpush3.bf16.msra.mxu1 %v1597_v12 }
 0x32c   :  { %655 = vmatprep.subr.bf16.mxu0 %v1580_v6  ;;  %1312 = vmatprep.subr.bf16.mxu1 %v1538_v0 }
 0x32f   :  { %656 = vmatpush1.bf16.msra.mxu0 %v1583_v7  ;;  %1313 = vmatpush3.bf16.msra.mxu1 %v1607_v15 }
 0x330   :  { %657 = vmatprep.subr.bf16.mxu0 %v1586_v8  ;;  %1314 = vmatprep.subr.bf16.mxu1 %v1538_v0 }
 0x333   :  { %658 = vmatpush1.bf16.msra.mxu0 %v1591_v10  ;;  %1315 = vmatpush3.bf16.msra.mxu1 %v1617_v18 }
 0x334   :  { %659 = vmatprep.subr.bf16.mxu0 %v1593_v11  ;;  %1316 = vmatprep.subr.bf16.mxu1 %v1538_v0 }
 0x337   :  { %660 = vmatpush1.bf16.msra.mxu0 %v1600_v13  ;;  %1317 = vmatpush3.bf16.msra.mxu1 %v1627_v21 }
 0x338   :  { %661 = vmatprep.subr.bf16.mxu0 %v1603_v14  ;;  %1318 = vmatprep.subr.bf16.mxu1 %v1538_v0 }
 0x33b   :  { %662 = vmatpush1.bf16.msra.mxu0 %v1611_v16  ;;  %1319 = vmatpush3.bf16.msra.mxu1 %v1635_v23 }
 0x33c   :  { %663 = vmatprep.subr.bf16.mxu0 %v1614_v17  ;;  %1320 = vmatprep.subr.bf16.mxu1 %v1538_v0 }
 0x33f   :  { %664 = vmatpush1.bf16.msra.mxu0 %v1621_v19  ;;  %1321 = vmatpush3.bf16.msra.mxu1 %v1640_v24 }
 0x340   :  { %665 = vmatprep.subr.bf16.mxu0 %v1624_v20  ;;  %1322 = vmatprep.subr.bf16.mxu1 %v1538_v0 }
 0x343   :  { %666 = vmatpush1.bf16.msra.mxu0 %v1631_v22  ;;  %1323 = vmatpush3.bf16.msra.mxu1 %v1647_v26 }
 0x344   :  { %762 = vmatprep.subr.bf16.mxu0 %v1569_v2  ;;  %1328 = vmatprep.subr.bf16.mxu1 %v1538_v0 }
 0x3e6   :  { %v574_v49 = vpop.f32.mrf.mxu0  ;;  %v615_v50 = vpop.f32.mrf.mxu1 }
 0x3e7   :  { %v621_v51 = vadd.f32 %v574_v49, %v536_v48  ;;  %v635_v27 = vadd.f32 %v1691_v44, %v615_v50 }
 0x3e8   :  { %v576_v45 = vpop.f32.mrf.mxu0  ;;  %v1306_v52 = vpop.f32.mrf.mxu1 }
 0x3e9   :  { %v1133_v53 = vmul.f32 -1.442695, %v621_v51  ;;  %v628_v59 = vadd.f32 %v576_v45, %v537_v58  ;;  %v648_v45 = vunpack.c.h.bf16 %v1136_v38 }
 0x3ea   :  { %v578_v54 = vpop.f32.mrf.mxu0  ;;  %v618_v55 = vpop.f32.mrf.mxu1 }
 0x3eb   :  { %1457 = vpow2.f32 %v1133_v53  ;;  %v1134_v60 = vmul.f32 -1.442695, %v628_v59 }
 0x3ec   :  { %v579_v56 = vpop.f32.mrf.mxu0  ;;  %v1307_v57 = vpop.f32.mrf.mxu1 }
 0x3ed   :  { %1459 = vpow2.f32 %v1134_v60  ;;  %v1901_v56 = vld [vmem:[%s2008_s0 + $0x38] ss:$12 sps:$4 sm:$0xff]  }
 0x3ee   :  { %v649_v58 = vunpack.c.l.bf16 %v1901_v56 }
 0x3f8   :  { %v1458_v61 = vpop.eup %1457 }
 0x3f9   :  { %v625_v62 = vadd.f32 1.0, %v1458_v61 }
 0x3fa   :  { %v1460_v63 = vpop.eup %1459 }
 0x3fb   :  { %1461 = vrcp.f32 %v625_v62  ;;  %v632_v32 = vadd.f32 1.0, %v1460_v63 }
 0x408   :  { %v1462_v28 = vpop.eup %1461 }
 0x409   :  { %v636_v29 = vmul.f32 %v1462_v28, %v635_v27 }
 0x40b   :  { %v637_v30 = vadd.f32 %v636_v29, %v538_v25 }
 0x40d   :  { %1463 = vtanh.f32 %v637_v30 }
 0x40e   :  { %1465 = vrcp.f32 %v632_v32 }
 0x41a   :  { %v1464_v33 = vpop.eup %1463 }
 0x41b   :  { %v639_v34 = vsub.f32 %v1803_v43, %v1464_v33  ;;  %v1466_v35 = vpop.eup %1465 }
 0x41d   :  { %v640_v36 = vmul.f32 %v1466_v35, %v639_v34 }
 0x41f   :  { %v1852_v37 = vadd.f32 %v1464_v33, %v640_v36 }
 0x421   :  { %1135 = vst [vmem:[%s2011_s3 + $0x18] sm:$0xff] %v1852_v37  ;;  %v650_v31 = vpack.c.bf16 %v1852_v37, %v1852_v37 }
 0x423   :  { %684 = vmatmul.mubr.bf16.vlgmr.msra.gmra.mxu0 %v650_v31  ;;  %1325 = vmatmul.mubr.bf16.vlgmr.msra.gmra.mxu1 %v650_v31 }
 0x424   :  { %763 = vmatpush1.bf16.msra.mxu0 %v1571_v3  ;;  %1329 = vmatpush3.bf16.msra.mxu1 %v1588_v9 }
 0x425   :  { %764 = vmatprep.subr.bf16.mxu0 %v1574_v4  ;;  %1330 = vmatprep.subr.bf16.mxu1 %v1538_v0 }
 0x426   :  { %794 = vmatprep.mubr.bf16.mxu0 %v1539_v1  ;;  %1344 = vmatprep.mubr.msk.bf16.mxu1 %vm1540_vm0, %v1538_v0 }
 0x428   :  { %765 = vmatpush1.bf16.msra.mxu0 %v1577_v5  ;;  %1331 = vmatpush3.bf16.msra.mxu1 %v1597_v12 }
 0x429   :  { %766 = vmatprep.subr.bf16.mxu0 %v1580_v6  ;;  %1332 = vmatprep.subr.bf16.mxu1 %v1538_v0 }
 0x42c   :  { %767 = vmatpush1.bf16.msra.mxu0 %v1583_v7  ;;  %1333 = vmatpush3.bf16.msra.mxu1 %v1607_v15 }
 0x42d   :  { %768 = vmatprep.subr.bf16.mxu0 %v1586_v8  ;;  %1334 = vmatprep.subr.bf16.mxu1 %v1538_v0 }
 0x430   :  { %769 = vmatpush1.bf16.msra.mxu0 %v1591_v10  ;;  %1335 = vmatpush3.bf16.msra.mxu1 %v1617_v18 }
 0x431   :  { %770 = vmatprep.subr.bf16.mxu0 %v1593_v11  ;;  %1336 = vmatprep.subr.bf16.mxu1 %v1538_v0 }
 0x434   :  { %771 = vmatpush1.bf16.msra.mxu0 %v1600_v13  ;;  %1337 = vmatpush3.bf16.msra.mxu1 %v1627_v21 }
 0x435   :  { %772 = vmatprep.subr.bf16.mxu0 %v1603_v14  ;;  %1338 = vmatprep.subr.bf16.mxu1 %v1538_v0 }
 0x438   :  { %773 = vmatpush1.bf16.msra.mxu0 %v1611_v16  ;;  %1339 = vmatpush3.bf16.msra.mxu1 %v1635_v23 }
 0x439   :  { %774 = vmatprep.subr.bf16.mxu0 %v1614_v17  ;;  %1340 = vmatprep.subr.bf16.mxu1 %v1538_v0 }
 0x43c   :  { %775 = vmatpush1.bf16.msra.mxu0 %v1621_v19  ;;  %1341 = vmatpush3.bf16.msra.mxu1 %v1640_v24 }
 0x43d   :  { %776 = vmatprep.subr.bf16.mxu0 %v1624_v20  ;;  %1342 = vmatprep.subr.bf16.mxu1 %v1538_v0 }
 0x440   :  { %777 = vmatpush1.bf16.msra.mxu0 %v1631_v22  ;;  %1343 = vmatpush3.bf16.msra.mxu1 %v1647_v26 }
 0x441   :  { %873 = vmatprep.subr.bf16.mxu0 %v1569_v2  ;;  %1348 = vmatprep.subr.bf16.mxu1 %v1538_v0 }
 0x4e3   :  { %v685_v40 = vpop.f32.mrf.mxu0  ;;  %v726_v41 = vpop.f32.mrf.mxu1 }
 0x4e4   :  { %v732_v42 = vadd.f32 %v685_v40, %v647_v39  ;;  %v746_v59 = vadd.f32 %v1691_v44, %v726_v41 }
 0x4e5   :  { %v687_v43 = vpop.f32.mrf.mxu0  ;;  %v1326_v46 = vpop.f32.mrf.mxu1 }
 0x4e6   :  { %v1138_v47 = vmul.f32 -1.442695, %v732_v42  ;;  %v739_v52 = vadd.f32 %v687_v43, %v648_v45  ;;  %v760_v43 = vunpack.c.h.bf16 %v1901_v56  ;;  %v1507_v56 = vld [vmem:[#allocation3 + $0xa8] ss:$12 sps:$4 sm:$0xff]  }
 0x4e7   :  { %v689_v48 = vpop.f32.mrf.mxu0  ;;  %v729_v49 = vpop.f32.mrf.mxu1 }
 0x4e8   :  { %1467 = vpow2.f32 %v1138_v47  ;;  %v1139_v53 = vmul.f32 -1.442695, %v739_v52 }
 0x4e9   :  { %v690_v50 = vpop.f32.mrf.mxu0  ;;  %v1327_v51 = vpop.f32.mrf.mxu1 }
 0x4ea   :  { %1469 = vpow2.f32 %v1139_v53 }
 0x4f5   :  { %v1468_v54 = vpop.eup %1467 }
 0x4f6   :  { %v736_v55 = vadd.f32 1.0, %v1468_v54 }
 0x4f7   :  { %v1470_v57 = vpop.eup %1469 }
 0x4f8   :  { %1471 = vrcp.f32 %v736_v55  ;;  %v743_v63 = vadd.f32 1.0, %v1470_v57  ;;  %v1508_v57 = vld [vmem:[#allocation3 + $0x94] ss:$12 sps:$4 sm:$0xff]  }
 0x505   :  { %v1472_v60 = vpop.eup %1471 }
 0x506   :  { %v747_v61 = vmul.f32 %v1472_v60, %v746_v59  ;;  %v1510_v59 = vld [vmem:[#allocation3 + $0x7c] ss:$12 sps:$4 sm:$0xff]   ;;  %v1511_v60 = vld [vmem:[#allocation3 + $0x78] ss:$12 sps:$4 sm:$0xff]  }
 0x508   :  { %v748_v62 = vadd.f32 %v747_v61, %v649_v58  ;;  %v1509_v58 = vld [vmem:[#allocation3 + $0x90] ss:$12 sps:$4 sm:$0xff]  }
 0x50a   :  { %1473 = vtanh.f32 %v748_v62 }
 0x50b   :  { %1475 = vrcp.f32 %v743_v63 }
 0x517   :  { %v1474_v25 = vpop.eup %1473 }
 0x518   :  { %v750_v27 = vsub.f32 %v1852_v37, %v1474_v25  ;;  %v1476_v28 = vpop.eup %1475 }
 0x51a   :  { %v751_v29 = vmul.f32 %v1476_v28, %v750_v27 }
 0x51c   :  { %v1906_v30 = vadd.f32 %v1474_v25, %v751_v29 }
 0x51e   :  { %1140 = vst [vmem:[%s2011_s3 + $0x20] sm:$0xff] %v1906_v30  ;;  %v761_v32 = vpack.c.bf16 %v1906_v30, %v1906_v30 }
 0x520   :  { %795 = vmatmul.mubr.bf16.vlgmr.msra.gmra.mxu0 %v761_v32  ;;  %1345 = vmatmul.mubr.bf16.vlgmr.msra.gmra.mxu1 %v761_v32 }
 0x521   :  { %874 = vmatpush1.bf16.msra.mxu0 %v1571_v3  ;;  %1349 = vmatpush3.bf16.msra.mxu1 %v1588_v9  ;;  %v1141_v3 = vld [vmem:[%s2008_s0 + $0x3c] sm:$0xff] }
 0x522   :  { %875 = vmatprep.subr.bf16.mxu0 %v1574_v4  ;;  %1350 = vmatprep.subr.bf16.mxu1 %v1538_v0  ;;  %v758_v4 = vunpack.c.l.bf16 %v1141_v3  ;;  %v759_v38 = vunpack.c.h.bf16 %v1141_v3 }
 0x523   :  { %905 = vmatprep.mubr.bf16.mxu0 %v1539_v1  ;;  %1364 = vmatprep.mubr.msk.bf16.mxu1 %vm1540_vm0, %v1538_v0 }
 0x525   :  { %876 = vmatpush1.bf16.msra.mxu0 %v1577_v5  ;;  %1351 = vmatpush3.bf16.msra.mxu1 %v1597_v12 }
 0x526   :  { %877 = vmatprep.subr.bf16.mxu0 %v1580_v6  ;;  %1352 = vmatprep.subr.bf16.mxu1 %v1538_v0 }
 0x529   :  { %878 = vmatpush1.bf16.msra.mxu0 %v1583_v7  ;;  %1353 = vmatpush3.bf16.msra.mxu1 %v1607_v15 }
 0x52a   :  { %879 = vmatprep.subr.bf16.mxu0 %v1586_v8  ;;  %1354 = vmatprep.subr.bf16.mxu1 %v1538_v0 }
 0x52d   :  { %880 = vmatpush1.bf16.msra.mxu0 %v1591_v10  ;;  %1355 = vmatpush3.bf16.msra.mxu1 %v1617_v18 }
 0x52e   :  { %881 = vmatprep.subr.bf16.mxu0 %v1593_v11  ;;  %1356 = vmatprep.subr.bf16.mxu1 %v1538_v0 }
 0x531   :  { %882 = vmatpush1.bf16.msra.mxu0 %v1600_v13  ;;  %1357 = vmatpush3.bf16.msra.mxu1 %v1627_v21 }
 0x532   :  { %883 = vmatprep.subr.bf16.mxu0 %v1603_v14  ;;  %1358 = vmatprep.subr.bf16.mxu1 %v1538_v0 }
 0x535   :  { %884 = vmatpush1.bf16.msra.mxu0 %v1611_v16  ;;  %1359 = vmatpush3.bf16.msra.mxu1 %v1635_v23 }
 0x536   :  { %885 = vmatprep.subr.bf16.mxu0 %v1614_v17  ;;  %1360 = vmatprep.subr.bf16.mxu1 %v1538_v0 }
 0x539   :  { %886 = vmatpush1.bf16.msra.mxu0 %v1621_v19  ;;  %1361 = vmatpush3.bf16.msra.mxu1 %v1640_v24 }
 0x53a   :  { %887 = vmatprep.subr.bf16.mxu0 %v1624_v20  ;;  %1362 = vmatprep.subr.bf16.mxu1 %v1538_v0 }
 0x53d   :  { %888 = vmatpush1.bf16.msra.mxu0 %v1631_v22  ;;  %1363 = vmatpush3.bf16.msra.mxu1 %v1647_v26 }
 0x53e   :  { %984 = vmatprep.subr.bf16.mxu0 %v1569_v2  ;;  %1368 = vmatprep.subr.bf16.mxu1 %v1538_v0 }
 0x5e0   :  { %v796_v5 = vpop.f32.mrf.mxu0  ;;  %v837_v6 = vpop.f32.mrf.mxu1 }
 0x5e1   :  { %v843_v7 = vadd.f32 %v796_v5, %v758_v4  ;;  %v857_v46 = vadd.f32 %v1691_v44, %v837_v6 }
 0x5e2   :  { %v798_v8 = vpop.f32.mrf.mxu0  ;;  %v1346_v33 = vpop.f32.mrf.mxu1 }
 0x5e3   :  { %v1143_v34 = vmul.f32 -1.442695, %v843_v7  ;;  %v850_v2 = vadd.f32 %v798_v8, %v759_v38  ;;  %v1151_v7 = vld [vmem:[%s2008_s0 + $0x54] sm:$0xff] }
 0x5e4   :  { %v800_v35 = vpop.f32.mrf.mxu0  ;;  %v840_v36 = vpop.f32.mrf.mxu1  ;;  %v980_v8 = vunpack.c.l.bf16 %v1151_v7 }
 0x5e5   :  { %1477 = vpow2.f32 %v1143_v34  ;;  %v1144_v39 = vmul.f32 -1.442695, %v850_v2 }
 0x5e6   :  { %v801_v37 = vpop.f32.mrf.mxu0  ;;  %v1347_v31 = vpop.f32.mrf.mxu1 }
 0x5e7   :  { %1479 = vpow2.f32 %v1144_v39 }
 0x5f2   :  { %v1478_v40 = vpop.eup %1477 }
 0x5f3   :  { %v847_v41 = vadd.f32 1.0, %v1478_v40 }
 0x5f4   :  { %v1480_v42 = vpop.eup %1479 }
 0x5f5   :  { %1481 = vrcp.f32 %v847_v41  ;;  %v854_v50 = vadd.f32 1.0, %v1480_v42  ;;  %v981_v41 = vunpack.c.h.bf16 %v1151_v7 }
 0x602   :  { %v1482_v47 = vpop.eup %1481 }
 0x603   :  { %v858_v48 = vmul.f32 %v1482_v47, %v857_v46 }
 0x605   :  { %v859_v49 = vadd.f32 %v858_v48, %v760_v43 }
 0x607   :  { %1483 = vtanh.f32 %v859_v49 }
 0x608   :  { %1485 = vrcp.f32 %v854_v50 }
 0x614   :  { %v1484_v51 = vpop.eup %1483 }
 0x615   :  { %v861_v45 = vsub.f32 %v1906_v30, %v1484_v51  ;;  %v1486_v52 = vpop.eup %1485 }
 0x617   :  { %v862_v53 = vmul.f32 %v1486_v52, %v861_v45 }
 0x619   :  { %v1955_v54 = vadd.f32 %v1484_v51, %v862_v53 }
 0x61b   :  { %1145 = vst [vmem:[%s2011_s3 + $0x28] sm:$0xff] %v1955_v54  ;;  %v872_v55 = vpack.c.bf16 %v1955_v54, %v1955_v54 }
 0x61d   :  { %906 = vmatmul.mubr.bf16.vlgmr.msra.gmra.mxu0 %v872_v55  ;;  %1365 = vmatmul.mubr.bf16.vlgmr.msra.gmra.mxu1 %v872_v55 }
 0x61e   :  { %985 = vmatpush1.bf16.msra.mxu0 %v1507_v56  ;;  %1369 = vmatpush3.bf16.msra.mxu1 %v1588_v9  ;;  %v1512_v9 = vld [vmem:[#allocation3 + $0x64] ss:$12 sps:$4 sm:$0xff]  }
 0x61f   :  { %986 = vmatprep.subr.bf16.mxu0 %v1508_v57  ;;  %1370 = vmatprep.subr.bf16.mxu1 %v1538_v0 }
 0x620   :  { %1016 = vmatprep.mubr.bf16.mxu0 %v1539_v1  ;;  %1384 = vmatprep.mubr.msk.bf16.mxu1 %vm1540_vm0, %v1538_v0  ;;  %v1146_v1 = vld [vmem:[%s2008_s0 + $0x48] sm:$0xff] }
 0x622   :  { %987 = vmatpush1.bf16.msra.mxu0 %v1509_v58  ;;  %1371 = vmatpush3.bf16.msra.mxu1 %v1597_v12 }
 0x623   :  { %988 = vmatprep.subr.bf16.mxu0 %v1510_v59  ;;  %1372 = vmatprep.subr.bf16.mxu1 %v1538_v0 }
 0x626   :  { %989 = vmatpush1.bf16.msra.mxu0 %v1511_v60  ;;  %1373 = vmatpush3.bf16.msra.mxu1 %v1607_v15 }
 0x627   :  { %990 = vmatprep.subr.bf16.mxu0 %v1512_v9  ;;  %1374 = vmatprep.subr.bf16.mxu1 %v1538_v0 }
 0x62a   :  { %991 = vmatpush1.bf16.msra.mxu0 %v1591_v10  ;;  %1375 = vmatpush3.bf16.msra.mxu1 %v1617_v18  ;;  %v869_v10 = vunpack.c.l.bf16 %v1146_v1 }
 0x62b   :  { %992 = vmatprep.subr.bf16.mxu0 %v1593_v11  ;;  %1376 = vmatprep.subr.bf16.mxu1 %v1538_v0 }
 0x62e   :  { %993 = vmatpush1.bf16.msra.mxu0 %v1600_v13  ;;  %1377 = vmatpush3.bf16.msra.mxu1 %v1627_v21 }
 0x62f   :  { %994 = vmatprep.subr.bf16.mxu0 %v1603_v14  ;;  %1378 = vmatprep.subr.bf16.mxu1 %v1538_v0 }
 0x632   :  { %995 = vmatpush1.bf16.msra.mxu0 %v1611_v16  ;;  %1379 = vmatpush3.bf16.msra.mxu1 %v1635_v23 }
 0x633   :  { %996 = vmatprep.subr.bf16.mxu0 %v1614_v17  ;;  %1380 = vmatprep.subr.bf16.mxu1 %v1538_v0 }
 0x636   :  { %997 = vmatpush1.bf16.msra.mxu0 %v1621_v19  ;;  %1381 = vmatpush3.bf16.msra.mxu1 %v1640_v24 }
 0x637   :  { %998 = vmatprep.subr.bf16.mxu0 %v1624_v20  ;;  %1382 = vmatprep.subr.bf16.mxu1 %v1538_v0  ;;  %v870_v20 = vunpack.c.h.bf16 %v1146_v1 }
 0x63a   :  { %999 = vmatpush1.bf16.msra.mxu0 %v1631_v22  ;;  %1383 = vmatpush3.bf16.msra.mxu1 %v1647_v26  ;;  %v1147_v26 = vld [vmem:[%s2008_s0 + $0x50] ss:$12 sps:$4 sm:$0xff]  }
 0x63b   :  { %v871_v62 = vunpack.c.l.bf16 %v1147_v26  ;;  %v982_v49 = vunpack.c.h.bf16 %v1147_v26 }
 0x6dd   :  { %v907_v11 = vpop.f32.mrf.mxu0  ;;  %v948_v12 = vpop.f32.mrf.mxu1 }
 0x6de   :  { %v954_v13 = vadd.f32 %v907_v11, %v869_v10  ;;  %v968_v63 = vadd.f32 %v1691_v44, %v948_v12 }
 0x6df   :  { %v909_v14 = vpop.f32.mrf.mxu0  ;;  %v1366_v15 = vpop.f32.mrf.mxu1 }
 0x6e0   :  { %v1148_v16 = vmul.f32 -1.442695, %v954_v13  ;;  %v961_v21 = vadd.f32 %v909_v14, %v870_v20 }
 0x6e1   :  { %v911_v17 = vpop.f32.mrf.mxu0  ;;  %v951_v18 = vpop.f32.mrf.mxu1 }
 0x6e2   :  { %1487 = vpow2.f32 %v1148_v16  ;;  %v1149_v22 = vmul.f32 -1.442695, %v961_v21 }
 0x6e3   :  { %v912_v19 = vpop.f32.mrf.mxu0  ;;  %v1367_v0 = vpop.f32.mrf.mxu1 }
 0x6e4   :  { %1489 = vpow2.f32 %v1149_v22 }
 0x6ef   :  { %v1488_v23 = vpop.eup %1487 }
 0x6f0   :  { %v958_v24 = vadd.f32 1.0, %v1488_v23 }
 0x6f1   :  { %v1490_v61 = vpop.eup %1489 }
 0x6f2   :  { %1491 = vrcp.f32 %v958_v24  ;;  %v965_v29 = vadd.f32 1.0, %v1490_v61 }
 0x6ff   :  { %v1492_v25 = vpop.eup %1491 }
 0x700   :  { %v969_v27 = vmul.f32 %v1492_v25, %v968_v63 }
 0x702   :  { %v970_v28 = vadd.f32 %v969_v27, %v871_v62 }
 0x704   :  { %1493 = vtanh.f32 %v970_v28 }
 0x705   :  { %1495 = vrcp.f32 %v965_v29 }
 0x711   :  { %v1494_v30 = vpop.eup %1493 }
 0x712   :  { %v972_v32 = vsub.f32 %v1955_v54, %v1494_v30  ;;  %v1496_v3 = vpop.eup %1495 }
 0x714   :  { %v973_v4 = vmul.f32 %v1496_v3, %v972_v32 }
 0x716   :  { %v974_v5 = vadd.f32 %v1494_v30, %v973_v4 }
 0x718   :  { %1150 = vst [vmem:[%s2011_s3 + $0x30] sm:$0xff] %v974_v5  ;;  %v983_v6 = vpack.c.bf16 %v974_v5, %v974_v5 }
 0x71a   :  { %1017 = vmatmul.mubr.bf16.vlgmr.msra.gmra.mxu0 %v983_v6  ;;  %1385 = vmatmul.mubr.bf16.vlgmr.msra.gmra.mxu1 %v983_v6 }
 0x7da   :  { %v1018_v33 = vpop.f32.mrf.mxu0  ;;  %v1059_v34 = vpop.f32.mrf.mxu1 }
 0x7db   :  { %v1065_v35 = vadd.f32 %v1018_v33, %v980_v8  ;;  %v1079_v50 = vadd.f32 %v1691_v44, %v1059_v34 }
 0x7dc   :  { %v1020_v36 = vpop.f32.mrf.mxu0  ;;  %v1386_v37 = vpop.f32.mrf.mxu1 }
 0x7dd   :  { %v1153_v31 = vmul.f32 -1.442695, %v1065_v35  ;;  %v1072_v42 = vadd.f32 %v1020_v36, %v981_v41 }
 0x7de   :  { %v1022_v38 = vpop.f32.mrf.mxu0  ;;  %v1062_v2 = vpop.f32.mrf.mxu1 }
 0x7df   :  { %1497 = vpow2.f32 %v1153_v31  ;;  %v1154_v43 = vmul.f32 -1.442695, %v1072_v42 }
 0x7e0   :  { %v1023_v39 = vpop.f32.mrf.mxu0  ;;  %v1387_v40 = vpop.f32.mrf.mxu1 }
 0x7e1   :  { %1499 = vpow2.f32 %v1154_v43 }
 0x7ec   :  { %v1498_v46 = vpop.eup %1497 }
 0x7ed   :  { %v1069_v47 = vadd.f32 1.0, %v1498_v46 }
 0x7ee   :  { %v1500_v48 = vpop.eup %1499 }
 0x7ef   :  { %1501 = vrcp.f32 %v1069_v47  ;;  %v1076_v53 = vadd.f32 1.0, %v1500_v48 }
 0x7fc   :  { %v1502_v51 = vpop.eup %1501 }
 0x7fd   :  { %v1080_v45 = vmul.f32 %v1502_v51, %v1079_v50 }
 0x7ff   :  { %v1081_v52 = vadd.f32 %v1080_v45, %v982_v49 }
 0x801   :  { %1503 = vtanh.f32 %v1081_v52 }
 0x802   :  { %1505 = vrcp.f32 %v1076_v53 }
 0x80e   :  { %v1504_v54 = vpop.eup %1503 }
 0x80f   :  { %v1083_v55 = vsub.f32 %v974_v5, %v1504_v54  ;;  %v1506_v56 = vpop.eup %1505 }
 0x811   :  { %v1084_v57 = vmul.f32 %v1506_v56, %v1083_v55 }
 0x813   :  { %v1085_v58 = vadd.f32 %v1504_v54, %v1084_v57 }
 0x815   :  { %1155 = vst [vmem:[%s2011_s3 + $0x38] sm:$0xff] %v1085_v58 }
 0x816   :  { %1093 = vsyncpa [#allocation4], 1 }

</bundles_post_ra>
